<compile_context>
chip_gen: v6e
topology: v6e:2x2x1
jax: 0.10.0
libtpu: 0.0.40
codegen_flags: <defaults>
</compile_context>

<pallas_src>
import jax
import jax.numpy as jnp
import numpy as np
from jax.experimental import pallas as pl
from jax.experimental.pallas import tpu as pltpu

HIDDEN = 256     # per-direction hidden size (fixed by the torch module)
LANE = 128
SUBLANE = 8


# ----------------------------------------------------------------------------
# Kernel
# ----------------------------------------------------------------------------
def _bilstm_layer(h, w_q, scale, bias):
    """One fused bidirectional LSTM layer at seq_len=1 with zero initial state.

    h     : (Bp, in)  f32 activations
    w_q   : (in, 6H)  int8 weights, columns = [i_f,i_b | g_f,g_b | o_f,o_b]
    scale : (1, 6H)   f32 per-output-column dequant scales
    bias  : (1, 6H)   f32 fused b_ih + b_hh (same column layout)
    returns (Bp, 2H)  f32  == [h_fwd | h_bwd]
    """
    H = HIDDEN
    # int8 -> bf16 is exact; scale is applied to the f32 gates after the MXU.
    w = w_q.astype(jnp.bfloat16)
    gates = jnp.dot(h.astype(jnp.bfloat16), w,
                    preferred_element_type=jnp.float32)
    gates = gates * scale + bias
    i = jax.nn.sigmoid(gates[:, 0 * H:2 * H])   # [i_f | i_b]
    g = jnp.tanh(gates[:, 2 * H:4 * H])         # [g_f | g_b]
    o = jax.nn.sigmoid(gates[:, 4 * H:6 * H])   # [o_f | o_b]
    # forget gate skipped: it multiplies c0 == 0.  c = i*g ; h = o*tanh(c)
    return o * jnp.tanh(i * g)


def rnn_kernel(x_ref, w0_ref, w12_ref, fcw_ref, sb_ref, o_ref):
    # sb rows: 0..2 = dequant scales (layer 0..2), 3..5 = fused biases,
    #          6 = fc bias (first out_pad lanes), 7 = unused padding.
    h = x_ref[...]
    h = _bilstm_layer(h, w0_ref[...],  sb_ref[0:1, :], sb_ref[3:4, :])  # layer 0
    h = _bilstm_layer(h, w12_ref[0],   sb_ref[1:2, :], sb_ref[4:5, :])  # layer 1
    h = _bilstm_layer(h, w12_ref[1],   sb_ref[2:3, :], sb_ref[5:6, :])  # layer 2
    # h == cat(hidden[-2], hidden[-1]) ; fc + sigmoid (output lane-padded)
    out_pad = o_ref.shape[1]
    logits = jnp.dot(h.astype(jnp.bfloat16), fcw_ref[...],
                     preferred_element_type=jnp.float32) + sb_ref[6:7, 0:out_pad]
    o_ref[...] = jax.nn.sigmoid(logits)


def rnn_model_forward(x, packed):
    B, in_dim = x.shape
    out_dim = packed["out_dim"]
    out_pad = packed["fc_w"].shape[1]
    Bp = ((B + SUBLANE - 1) // SUBLANE) * SUBLANE
    x_pad = jnp.zeros((Bp, in_dim), jnp.float32).at[:B].set(x.astype(jnp.float32))

    args = (x_pad, packed["w0"], packed["w12"], packed["fc_w"], packed["sb"])
    vmem = pl.BlockSpec(memory_space=pltpu.MemorySpace.VMEM)
    out = pl.pallas_call(
        rnn_kernel,
        out_shape=jax.ShapeDtypeStruct((Bp, out_pad), jnp.float32),
        in_specs=[vmem] * len(args),
        out_specs=vmem,
        # Actual footprint ~2 MiB (int8 weights + one bf16 widened slab);
        # 16 MiB is a safe cap on every generation (v7x TC has 64 MiB total).
        compiler_params=pltpu.CompilerParams(vmem_limit_bytes=16 * 1024 * 1024),
    )(*args)
    return out[:B, :out_dim]


# ----------------------------------------------------------------------------
# Parameter handling: raw torch-style params -> pruned/fused int8 kernel layout
# ----------------------------------------------------------------------------
def init_raw_params(key, input_dim, output_dim):
    """Deterministic torch-layout parameters, U(-1/sqrt(H), 1/sqrt(H))."""
    k = 1.0 / np.sqrt(HIDDEN)
    keys = iter(jax.random.split(key, 32))

    def uni(shape):
        return jax.random.uniform(next(keys), shape, jnp.float32, -k, k)

    raw = {}
    for l in range(3):
        in_dim = input_dim if l == 0 else 2 * HIDDEN
        for sfx in ("", "_rev"):
            raw[f"w_ih_l{l}{sfx}"] = uni((4 * HIDDEN, in_dim))   # rows [i|f|g|o]
            raw[f"w_hh_l{l}{sfx}"] = uni((4 * HIDDEN, HIDDEN))   # unused: h0 == 0
            raw[f"b_ih_l{l}{sfx}"] = uni((4 * HIDDEN,))
            raw[f"b_hh_l{l}{sfx}"] = uni((4 * HIDDEN,))
    raw["fc_w"] = uni((output_dim, 2 * HIDDEN))                  # torch (out, in)
    raw["fc_b"] = uni((output_dim,))
    return raw


def _quantize_per_column(w):
    """Symmetric per-output-column int8 quantization of w: (in, cols) f32."""
    amax = jnp.max(jnp.abs(w), axis=0)
    scale = jnp.maximum(amax, 1e-30) / 127.0
    w_q = jnp.clip(jnp.round(w / scale[None, :]), -127, 127).astype(jnp.int8)
    return w_q, scale.astype(jnp.float32)


def pack_params(raw, input_dim, output_dim):
    """Prune forget gate, fuse directions, quantize to int8, coalesce smalls."""
    H = HIDDEN
    out_pad = ((output_dim + LANE - 1) // LANE) * LANE
    assert out_pad <= 6 * H, "fc bias row would not fit the coalesced buffer"

    def w_igo_T(w):   # (4H, in) rows [i|f|g|o] -> transposed i, g, o each (in, H)
        return w[0:H].T, w[2 * H:3 * H].T, w[3 * H:4 * H].T

    def b_igo(b):     # (4H,) -> i, g, o each (H,)
        return b[0:H], b[2 * H:3 * H], b[3 * H:4 * H]

    ws, scales, biases = [], [], []
    for l in range(3):
        i_f, g_f, o_f = w_igo_T(raw[f"w_ih_l{l}"])
        i_b, g_b, o_b = w_igo_T(raw[f"w_ih_l{l}_rev"])
        w = jnp.concatenate([i_f, i_b, g_f, g_b, o_f, o_b], axis=1)     # (in, 6H)
        w_q, s = _quantize_per_column(w)
        bi_f, bg_f, bo_f = b_igo(raw[f"b_ih_l{l}"] + raw[f"b_hh_l{l}"])
        bi_b, bg_b, bo_b = b_igo(raw[f"b_ih_l{l}_rev"] + raw[f"b_hh_l{l}_rev"])
        b = jnp.concatenate([bi_f, bi_b, bg_f, bg_b, bo_f, bo_b])       # (6H,)
        ws.append(w_q); scales.append(s); biases.append(b)

    packed = {}
    packed["w0"] = ws[0]                                   # (input_dim, 6H) int8
    packed["w12"] = jnp.stack([ws[1], ws[2]], axis=0)      # (2, 2H, 6H)    int8

    fc_w = jnp.zeros((2 * H, out_pad), jnp.float32).at[:, :output_dim].set(
        raw["fc_w"].T)
    packed["fc_w"] = fc_w.astype(jnp.bfloat16)             # (2H, out_pad) bf16
    fc_b = jnp.zeros((out_pad,), jnp.float32).at[:output_dim].set(raw["fc_b"])

    sb = jnp.zeros((SUBLANE, 6 * H), jnp.float32)
    sb = sb.at[0].set(scales[0]).at[1].set(scales[1]).at[2].set(scales[2])
    sb = sb.at[3].set(biases[0]).at[4].set(biases[1]).at[5].set(biases[2])
    sb = sb.at[6, :out_pad].set(fc_b)
    packed["sb"] = sb                                       # (8, 6H) f32
    packed["out_dim"] = output_dim
    return packed


# ----------------------------------------------------------------------------
# Pure-JAX references: FULL seq_len=1 LSTM semantics (recurrent term + forget
# gate included) from the raw torch-style params.
#   match_kernel=True : i/g/o input-weight path uses the kernel's exact
#                       numerics (int8 weights, bf16 matmul, f32 scale).
#   match_kernel=False: everything in f32 (true-module baseline).
# ----------------------------------------------------------------------------
def rnn_model_reference(x, raw, packed=None):
    H = HIDDEN
    B = x.shape[0]
    h0 = jnp.zeros((B, H), jnp.float32)
    c0 = jnp.zeros((B, H), jnp.float32)
    match_kernel = packed is not None

    def mm_bf16(a, b):
        return jnp.dot(a.astype(jnp.bfloat16), b.astype(jnp.bfloat16),
                       preferred_element_type=jnp.float32)

    h = x
    for l in range(3):
        if match_kernel:
            w_l = packed["w0"] if l == 0 else packed["w12"][l - 1]  # (in,6H) int8
            s_l = packed["sb"][l]                                    # (6H,)
            igo = mm_bf16(h, w_l) * s_l[None, :]                     # (B, 6H)
        outs = []
        for d, sfx in enumerate(("", "_rev")):
            w_ih = raw[f"w_ih_l{l}{sfx}"]          # (4H, in), rows [i|f|g|o]
            w_hh = raw[f"w_hh_l{l}{sfx}"]          # (4H, H)
            b = raw[f"b_ih_l{l}{sfx}"] + raw[f"b_hh_l{l}{sfx}"]
            rec = h0 @ w_hh.T                      # == 0 exactly (h0 == 0)
            if match_kernel:
                zi = igo[:, 0 * H + d * H: 0 * H + (d + 1) * H]
                zg = igo[:, 2 * H + d * H: 2 * H + (d + 1) * H]
                zo = igo[:, 4 * H + d * H: 4 * H + (d + 1) * H]
            else:
                zi = h @ w_ih[0 * H:1 * H].T
                zg = h @ w_ih[2 * H:3 * H].T
                zo = h @ w_ih[3 * H:4 * H].T
            zf = h @ w_ih[1 * H:2 * H].T           # forget gate (multiplies c0)
            i = jax.nn.sigmoid(zi + rec[:, 0:H] + b[0:H])
            f = jax.nn.sigmoid(zf + rec[:, H:2 * H] + b[H:2 * H])
            g = jnp.tanh(zg + rec[:, 2 * H:3 * H] + b[2 * H:3 * H])
            o = jax.nn.sigmoid(zo + rec[:, 3 * H:4 * H] + b[3 * H:4 * H])
            c = f * c0 + i * g
            outs.append(o * jnp.tanh(c))
        h = jnp.concatenate(outs, axis=1)          # [h_fwd | h_bwd]

    if match_kernel:
        logits = mm_bf16(h, raw["fc_w"].T) + raw["fc_b"][None, :]
    else:
        logits = h @ raw["fc_w"].T + raw["fc_b"][None, :]
    return jax.nn.sigmoid(logits)


# ----------------------------------------------------------------------------
if __name__ == "__main__":
    B, INPUT_DIM, OUTPUT_DIM = 2, 32, 8
    root = jax.random.PRNGKey(0)
    kx, kp = jax.random.split(root)
    x = jax.random.normal(kx, (B, INPUT_DIM), jnp.float32)

    raw = init_raw_params(kp, INPUT_DIM, OUTPUT_DIM)
    packed = pack_params(raw, INPUT_DIM, OUTPUT_DIM)

    out = jax.block_until_ready(rnn_model_forward(x, packed))
    assert out.shape == (B, OUTPUT_DIM), out.shape

    # (1) Structure check: reference with the kernel's exact quantized numerics.
    ref_exact = jax.block_until_ready(rnn_model_reference(x, raw, packed))
    np.testing.assert_allclose(np.asarray(out), np.asarray(ref_exact),
                               rtol=2e-3, atol=2e-3)

    # (2) Accuracy check vs the pure-f32 full-LSTM (true torch-module) baseline:
    #     quantifies the int8-weight / bf16-matmul approximation error.
    ref_f32 = jax.block_until_ready(rnn_model_reference(x, raw, None))
    np.testing.assert_allclose(np.asarray(out), np.asarray(ref_f32),
                               rtol=1e-2, atol=1e-2)

    print("KERNEL_OK")
</pallas_src>

<mosaic_0001>
module attributes {stable_mosaic.version = 11 : i64} {
  func.func @rnn_kernel(%arg0: memref<8x32xf32, #tpu.memory_space<vmem>>, %arg1: memref<32x1536xi8, #tpu.memory_space<vmem>>, %arg2: memref<2x512x1536xi8, #tpu.memory_space<vmem>>, %arg3: memref<512x128xbf16, #tpu.memory_space<vmem>>, %arg4: memref<8x1536xf32, #tpu.memory_space<vmem>>, %arg5: memref<8x128xf32, #tpu.memory_space<vmem>>) attributes {dimension_semantics = [], scalar_prefetch = 0 : i64, scratch_operands = 0 : i64, tpu.core_type = #tpu.core_type<tc>} {
    %c0 = arith.constant 0 : index
    %c0_0 = arith.constant 0 : index
    %0 = vector.load %arg0[%c0, %c0_0] : memref<8x32xf32, #tpu.memory_space<vmem>>, vector<8x32xf32>
    %c0_1 = arith.constant 0 : index
    %c0_2 = arith.constant 0 : index
    %1 = vector.load %arg1[%c0_1, %c0_2] : memref<32x1536xi8, #tpu.memory_space<vmem>>, vector<32x1536xi8>
    %c0_3 = arith.constant 0 : index
    %c0_4 = arith.constant 0 : index
    %2 = vector.load %arg4[%c0_3, %c0_4] : memref<8x1536xf32, #tpu.memory_space<vmem>>, vector<1x1536xf32>
    %c3 = arith.constant 3 : index
    %c0_5 = arith.constant 0 : index
    %3 = vector.load %arg4[%c3, %c0_5] : memref<8x1536xf32, #tpu.memory_space<vmem>>, vector<1x1536xf32>
    %4 = arith.sitofp %1 : vector<32x1536xi8> to vector<32x1536xbf16>
    %5 = arith.truncf %0 : vector<8x32xf32> to vector<8x32xbf16>
    %cst = arith.constant dense<0.000000e+00> : vector<8x1536xf32>
    %6 = tpu.matmul %5, %4, %cst {dimension_numbers = #tpu.dot_dimension_numbers<[1], [0], [0], [1], [0, 0, 1, 1], [], []>} : vector<8x32xbf16>, vector<32x1536xbf16>, vector<8x1536xf32> -> vector<8x1536xf32>
    %7 = vector.broadcast %2 : vector<1x1536xf32> to vector<8x1536xf32>
    %8 = arith.mulf %6, %7 : vector<8x1536xf32>
    %9 = vector.broadcast %3 : vector<1x1536xf32> to vector<8x1536xf32>
    %10 = arith.addf %8, %9 : vector<8x1536xf32>
    %11 = vector.extract_strided_slice %10 {offsets = [0, 0], sizes = [8, 512], strides = [1, 1]} : vector<8x1536xf32> to vector<8x512xf32>
    %12 = arith.negf %11 : vector<8x512xf32>
    %13 = math.exp %12 : vector<8x512xf32>
    %cst_6 = arith.constant 1.000000e+00 : f32
    %14 = vector.broadcast %cst_6 : f32 to vector<8x512xf32>
    %15 = arith.addf %14, %13 : vector<8x512xf32>
    %16 = arith.divf %14, %15 : vector<8x512xf32>
    %17 = vector.extract_strided_slice %10 {offsets = [0, 512], sizes = [8, 512], strides = [1, 1]} : vector<8x1536xf32> to vector<8x512xf32>
    %18 = math.tanh %17 : vector<8x512xf32>
    %19 = vector.extract_strided_slice %10 {offsets = [0, 1024], sizes = [8, 512], strides = [1, 1]} : vector<8x1536xf32> to vector<8x512xf32>
    %20 = arith.negf %19 : vector<8x512xf32>
    %21 = math.exp %20 : vector<8x512xf32>
    %cst_7 = arith.constant 1.000000e+00 : f32
    %22 = vector.broadcast %cst_7 : f32 to vector<8x512xf32>
    %23 = arith.addf %22, %21 : vector<8x512xf32>
    %24 = arith.divf %22, %23 : vector<8x512xf32>
    %25 = arith.mulf %16, %18 : vector<8x512xf32>
    %26 = math.tanh %25 : vector<8x512xf32>
    %27 = arith.mulf %24, %26 : vector<8x512xf32>
    %c0_8 = arith.constant 0 : index
    %c0_9 = arith.constant 0 : index
    %c0_10 = arith.constant 0 : index
    %28 = vector.load %arg2[%c0_8, %c0_9, %c0_10] : memref<2x512x1536xi8, #tpu.memory_space<vmem>>, vector<1x512x1536xi8>
    %29 = vector.shape_cast %28 : vector<1x512x1536xi8> to vector<512x1536xi8>
    %c1 = arith.constant 1 : index
    %c0_11 = arith.constant 0 : index
    %30 = vector.load %arg4[%c1, %c0_11] : memref<8x1536xf32, #tpu.memory_space<vmem>>, vector<1x1536xf32>
    %c4 = arith.constant 4 : index
    %c0_12 = arith.constant 0 : index
    %31 = vector.load %arg4[%c4, %c0_12] : memref<8x1536xf32, #tpu.memory_space<vmem>>, vector<1x1536xf32>
    %32 = arith.sitofp %29 : vector<512x1536xi8> to vector<512x1536xbf16>
    %33 = arith.truncf %27 : vector<8x512xf32> to vector<8x512xbf16>
    %cst_13 = arith.constant dense<0.000000e+00> : vector<8x1536xf32>
    %34 = tpu.matmul %33, %32, %cst_13 {dimension_numbers = #tpu.dot_dimension_numbers<[1], [0], [0], [1], [0, 0, 1, 1], [], []>} : vector<8x512xbf16>, vector<512x1536xbf16>, vector<8x1536xf32> -> vector<8x1536xf32>
    %35 = vector.broadcast %30 : vector<1x1536xf32> to vector<8x1536xf32>
    %36 = arith.mulf %34, %35 : vector<8x1536xf32>
    %37 = vector.broadcast %31 : vector<1x1536xf32> to vector<8x1536xf32>
    %38 = arith.addf %36, %37 : vector<8x1536xf32>
    %39 = vector.extract_strided_slice %38 {offsets = [0, 0], sizes = [8, 512], strides = [1, 1]} : vector<8x1536xf32> to vector<8x512xf32>
    %40 = arith.negf %39 : vector<8x512xf32>
    %41 = math.exp %40 : vector<8x512xf32>
    %cst_14 = arith.constant 1.000000e+00 : f32
    %42 = vector.broadcast %cst_14 : f32 to vector<8x512xf32>
    %43 = arith.addf %42, %41 : vector<8x512xf32>
    %44 = arith.divf %42, %43 : vector<8x512xf32>
    %45 = vector.extract_strided_slice %38 {offsets = [0, 512], sizes = [8, 512], strides = [1, 1]} : vector<8x1536xf32> to vector<8x512xf32>
    %46 = math.tanh %45 : vector<8x512xf32>
    %47 = vector.extract_strided_slice %38 {offsets = [0, 1024], sizes = [8, 512], strides = [1, 1]} : vector<8x1536xf32> to vector<8x512xf32>
    %48 = arith.negf %47 : vector<8x512xf32>
    %49 = math.exp %48 : vector<8x512xf32>
    %cst_15 = arith.constant 1.000000e+00 : f32
    %50 = vector.broadcast %cst_15 : f32 to vector<8x512xf32>
    %51 = arith.addf %50, %49 : vector<8x512xf32>
    %52 = arith.divf %50, %51 : vector<8x512xf32>
    %53 = arith.mulf %44, %46 : vector<8x512xf32>
    %54 = math.tanh %53 : vector<8x512xf32>
    %55 = arith.mulf %52, %54 : vector<8x512xf32>
    %c1_16 = arith.constant 1 : index
    %c0_17 = arith.constant 0 : index
    %c0_18 = arith.constant 0 : index
    %56 = vector.load %arg2[%c1_16, %c0_17, %c0_18] : memref<2x512x1536xi8, #tpu.memory_space<vmem>>, vector<1x512x1536xi8>
    %57 = vector.shape_cast %56 : vector<1x512x1536xi8> to vector<512x1536xi8>
    %c2 = arith.constant 2 : index
    %c0_19 = arith.constant 0 : index
    %58 = vector.load %arg4[%c2, %c0_19] : memref<8x1536xf32, #tpu.memory_space<vmem>>, vector<1x1536xf32>
    %c5 = arith.constant 5 : index
    %c0_20 = arith.constant 0 : index
    %59 = vector.load %arg4[%c5, %c0_20] : memref<8x1536xf32, #tpu.memory_space<vmem>>, vector<1x1536xf32>
    %60 = arith.sitofp %57 : vector<512x1536xi8> to vector<512x1536xbf16>
    %61 = arith.truncf %55 : vector<8x512xf32> to vector<8x512xbf16>
    %cst_21 = arith.constant dense<0.000000e+00> : vector<8x1536xf32>
    %62 = tpu.matmul %61, %60, %cst_21 {dimension_numbers = #tpu.dot_dimension_numbers<[1], [0], [0], [1], [0, 0, 1, 1], [], []>} : vector<8x512xbf16>, vector<512x1536xbf16>, vector<8x1536xf32> -> vector<8x1536xf32>
    %63 = vector.broadcast %58 : vector<1x1536xf32> to vector<8x1536xf32>
    %64 = arith.mulf %62, %63 : vector<8x1536xf32>
    %65 = vector.broadcast %59 : vector<1x1536xf32> to vector<8x1536xf32>
    %66 = arith.addf %64, %65 : vector<8x1536xf32>
    %67 = vector.extract_strided_slice %66 {offsets = [0, 0], sizes = [8, 512], strides = [1, 1]} : vector<8x1536xf32> to vector<8x512xf32>
    %68 = arith.negf %67 : vector<8x512xf32>
    %69 = math.exp %68 : vector<8x512xf32>
    %cst_22 = arith.constant 1.000000e+00 : f32
    %70 = vector.broadcast %cst_22 : f32 to vector<8x512xf32>
    %71 = arith.addf %70, %69 : vector<8x512xf32>
    %72 = arith.divf %70, %71 : vector<8x512xf32>
    %73 = vector.extract_strided_slice %66 {offsets = [0, 512], sizes = [8, 512], strides = [1, 1]} : vector<8x1536xf32> to vector<8x512xf32>
    %74 = math.tanh %73 : vector<8x512xf32>
    %75 = vector.extract_strided_slice %66 {offsets = [0, 1024], sizes = [8, 512], strides = [1, 1]} : vector<8x1536xf32> to vector<8x512xf32>
    %76 = arith.negf %75 : vector<8x512xf32>
    %77 = math.exp %76 : vector<8x512xf32>
    %cst_23 = arith.constant 1.000000e+00 : f32
    %78 = vector.broadcast %cst_23 : f32 to vector<8x512xf32>
    %79 = arith.addf %78, %77 : vector<8x512xf32>
    %80 = arith.divf %78, %79 : vector<8x512xf32>
    %81 = arith.mulf %72, %74 : vector<8x512xf32>
    %82 = math.tanh %81 : vector<8x512xf32>
    %83 = arith.mulf %80, %82 : vector<8x512xf32>
    %84 = arith.truncf %83 : vector<8x512xf32> to vector<8x512xbf16>
    %c0_24 = arith.constant 0 : index
    %c0_25 = arith.constant 0 : index
    %85 = vector.load %arg3[%c0_24, %c0_25] : memref<512x128xbf16, #tpu.memory_space<vmem>>, vector<512x128xbf16>
    %cst_26 = arith.constant dense<0.000000e+00> : vector<8x128xf32>
    %86 = tpu.matmul %84, %85, %cst_26 {dimension_numbers = #tpu.dot_dimension_numbers<[1], [0], [0], [1], [0, 0, 1, 1], [], []>} : vector<8x512xbf16>, vector<512x128xbf16>, vector<8x128xf32> -> vector<8x128xf32>
    %c6 = arith.constant 6 : index
    %c0_27 = arith.constant 0 : index
    %87 = vector.load %arg4[%c6, %c0_27] : memref<8x1536xf32, #tpu.memory_space<vmem>>, vector<1x128xf32>
    %88 = vector.broadcast %87 : vector<1x128xf32> to vector<8x128xf32>
    %89 = arith.addf %86, %88 : vector<8x128xf32>
    %90 = arith.negf %89 : vector<8x128xf32>
    %91 = math.exp %90 : vector<8x128xf32>
    %cst_28 = arith.constant 1.000000e+00 : f32
    %92 = vector.broadcast %cst_28 : f32 to vector<8x128xf32>
    %93 = arith.addf %92, %91 : vector<8x128xf32>
    %94 = arith.divf %92, %93 : vector<8x128xf32>
    %c0_29 = arith.constant 0 : index
    %c0_30 = arith.constant 0 : index
    %95 = vector.load %arg5[%c0_29, %c0_30] : memref<8x128xf32, #tpu.memory_space<vmem>>, vector<8x128xf32>
    tpu.vector_store %arg5[%c0_29, %c0_30], %94 {strides = array<i32>} : memref<8x128xf32, #tpu.memory_space<vmem>>, vector<8x128xf32>,
    return
  }
}

</mosaic_0001>

<bundles_post_ra>
// kernel: tpu_custom_call.1
= control target key start
LH: loop header
LB: loop body
LE: loop exit
PB: predicated region body
PF: predicated region fallthrough
CT: control target
= control target key end

     0   :  { %10 = vsyncpa [#allocation3], 0  ;;  %s4362_s0 = inlined_call_operand.hbm [shape: f32[8,32], index: 0, kind: input, shape index: {}]   ;;  %s4363_s1 = inlined_call_operand.hbm [shape: s8[32,1536], index: 1, kind: input, shape index: {}]   ;;  %s4364_s2 = inlined_call_operand.hbm [shape: s8[2,512,1536], index: 2, kind: input, shape index: {}]   ;;  %s4365_s3 = inlined_call_operand.hbm [shape: bf16[512,128], index: 3, kind: input, shape index: {}]   ;;  %s4366_s4 = inlined_call_operand.hbm [shape: f32[8,1536], index: 4, kind: input, shape index: {}]   ;;  %s4367_s5 = inlined_call_operand.hbm [shape: f32[8,128], index: 5, kind: output, shape index: {}]  }
   0x1   :  { %11 = vsyncpa [#allocation6], 0 }
   0x2   :  { %12 = vsyncpa [#allocation9], 0 }
   0x3   :  { %13 = vsyncpa [#allocation4], 0  ;;  %s3979_s18 = smov [#allocation5]   ;;  %s3980_s20 = smov [#allocation8]  }
   0x4   :  { %s30_s19 = sshll.u32 %s3979_s18, 4  ;;  %s51_s21 = sshll.u32 %s3980_s20, 4  ;;  %s31_s19 = int_to_ptr.vmem [resolvable:$true] %s30_s19  ;;  %s52_s21 = int_to_ptr.vmem [resolvable:$true] %s51_s21 }
   0x5   :  { %s3859_s22 = scalar_lea.vmem %s31_s19, 1536  ;;  %p3864_p1 = scmp.lt.s32.totalorder %s31_s19, %s31_s19 }
   0x6   :  { %p3860_p0 = scmp.ne.s32.totalorder %s31_s19, %s3859_s22  ;;  %p3865_p2 = scmp.lt.s32.totalorder %s3859_s22, %s3859_s22 }
   0x8   :  { %p3866_p3 = por %p3865_p2, %p3864_p1 }
   0xa   :  { %p3867_p4 = pnand %p3866_p3, %p3860_p0 }
   0xc   :  { %3870 = shalt.err (!%p3867_p4)
}
   0xd   :  { %33 = dma.hbm_to_vmem [thread:$0]  %s4363_s1, 1536, %s31_s19, [#allocation6]  }
   0xe   :  { %s3879_s25 = scalar_lea.vmem %s52_s21, 4096  ;;  %p3884_p6 = scmp.lt.s32.totalorder %s52_s21, %s52_s21 }
   0xf   :  { %p3880_p5 = scmp.ne.s32.totalorder %s52_s21, %s3879_s25  ;;  %p3885_p7 = scmp.lt.s32.totalorder %s3879_s25, %s3879_s25 }
  0x11   :  { %p3886_p8 = por %p3885_p7, %p3884_p6 }
  0x13   :  { %p3887_p9 = pnand %p3886_p8, %p3880_p5 }
  0x15   :  { %3890 = shalt.err (!%p3887_p9)
}
  0x16   :  { %s3981_s26 = smov 64   ;;  %s3982_s27 = smov 4  }
  0x17   :  { %57 = dma.hbm_to_vmem [thread:$0]  %s4365_s3, 4096, %s52_s21, [#allocation9], %s3981_s26, %s3981_s26, %s3982_s27  }
  0x18   :  { %s3983_s30 = smov [#allocation2]   ;;  %s3984_s7 = smov [#allocation7]  }
  0x19   :  { %s20_s6 = sshll.u32 %s3983_s30, 4  ;;  %s39_s8 = sshll.u32 %s3984_s7, 4  ;;  %s21_s6 = int_to_ptr.vmem [resolvable:$true] %s20_s6  ;;  %s40_s8 = int_to_ptr.vmem [resolvable:$true] %s39_s8 }
  0x1a   :  { %s3899_s1 = scalar_lea.vmem %s21_s6, 128  ;;  %p3904_p11 = scmp.lt.s32.totalorder %s21_s6, %s21_s6 }
  0x1b   :  { %p3900_p10 = scmp.ne.s32.totalorder %s21_s6, %s3899_s1  ;;  %p3905_p12 = scmp.lt.s32.totalorder %s3899_s1, %s3899_s1 }
  0x1d   :  { %p3906_p13 = por %p3905_p12, %p3904_p11 }
  0x1f   :  { %p3907_p0 = pnand %p3906_p13, %p3900_p10 }
  0x21   :  { %3910 = shalt.err (!%p3907_p0)
}
  0x22   :  { %23 = dma.hbm_to_vmem [thread:$0]  %s4362_s0, 128, %s21_s6, [#allocation3]  }
  0x23   :  { %s3919_s11 = scalar_lea.vmem %s40_s8, 49152  ;;  %p3924_p2 = scmp.lt.s32.totalorder %s40_s8, %s40_s8 }
  0x24   :  { %p3920_p1 = scmp.ne.s32.totalorder %s40_s8, %s3919_s11  ;;  %p3925_p3 = scmp.lt.s32.totalorder %s3919_s11, %s3919_s11 }
  0x26   :  { %p3926_p4 = por %p3925_p3, %p3924_p2 }
  0x28   :  { %p3927_p5 = pnand %p3926_p4, %p3920_p1 }
  0x2a   :  { %3930 = shalt.err (!%p3927_p5)
}
  0x2b   :  { %s3985_s3 = smov 1536   ;;  %s3986_s12 = smov 96  }
  0x2c   :  { %45 = dma.hbm_to_vmem [thread:$0]  %s4364_s2, 49152, %s40_s8, [#allocation6], %s3985_s3, %s3985_s3, %s3986_s12  }
  0x2d   :  { %s3987_s15 = smov [#allocation10]  }
  0x2e   :  { %s64_s16 = sshll.u32 %s3987_s15, 4  ;;  %s65_s16 = int_to_ptr.vmem [resolvable:$true] %s64_s16 }
  0x2f   :  { %s3939_s17 = scalar_lea.vmem %s65_s16, 1536  ;;  %p3944_p7 = scmp.lt.s32.totalorder %s65_s16, %s65_s16 }
  0x30   :  { %p3940_p6 = scmp.ne.s32.totalorder %s65_s16, %s3939_s17  ;;  %p3945_p8 = scmp.lt.s32.totalorder %s3939_s17, %s3939_s17 }
  0x32   :  { %p3946_p9 = por %p3945_p8, %p3944_p7 }
  0x34   :  { %p3947_p10 = pnand %p3946_p9, %p3940_p6 }
  0x36   :  { %3950 = shalt.err (!%p3947_p10)
}
  0x37   :  { %67 = dma.hbm_to_vmem [thread:$0]  %s4366_s4, 1536, %s65_s16, [#allocation9]  }
  0x38   :  { %3971 = dma.done.wait [#allocation3], 128  }
  0x39   :  { %3972 = vsyncadd [#allocation3], 4294967168 }
  0x3a   :  { %3973 = dma.done.wait [#allocation6], 50688  }
  0x3b   :  { %3974 = vsyncadd [#allocation6], 4294916608 }
  0x3c   :  { %3975 = dma.done.wait [#allocation9], 5632  }
  0x3d   :  { %3976 = vsyncadd [#allocation9], 4294961664  ;;  %v3988_v0 = vmov 0   ;;  %v86_v1 = vld [vmem:[#allocation5 + $0x8] sm:$0xff]  ;;  %v88_v2 = vld [vmem:[#allocation5 + $0x18] sm:$0xff]  ;;  %vm133_vm0 = vcmask 261120  }
  0x3e   :  { %169 = vmatprep.mubr.bf16.mxu0 %v3988_v0  ;;  %210 = vmatprep.mubr.bf16.mxu1 %v3988_v0  ;;  %v85_v3 = vld [vmem:[#allocation5] sm:$0xff]  ;;  %v109_v4 = vunpack.c.l.s8.bf16 %v86_v1  ;;  %v121_v5 = vunpack.c.h.s8.bf16 %v86_v1  ;;  %v111_v6 = vunpack.c.l.s8.bf16 %v88_v2  ;;  %v123_v7 = vunpack.c.h.s8.bf16 %v88_v2  ;;  %v87_v8 = vld [vmem:[#allocation5 + $0x10] sm:$0xff]  ;;  %v90_v11 = vld [vmem:[#allocation5 + $0x28] sm:$0xff]  ;;  %s3989_s2 = smov [#allocation11]  }
  0x3f   :  { %v120_v9 = vunpack.c.h.s8.bf16 %v85_v3  ;;  %v122_v10 = vunpack.c.h.s8.bf16 %v87_v8  ;;  %v92_v12 = vld [vmem:[#allocation5 + $0x38] sm:$0xff]  ;;  %v108_v13 = vunpack.c.l.s8.bf16 %v85_v3  ;;  %v110_v14 = vunpack.c.l.s8.bf16 %v87_v8  ;;  %v89_v18 = vld [vmem:[#allocation5 + $0x20] sm:$0xff]  ;;  %v91_v19 = vld [vmem:[#allocation5 + $0x30] sm:$0xff]  ;;  %s3542_s4 = sshll.u32 %s3989_s2, 4  ;;  %s3543_s4 = int_to_ptr.vmem [resolvable:$true] %s3542_s4 }
  0x40   :  { %149 = vmatprep.subr.bf16.mxu0 %v121_v5  ;;  %190 = vmatprep.subr.bf16.mxu1 %v123_v7  ;;  %v84_v15 = vld [vmem:[#allocation2] sm:$0xff]  ;;  %v125_v16 = vunpack.c.h.s8.bf16 %v90_v11  ;;  %v127_v17 = vunpack.c.h.s8.bf16 %v92_v12  ;;  %v124_v21 = vunpack.c.h.s8.bf16 %v89_v18  ;;  %v126_v22 = vunpack.c.h.s8.bf16 %v91_v19  ;;  %v94_v23 = vld [vmem:[#allocation5 + $0x48] sm:$0xff]  ;;  %v93_v27 = vld [vmem:[#allocation5 + $0x40] sm:$0xff]  ;;  %s3951_s19 = scalar_lea.vmem %s3543_s4, 128  ;;  %p3956_p12 = scmp.lt.s32.totalorder %s3543_s4, %s3543_s4 }
  0x41   :  { %150 = vmatpush1.bf16.msra.mxu0 %v120_v9  ;;  %191 = vmatpush1.bf16.msra.mxu1 %v122_v10  ;;  %v132_v20 = vpack.c.bf16 %v84_v15, %v84_v15  ;;  %v96_v24 = vld [vmem:[#allocation5 + $0x58] sm:$0xff]  ;;  %v113_v25 = vunpack.c.l.s8.bf16 %v90_v11  ;;  %v115_v26 = vunpack.c.l.s8.bf16 %v92_v12  ;;  %v95_v28 = vld [vmem:[#allocation5 + $0x50] sm:$0xff]  ;;  %v112_v29 = vunpack.c.l.s8.bf16 %v89_v18  ;;  %v632_v35 = vld [vmem:[#allocation7 + $0x128] sm:$0xff]  ;;  %p3952_p11 = scmp.ne.s32.totalorder %s3543_s4, %s3951_s19  ;;  %p3957_p13 = scmp.lt.s32.totalorder %s3951_s19, %s3951_s19 }
  0x42   :  { %151 = vmatprep.subr.bf16.mxu0 %v109_v4  ;;  %192 = vmatprep.subr.bf16.mxu1 %v111_v6  ;;  %v114_v30 = vunpack.c.l.s8.bf16 %v91_v19  ;;  %v129_v31 = vunpack.c.h.s8.bf16 %v94_v23  ;;  %v131_v32 = vunpack.c.h.s8.bf16 %v96_v24  ;;  %v128_v33 = vunpack.c.h.s8.bf16 %v93_v27  ;;  %v728_v36 = vld [vmem:[#allocation7 + $0x428] sm:$0xff]  ;;  %v631_v39 = vld [vmem:[#allocation7 + $0x120] sm:$0xff] }
  0x43   :  { %v130_v34 = vunpack.c.h.s8.bf16 %v95_v28  ;;  %v117_v37 = vunpack.c.l.s8.bf16 %v94_v23  ;;  %v119_v38 = vunpack.c.l.s8.bf16 %v96_v24  ;;  %v727_v40 = vld [vmem:[#allocation7 + $0x420] sm:$0xff]  ;;  %v116_v41 = vunpack.c.l.s8.bf16 %v93_v27  ;;  %v620_v51 = vld [vmem:[#allocation7 + $0xc8] sm:$0xff]  ;;  %p3958_p0 = por %p3957_p13, %p3956_p12 }
  0x44   :  { %v118_v42 = vunpack.c.l.s8.bf16 %v95_v28  ;;  %v884_v43 = vunpack.c.h.s8.bf16 %v632_v35  ;;  %v1076_v44 = vunpack.c.h.s8.bf16 %v728_v36  ;;  %v883_v45 = vunpack.c.h.s8.bf16 %v631_v39  ;;  %v716_v52 = vld [vmem:[#allocation7 + $0x3c8] sm:$0xff]  ;;  %v619_v55 = vld [vmem:[#allocation7 + $0xc0] sm:$0xff] }
  0x45   :  { %152 = vmatpush1.bf16.msra.mxu0 %v108_v13  ;;  %193 = vmatpush1.bf16.msra.mxu1 %v110_v14  ;;  %v1075_v46 = vunpack.c.h.s8.bf16 %v727_v40  ;;  %v872_v47 = vunpack.c.l.s8.bf16 %v632_v35  ;;  %v1064_v48 = vunpack.c.l.s8.bf16 %v728_v36  ;;  %v871_v49 = vunpack.c.l.s8.bf16 %v631_v39  ;;  %v715_v56 = vld [vmem:[#allocation7 + $0x3c0] sm:$0xff]  ;;  %v608_v63 = vld [vmem:[#allocation7 + $0x68] sm:$0xff]  ;;  %p3959_p1 = pnand %p3958_p0, %p3952_p11 }
  0x46   :  { %231 = vmatprep.subr.bf16.mxu0 %v125_v16  ;;  %272 = vmatprep.subr.bf16.mxu1 %v127_v17  ;;  %v1063_v50 = vunpack.c.l.s8.bf16 %v727_v40  ;;  %v860_v53 = vunpack.c.h.s8.bf16 %v620_v51  ;;  %v1052_v54 = vunpack.c.h.s8.bf16 %v716_v52  ;;  %v859_v57 = vunpack.c.h.s8.bf16 %v619_v55  ;;  %v607_v1 = vld [vmem:[#allocation7 + $0x60] sm:$0xff]  ;;  %v596_v11 = vld [vmem:[#allocation7 + $0x8] sm:$0xff] }
  0x47   :  { %v1051_v58 = vunpack.c.h.s8.bf16 %v715_v56  ;;  %v848_v59 = vunpack.c.l.s8.bf16 %v620_v51  ;;  %v1040_v60 = vunpack.c.l.s8.bf16 %v716_v52  ;;  %v847_v61 = vunpack.c.l.s8.bf16 %v619_v55  ;;  %v703_v2 = vld [vmem:[#allocation7 + $0x360] sm:$0xff]  ;;  %v692_v12 = vld [vmem:[#allocation7 + $0x308] sm:$0xff] }
  0x48   :  { %3553 = vmatmul.mubr.msk.bf16.vlgmr.msra.gmra.mxu0 %vm133_vm0, %v132_v20  ;;  %3554 = vmatmul.mubr.msk.bf16.vlgmr.msra.gmra.mxu1 %vm133_vm0, %v132_v20  ;;  %v1039_v62 = vunpack.c.l.s8.bf16 %v715_v56  ;;  %v836_v3 = vunpack.c.h.s8.bf16 %v608_v63  ;;  %v835_v5 = vunpack.c.h.s8.bf16 %v607_v1  ;;  %v1027_v6 = vunpack.c.h.s8.bf16 %v703_v2  ;;  %v595_v15 = vld [vmem:[#allocation7] sm:$0xff]  ;;  %v680_v23 = vld [vmem:[#allocation7 + $0x2a8] sm:$0xff] }
  0x49   :  { %232 = vmatpush1.bf16.msra.mxu0 %v124_v21  ;;  %273 = vmatpush1.bf16.msra.mxu1 %v126_v22  ;;  %v824_v7 = vunpack.c.l.s8.bf16 %v608_v63  ;;  %v823_v9 = vunpack.c.l.s8.bf16 %v607_v1  ;;  %v1015_v10 = vunpack.c.l.s8.bf16 %v703_v2  ;;  %v812_v13 = vunpack.c.h.s8.bf16 %v596_v11  ;;  %v691_v16 = vld [vmem:[#allocation7 + $0x300] sm:$0xff]  ;;  %v776_v24 = vld [vmem:[#allocation7 + $0x5a8] sm:$0xff] }
  0x4a   :  { %233 = vmatprep.subr.bf16.mxu0 %v113_v25  ;;  %274 = vmatprep.subr.bf16.mxu1 %v115_v26  ;;  %v1004_v14 = vunpack.c.h.s8.bf16 %v692_v12  ;;  %v811_v17 = vunpack.c.h.s8.bf16 %v595_v15  ;;  %v1003_v18 = vunpack.c.h.s8.bf16 %v691_v16  ;;  %v800_v19 = vunpack.c.l.s8.bf16 %v596_v11  ;;  %v679_v27 = vld [vmem:[#allocation7 + $0x2a0] sm:$0xff]  ;;  %v668_v35 = vld [vmem:[#allocation7 + $0x248] sm:$0xff] }
  0x4b   :  { %251 = vmatprep.mubr.bf16.mxu0 %v3988_v0  ;;  %292 = vmatprep.mubr.bf16.mxu1 %v3988_v0  ;;  %v799_v21 = vunpack.c.l.s8.bf16 %v595_v15  ;;  %v991_v22 = vunpack.c.l.s8.bf16 %v691_v16  ;;  %v980_v25 = vunpack.c.h.s8.bf16 %v680_v23  ;;  %v1172_v26 = vunpack.c.h.s8.bf16 %v776_v24  ;;  %v775_v28 = vld [vmem:[#allocation7 + $0x5a0] sm:$0xff]  ;;  %v764_v36 = vld [vmem:[#allocation7 + $0x548] sm:$0xff] }
  0x4c   :  { %v667_v39 = vld [vmem:[#allocation7 + $0x240] sm:$0xff]  ;;  %v385_v11 = vlaneseq }
  0x4d   :  { %234 = vmatpush1.bf16.msra.mxu0 %v112_v29  ;;  %275 = vmatpush1.bf16.msra.mxu1 %v114_v30  ;;  %v979_v29 = vunpack.c.h.s8.bf16 %v679_v27  ;;  %v1171_v30 = vunpack.c.h.s8.bf16 %v775_v28  ;;  %v763_v40 = vld [vmem:[#allocation7 + $0x540] sm:$0xff] }
  0x4e   :  { %313 = vmatprep.subr.bf16.mxu0 %v129_v31  ;;  %354 = vmatprep.subr.bf16.mxu1 %v131_v32  ;;  %v968_v31 = vunpack.c.l.s8.bf16 %v680_v23  ;;  %v1160_v32 = vunpack.c.l.s8.bf16 %v776_v24  ;;  %v655_v51 = vld [vmem:[#allocation7 + $0x1e0] sm:$0xff] }
  0x4f   :  { %v751_v52 = vld [vmem:[#allocation7 + $0x4e0] sm:$0xff]  ;;  %v931_v55 = vunpack.c.h.s8.bf16 %v655_v51 }
  0x50   :  { %3555 = vmatmul.mubr.msk.bf16.vlgmr.msra.gmra.mxu0 %vm133_vm0, %v132_v20  ;;  %3556 = vmatmul.mubr.msk.bf16.vlgmr.msra.gmra.mxu1 %vm133_vm0, %v132_v20  ;;  %v1123_v56 = vunpack.c.h.s8.bf16 %v751_v52  ;;  %v643_v63 = vld [vmem:[#allocation7 + $0x180] sm:$0xff] }
  0x51   :  { %314 = vmatpush1.bf16.msra.mxu0 %v128_v33  ;;  %355 = vmatpush1.bf16.msra.mxu1 %v130_v34  ;;  %v967_v33 = vunpack.c.l.s8.bf16 %v679_v27  ;;  %v1159_v34 = vunpack.c.l.s8.bf16 %v775_v28  ;;  %v907_v1 = vunpack.c.h.s8.bf16 %v643_v63  ;;  %v103_v15 = vld [vmem:[#allocation10 + $0x3] ss:$8 sm:$0xf] }
  0x52   :  { %315 = vmatprep.subr.bf16.mxu0 %v117_v37  ;;  %356 = vmatprep.subr.bf16.mxu1 %v119_v38  ;;  %v956_v37 = vunpack.c.h.s8.bf16 %v668_v35  ;;  %v1148_v38 = vunpack.c.h.s8.bf16 %v764_v36  ;;  %v104_v16 = vld [vmem:[#allocation10 + $0x3] ss:$8 sm:$0xf0] }
  0x53   :  { %333 = vmatprep.mubr.bf16.mxu0 %v3988_v0  ;;  %374 = vmatprep.mubr.bf16.mxu1 %v3988_v0  ;;  %v704_v0 = vld [vmem:[#allocation7 + $0x368] sm:$0xff] }
  0x54   :  { %v1028_v4 = vunpack.c.h.s8.bf16 %v704_v0  ;;  %v1016_v8 = vunpack.c.l.s8.bf16 %v704_v0  ;;  %v739_v0 = vld [vmem:[#allocation7 + $0x480] sm:$0xff] }
  0x55   :  { %316 = vmatpush1.bf16.msra.mxu0 %v116_v41  ;;  %357 = vmatpush1.bf16.msra.mxu1 %v118_v42  ;;  %v955_v41 = vunpack.c.h.s8.bf16 %v667_v39  ;;  %v1147_v42 = vunpack.c.h.s8.bf16 %v763_v40  ;;  %v1099_v2 = vunpack.c.h.s8.bf16 %v739_v0 }
  0x56   :  { %1187 = vmatprep.subr.bf16.mxu0 %v884_v43  ;;  %1228 = vmatprep.subr.bf16.mxu1 %v1076_v44  ;;  %v944_v43 = vunpack.c.l.s8.bf16 %v668_v35  ;;  %v1136_v44 = vunpack.c.l.s8.bf16 %v764_v36 }
  0x58   :  { %3557 = vmatmul.mubr.msk.bf16.vlgmr.msra.gmra.mxu0 %vm133_vm0, %v132_v20  ;;  %3558 = vmatmul.mubr.msk.bf16.vlgmr.msra.gmra.mxu1 %vm133_vm0, %v132_v20  ;;  %v992_v20 = vunpack.c.l.s8.bf16 %v692_v12  ;;  %v386_v12 = vshrl.u32 %v385_v11, 7 }
  0x59   :  { %1188 = vmatpush1.bf16.msra.mxu0 %v883_v45  ;;  %1229 = vmatpush1.bf16.msra.mxu1 %v1075_v46  ;;  %v943_v45 = vunpack.c.l.s8.bf16 %v667_v39  ;;  %v1135_v46 = vunpack.c.l.s8.bf16 %v763_v40 }
  0x5a   :  { %1189 = vmatprep.subr.bf16.mxu0 %v872_v47  ;;  %1230 = vmatprep.subr.bf16.mxu1 %v1064_v48  ;;  %v656_v47 = vld [vmem:[#allocation7 + $0x1e8] sm:$0xff] }
  0x5b   :  { %v752_v48 = vld [vmem:[#allocation7 + $0x4e8] sm:$0xff] }
  0x5d   :  { %1190 = vmatpush1.bf16.msra.mxu0 %v871_v49  ;;  %1231 = vmatpush1.bf16.msra.mxu1 %v1063_v50  ;;  %v932_v49 = vunpack.c.h.s8.bf16 %v656_v47  ;;  %v1124_v50 = vunpack.c.h.s8.bf16 %v752_v48 }
  0x5e   :  { %1191 = vmatprep.subr.bf16.mxu0 %v860_v53  ;;  %1232 = vmatprep.subr.bf16.mxu1 %v1052_v54  ;;  %v920_v53 = vunpack.c.l.s8.bf16 %v656_v47  ;;  %v1112_v54 = vunpack.c.l.s8.bf16 %v752_v48 }
  0x61   :  { %1192 = vmatpush1.bf16.msra.mxu0 %v859_v57  ;;  %1233 = vmatpush1.bf16.msra.mxu1 %v1051_v58  ;;  %v644_v57 = vld [vmem:[#allocation7 + $0x188] sm:$0xff] }
  0x62   :  { %1193 = vmatprep.subr.bf16.mxu0 %v848_v59  ;;  %1234 = vmatprep.subr.bf16.mxu1 %v1040_v60  ;;  %v740_v58 = vld [vmem:[#allocation7 + $0x488] sm:$0xff]  ;;  %v919_v59 = vunpack.c.l.s8.bf16 %v655_v51  ;;  %v1111_v60 = vunpack.c.l.s8.bf16 %v751_v52  ;;  %v4087_v52 = vsub.s32 7, %v386_v12 }
  0x65   :  { %1194 = vmatpush1.bf16.msra.mxu0 %v847_v61  ;;  %1235 = vmatpush1.bf16.msra.mxu1 %v1039_v62  ;;  %v908_v61 = vunpack.c.h.s8.bf16 %v644_v57  ;;  %v1100_v62 = vunpack.c.h.s8.bf16 %v740_v58 }
  0x66   :  { %1195 = vmatprep.subr.bf16.mxu0 %v836_v3  ;;  %1236 = vmatprep.subr.bf16.mxu1 %v1028_v4  ;;  %v896_v3 = vunpack.c.l.s8.bf16 %v644_v57  ;;  %v1088_v4 = vunpack.c.l.s8.bf16 %v740_v58 }
  0x69   :  { %1196 = vmatpush1.bf16.msra.mxu0 %v835_v5  ;;  %1237 = vmatpush1.bf16.msra.mxu1 %v1027_v6  ;;  %v895_v5 = vunpack.c.l.s8.bf16 %v643_v63  ;;  %v1087_v6 = vunpack.c.l.s8.bf16 %v739_v0  ;;  %v101_v63 = vld [vmem:[#allocation10 + $0x40] ss:$8 sm:$0xf] }
  0x6a   :  { %1197 = vmatprep.subr.bf16.mxu0 %v824_v7  ;;  %1238 = vmatprep.subr.bf16.mxu1 %v1016_v8  ;;  %v4047_v7 = vld [vmem:[#allocation7 + $0x138] sm:$0xff] }
  0x6b   :  { %v4049_v8 = vld [vmem:[#allocation7 + $0x438] sm:$0xff] }
  0x6d   :  { %1198 = vmatpush1.bf16.msra.mxu0 %v823_v9  ;;  %1239 = vmatpush1.bf16.msra.mxu1 %v1015_v10  ;;  %v886_v9 = vunpack.c.h.s8.bf16 %v4047_v7  ;;  %v1078_v10 = vunpack.c.h.s8.bf16 %v4049_v8 }
  0x6e   :  { %1199 = vmatprep.subr.bf16.mxu0 %v812_v13  ;;  %1240 = vmatprep.subr.bf16.mxu1 %v1004_v14  ;;  %v97_v13 = vld [vmem:[#allocation10] ss:$8 sm:$0xf] }
  0x6f   :  { %v98_v14 = vld [vmem:[#allocation10] ss:$8 sm:$0xf0] }
  0x71   :  { %1200 = vmatpush1.bf16.msra.mxu0 %v811_v17  ;;  %1241 = vmatpush1.bf16.msra.mxu1 %v1003_v18  ;;  %v4053_v17 = vor.u32 %v98_v14, %v97_v13  ;;  %v4055_v18 = vsub.s32 0, %v386_v12 }
  0x72   :  { %1201 = vmatprep.subr.bf16.mxu0 %v800_v19  ;;  %1242 = vmatprep.subr.bf16.mxu1 %v992_v20  ;;  %v4057_v19 = vsub.s32 2, %v386_v12  ;;  %v4059_v20 = vor.u32 %v104_v16, %v103_v15 }
  0x73   :  { %v388_v23 = vrot.slane %v4053_v17, %v4055_v18  ;;  %v420_v11 = vrot.slane %v101_v63, %v4055_v18 }
  0x74   :  { %v396_v24 = vrot.slane %v4053_v17, %v4057_v19  ;;  %v490_v14 = vrot.slane %v4059_v20, %v4087_v52 }
  0x75   :  { %1202 = vmatpush1.bf16.msra.mxu0 %v799_v21  ;;  %1243 = vmatpush1.bf16.msra.mxu1 %v991_v22  ;;  %v4061_v21 = vsub.s32 1, %v386_v12  ;;  %v4063_v22 = vsub.s32 3, %v386_v12 }
  0x76   :  { %1203 = vmatprep.subr.bf16.mxu0 %v980_v25  ;;  %1244 = vmatprep.subr.bf16.mxu1 %v1172_v26  ;;  %v462_v25 = vrot.slane %v4059_v20, %v4055_v18  ;;  %v470_v26 = vrot.slane %v4059_v20, %v4057_v19 }
  0x77   :  { %v392_v27 = vrot.slane %v4053_v17, %v4061_v21  ;;  %v400_v28 = vrot.slane %v4053_v17, %v4063_v22 }
  0x79   :  { %1204 = vmatpush2.bf16.msra.mxu0 %v979_v29  ;;  %1245 = vmatpush2.bf16.msra.mxu1 %v1171_v30 }
  0x7a   :  { %1205 = vmatprep.subr.bf16.mxu0 %v968_v31  ;;  %1246 = vmatprep.subr.bf16.mxu1 %v1160_v32 }
  0x7d   :  { %1206 = vmatpush2.bf16.msra.mxu0 %v967_v33  ;;  %1247 = vmatpush2.bf16.msra.mxu1 %v1159_v34  ;;  %v466_v33 = vrot.slane %v4059_v20, %v4061_v21  ;;  %v474_v34 = vrot.slane %v4059_v20, %v4063_v22 }
  0x7e   :  { %1207 = vmatprep.subr.bf16.mxu0 %v956_v37  ;;  %1248 = vmatprep.subr.bf16.mxu1 %v1148_v38  ;;  %v4081_v37 = vsub.s32 4, %v386_v12 }
  0x81   :  { %1208 = vmatpush2.bf16.msra.mxu0 %v955_v41  ;;  %1249 = vmatpush2.bf16.msra.mxu1 %v1147_v42 }
  0x82   :  { %1209 = vmatprep.subr.bf16.mxu0 %v944_v43  ;;  %1250 = vmatprep.subr.bf16.mxu1 %v1136_v44  ;;  %v4083_v44 = vsub.s32 6, %v386_v12 }
  0x84   :  { %v412_v58 = vrot.slane %v4053_v17, %v4083_v44 }
  0x85   :  { %1210 = vmatpush2.bf16.msra.mxu0 %v943_v45  ;;  %1251 = vmatpush2.bf16.msra.mxu1 %v1135_v46  ;;  %v4085_v45 = vsub.s32 5, %v386_v12  ;;  %v428_v12 = vrot.slane %v101_v63, %v4057_v19 }
  0x86   :  { %1211 = vmatprep.subr.bf16.mxu0 %v932_v49  ;;  %1252 = vmatprep.subr.bf16.mxu1 %v1124_v50 }
  0x89   :  { %1212 = vmatpush2.bf16.msra.mxu0 %v931_v55  ;;  %1253 = vmatpush2.bf16.msra.mxu1 %v1123_v56  ;;  %v404_v55 = vrot.slane %v4053_v17, %v4081_v37 }
  0x8a   :  { %1213 = vmatprep.subr.bf16.mxu0 %v920_v53  ;;  %1254 = vmatprep.subr.bf16.mxu1 %v1112_v54 }
  0x8d   :  { %1214 = vmatpush2.bf16.msra.mxu0 %v919_v59  ;;  %1255 = vmatpush2.bf16.msra.mxu1 %v1111_v60  ;;  %v408_v59 = vrot.slane %v4053_v17, %v4085_v45 }
  0x8e   :  { %1215 = vmatprep.subr.bf16.mxu0 %v908_v61  ;;  %1256 = vmatprep.subr.bf16.mxu1 %v1100_v62  ;;  %v416_v62 = vrot.slane %v4053_v17, %v4087_v52 }
  0x91   :  { %1216 = vmatpush2.bf16.msra.mxu0 %v907_v1  ;;  %1257 = vmatpush2.bf16.msra.mxu1 %v1099_v2  ;;  %v478_v1 = vrot.slane %v4059_v20, %v4081_v37 }
  0x92   :  { %1217 = vmatprep.subr.bf16.mxu0 %v896_v3  ;;  %1258 = vmatprep.subr.bf16.mxu1 %v1088_v4  ;;  %v486_v3 = vrot.slane %v4059_v20, %v4083_v44 }
  0x95   :  { %1218 = vmatpush2.bf16.msra.mxu0 %v895_v5  ;;  %1259 = vmatpush2.bf16.msra.mxu1 %v1087_v6  ;;  %v107_v6 = vld [vmem:[#allocation10 + $0x43] ss:$8 sm:$0xf] }
  0x96   :  { %1269 = vmatprep.subr.bf16.mxu0 %v886_v9  ;;  %1310 = vmatprep.subr.bf16.mxu1 %v1078_v10  ;;  %v482_v10 = vrot.slane %v4059_v20, %v4085_v45 }
 0x108   :  { %v171_v29 = vpop.f32.mrf.mxu0  ;;  %v212_v30 = vpop.f32.mrf.mxu1 }
 0x109   :  { %v445_v31 = vmul.f32 %v388_v23, %v171_v29  ;;  %v447_v32 = vmul.f32 %v396_v24, %v212_v30  ;;  %v494_v23 = vrot.slane %v107_v6, %v4055_v18  ;;  %v424_v24 = vrot.slane %v101_v63, %v4061_v21 }
 0x10a   :  { %v173_v35 = vpop.f32.mrf.mxu0  ;;  %v214_v36 = vpop.f32.mrf.mxu1  ;;  %v502_v29 = vrot.slane %v107_v6, %v4057_v19 }
 0x10b   :  { %v519_v38 = vadd.f32 %v462_v25, %v445_v31  ;;  %v521_v39 = vadd.f32 %v470_v26, %v447_v32  ;;  %v446_v40 = vmul.f32 %v392_v27, %v173_v35  ;;  %v448_v41 = vmul.f32 %v400_v28, %v214_v36 }
 0x10c   :  { %v175_v42 = vpop.f32.mrf.mxu0  ;;  %v216_v43 = vpop.f32.mrf.mxu1  ;;  %v432_v25 = vrot.slane %v101_v63, %v4063_v22  ;;  %v506_v36 = vrot.slane %v107_v6, %v4063_v22 }
 0x10d   :  { %v3559_v46 = vmul.f32 -1.442695, %v519_v38  ;;  %v3561_v47 = vmul.f32 -1.442695, %v521_v39  ;;  %v520_v48 = vadd.f32 %v466_v33, %v446_v40  ;;  %v522_v49 = vadd.f32 %v474_v34, %v448_v41 }
 0x10e   :  { %v176_v50 = vpop.f32.mrf.mxu0  ;;  %v217_v51 = vpop.f32.mrf.mxu1  ;;  %v498_v33 = vrot.slane %v107_v6, %v4061_v21 }
 0x10f   :  { %3703 = vpow2.f32 %v3559_v46  ;;  %v3560_v53 = vmul.f32 -1.442695, %v520_v48  ;;  %v3562_v54 = vmul.f32 -1.442695, %v522_v49 }
 0x110   :  { %3705 = vpow2.f32 %v3561_v47  ;;  %v253_v56 = vpop.f32.mrf.mxu0  ;;  %v294_v57 = vpop.f32.mrf.mxu1 }
 0x111   :  { %3707 = vpow2.f32 %v3560_v53  ;;  %v449_v0 = vmul.f32 %v404_v55, %v253_v56  ;;  %v451_v2 = vmul.f32 %v412_v58, %v294_v57 }
 0x112   :  { %3709 = vpow2.f32 %v3562_v54  ;;  %v255_v60 = vpop.f32.mrf.mxu0  ;;  %v296_v61 = vpop.f32.mrf.mxu1 }
 0x113   :  { %v450_v9 = vmul.f32 %v408_v59, %v255_v60  ;;  %v452_v13 = vmul.f32 %v416_v62, %v296_v61  ;;  %v523_v17 = vadd.f32 %v478_v1, %v449_v0  ;;  %v525_v26 = vadd.f32 %v486_v3, %v451_v2 }
 0x114   :  { %v257_v4 = vpop.f32.mrf.mxu0  ;;  %v298_v5 = vpop.f32.mrf.mxu1 }
 0x115   :  { %v524_v30 = vadd.f32 %v482_v10, %v450_v9  ;;  %v526_v20 = vadd.f32 %v490_v14, %v452_v13  ;;  %3711 = vtanh.f32 %v523_v17 }
 0x116   :  { %v258_v15 = vpop.f32.mrf.mxu0  ;;  %v299_v16 = vpop.f32.mrf.mxu1  ;;  %3713 = vtanh.f32 %v525_v26 }
 0x117   :  { %3715 = vtanh.f32 %v524_v30 }
 0x118   :  { %v335_v27 = vpop.f32.mrf.mxu0  ;;  %v376_v28 = vpop.f32.mrf.mxu1  ;;  %3717 = vtanh.f32 %v526_v20  ;;  %v633_v20 = vld [vmem:[#allocation7 + $0x130] sm:$0xff] }
 0x119   :  { %v453_v31 = vmul.f32 %v420_v11, %v335_v27  ;;  %v455_v32 = vmul.f32 %v428_v12, %v376_v28 }
 0x11a   :  { %v337_v34 = vpop.f32.mrf.mxu0  ;;  %v378_v35 = vpop.f32.mrf.mxu1 }
 0x11b   :  { %v527_v38 = vadd.f32 %v494_v23, %v453_v31  ;;  %v454_v39 = vmul.f32 %v424_v24, %v337_v34  ;;  %v456_v40 = vmul.f32 %v432_v25, %v378_v35  ;;  %v529_v42 = vadd.f32 %v502_v29, %v455_v32 }
 0x11c   :  { %v3704_v41 = vpop.eup %3703  ;;  %v339_v43 = vpop.f32.mrf.mxu0 }
 0x11d   :  { %v380_v46 = vpop.f32.mrf.mxu1  ;;  %v3706_v47 = vpop.eup %3705  ;;  %v543_v48 = vadd.f32 1.0, %v3704_v41  ;;  %v528_v49 = vadd.f32 %v498_v33, %v454_v39  ;;  %v530_v53 = vadd.f32 %v506_v36, %v456_v40  ;;  %v3563_v58 = vmul.f32 -1.442695, %v527_v38  ;;  %v729_v38 = vld [vmem:[#allocation7 + $0x430] sm:$0xff] }
 0x11e   :  { %v3708_v50 = vpop.eup %3707  ;;  %v545_v51 = vadd.f32 1.0, %v3706_v47  ;;  %v340_v54 = vpop.f32.mrf.mxu0  ;;  %v3565_v60 = vmul.f32 -1.442695, %v529_v42  ;;  %v885_v41 = vunpack.c.h.s8.bf16 %v633_v20  ;;  %v1077_v46 = vunpack.c.h.s8.bf16 %v729_v38 }
 0x11f   :  { %v381_v55 = vpop.f32.mrf.mxu1  ;;  %v3710_v56 = vpop.eup %3709  ;;  %3719 = vrcp.f32 %v543_v48  ;;  %v544_v57 = vadd.f32 1.0, %v3708_v50  ;;  %v3564_v61 = vmul.f32 -1.442695, %v528_v49  ;;  %v3566_v62 = vmul.f32 -1.442695, %v530_v53  ;;  %v622_v49 = vld [vmem:[#allocation7 + $0xd8] sm:$0xff] }
 0x120   :  { %3721 = vrcp.f32 %v545_v51  ;;  %v546_v59 = vadd.f32 1.0, %v3710_v56  ;;  %v874_v48 = vunpack.c.l.s8.bf16 %v4047_v7  ;;  %v1066_v50 = vunpack.c.l.s8.bf16 %v4049_v8  ;;  %v718_v51 = vld [vmem:[#allocation7 + $0x3d8] sm:$0xff]  ;;  %v621_v56 = vld [vmem:[#allocation7 + $0xd0] sm:$0xff] }
 0x121   :  { %3723 = vrcp.f32 %v544_v57  ;;  %v873_v53 = vunpack.c.l.s8.bf16 %v633_v20  ;;  %v1065_v54 = vunpack.c.l.s8.bf16 %v729_v38  ;;  %v862_v55 = vunpack.c.h.s8.bf16 %v622_v49  ;;  %v717_v57 = vld [vmem:[#allocation7 + $0x3d0] sm:$0xff] }
 0x122   :  { %3725 = vrcp.f32 %v546_v59  ;;  %v3712_v63 = vpop.eup %3711  ;;  %v1054_v7 = vunpack.c.h.s8.bf16 %v718_v51  ;;  %v1053_v8 = vunpack.c.h.s8.bf16 %v717_v57  ;;  %v850_v59 = vunpack.c.l.s8.bf16 %v622_v49 }
 0x123   :  { %3727 = vpow2.f32 %v3563_v58  ;;  %v3714_v0 = vpop.eup %3713  ;;  %v861_v58 = vunpack.c.h.s8.bf16 %v621_v56 }
 0x124   :  { %3729 = vpow2.f32 %v3565_v60  ;;  %v3716_v1 = vpop.eup %3715  ;;  %v1042_v60 = vunpack.c.l.s8.bf16 %v718_v51  ;;  %v669_v51 = vld [vmem:[#allocation7 + $0x250] sm:$0xff] }
 0x125   :  { %3731 = vpow2.f32 %v3564_v61  ;;  %v3718_v2 = vpop.eup %3717  ;;  %v610_v61 = vld [vmem:[#allocation7 + $0x78] sm:$0xff] }
 0x126   :  { %3733 = vpow2.f32 %v3566_v62  ;;  %v706_v62 = vld [vmem:[#allocation7 + $0x378] sm:$0xff] }
 0x12c   :  { %v3720_v3 = vpop.eup %3719 }
 0x12d   :  { %v3722_v4 = vpop.eup %3721  ;;  %v583_v5 = vmul.f32 %v3720_v3, %v3712_v63  ;;  %v849_v63 = vunpack.c.l.s8.bf16 %v621_v56  ;;  %v1030_v3 = vunpack.c.h.s8.bf16 %v706_v62 }
 0x12e   :  { %v3724_v6 = vpop.eup %3723  ;;  %v585_v9 = vmul.f32 %v3722_v4, %v3714_v0  ;;  %v1041_v0 = vunpack.c.l.s8.bf16 %v717_v57  ;;  %v705_v4 = vld [vmem:[#allocation7 + $0x370] sm:$0xff] }
 0x12f   :  { %v3726_v10 = vpop.eup %3725  ;;  %3735 = vtanh.f32 %v583_v5  ;;  %v584_v11 = vmul.f32 %v3724_v6, %v3716_v1  ;;  %v838_v1 = vunpack.c.h.s8.bf16 %v610_v61  ;;  %v1029_v6 = vunpack.c.h.s8.bf16 %v705_v4 }
 0x130   :  { %v3728_v12 = vpop.eup %3727  ;;  %3737 = vtanh.f32 %v585_v9  ;;  %v586_v13 = vmul.f32 %v3726_v10, %v3718_v2  ;;  %v609_v2 = vld [vmem:[#allocation7 + $0x70] sm:$0xff]  ;;  %v826_v9 = vunpack.c.l.s8.bf16 %v610_v61  ;;  %v1018_v10 = vunpack.c.l.s8.bf16 %v706_v62 }
 0x131   :  { %v3730_v14 = vpop.eup %3729  ;;  %3739 = vtanh.f32 %v584_v11  ;;  %v571_v15 = vadd.f32 1.0, %v3728_v12  ;;  %v837_v5 = vunpack.c.h.s8.bf16 %v609_v2  ;;  %v598_v11 = vld [vmem:[#allocation7 + $0x18] sm:$0xff]  ;;  %v657_v62 = vld [vmem:[#allocation7 + $0x1f0] sm:$0xff] }
 0x132   :  { %v3732_v16 = vpop.eup %3731  ;;  %3741 = vtanh.f32 %v586_v13  ;;  %v573_v17 = vadd.f32 1.0, %v3730_v14  ;;  %v694_v12 = vld [vmem:[#allocation7 + $0x318] sm:$0xff]  ;;  %v825_v13 = vunpack.c.l.s8.bf16 %v609_v2  ;;  %v1017_v14 = vunpack.c.l.s8.bf16 %v705_v4 }
 0x133   :  { %v3734_v23 = vpop.eup %3733  ;;  %3743 = vrcp.f32 %v571_v15  ;;  %v572_v24 = vadd.f32 1.0, %v3732_v16  ;;  %v814_v15 = vunpack.c.h.s8.bf16 %v598_v11  ;;  %v597_v16 = vld [vmem:[#allocation7 + $0x10] sm:$0xff] }
 0x134   :  { %3745 = vrcp.f32 %v573_v17  ;;  %v574_v25 = vadd.f32 1.0, %v3734_v23  ;;  %v1006_v17 = vunpack.c.h.s8.bf16 %v694_v12  ;;  %v693_v23 = vld [vmem:[#allocation7 + $0x310] sm:$0xff] }
 0x135   :  { %3747 = vrcp.f32 %v572_v24  ;;  %v813_v24 = vunpack.c.h.s8.bf16 %v597_v16 }
 0x136   :  { %3749 = vrcp.f32 %v574_v25  ;;  %v1005_v25 = vunpack.c.h.s8.bf16 %v693_v23 }
 0x13c   :  { %v3736_v26 = vpop.eup %3735 }
 0x13d   :  { %v3738_v27 = vpop.eup %3737 }
 0x13e   :  { %v3740_v28 = vpop.eup %3739 }
 0x13f   :  { %v3742_v29 = vpop.eup %3741 }
 0x140   :  { %v3744_v30 = vpop.eup %3743 }
 0x141   :  { %v3746_v31 = vpop.eup %3745  ;;  %v591_v33 = vmul.f32 %v3744_v30, %v3736_v26  ;;  %v802_v26 = vunpack.c.l.s8.bf16 %v598_v11  ;;  %v801_v30 = vunpack.c.l.s8.bf16 %v597_v16 }
 0x142   :  { %v3748_v32 = vpop.eup %3747  ;;  %v593_v36 = vmul.f32 %v3746_v31, %v3738_v27  ;;  %v994_v27 = vunpack.c.l.s8.bf16 %v694_v12  ;;  %v993_v31 = vunpack.c.l.s8.bf16 %v693_v23  ;;  %v645_v12 = vld [vmem:[#allocation7 + $0x190] sm:$0xff] }
 0x143   :  { %v3750_v34 = vpop.eup %3749  ;;  %v592_v35 = vmul.f32 %v3748_v32, %v3740_v28  ;;  %v4117_v43 = vpack.c.bf16 %v591_v33, %v591_v33  ;;  %v682_v28 = vld [vmem:[#allocation7 + $0x2b8] sm:$0xff]  ;;  %v681_v33 = vld [vmem:[#allocation7 + $0x2b0] sm:$0xff] }
 0x144   :  { %v594_v39 = vmul.f32 %v3750_v34, %v3742_v29  ;;  %v4120_v47 = vpack.c.bf16 %v593_v36, %v593_v36  ;;  %v778_v29 = vld [vmem:[#allocation7 + $0x5b8] sm:$0xff]  ;;  %v982_v32 = vunpack.c.h.s8.bf16 %v682_v28  ;;  %v777_v34 = vld [vmem:[#allocation7 + $0x5b0] sm:$0xff]  ;;  %v970_v38 = vunpack.c.l.s8.bf16 %v682_v28 }
 0x145   :  { %v4113_v40 = vpack.c.bf16 %v592_v35, %v592_v35  ;;  %v1174_v20 = vunpack.c.h.s8.bf16 %v778_v29  ;;  %v981_v35 = vunpack.c.h.s8.bf16 %v681_v33  ;;  %v1173_v36 = vunpack.c.h.s8.bf16 %v777_v34 }
 0x146   :  { %v4115_v42 = vpack.c.bf16 %v594_v39, %v594_v39  ;;  %v1162_v39 = vunpack.c.l.s8.bf16 %v778_v29  ;;  %v1161_v49 = vunpack.c.l.s8.bf16 %v777_v34  ;;  %v635_v29 = vld [vmem:[#allocation7 + $0x140] sm:$0xff]  ;;  %v624_v34 = vld [vmem:[#allocation7 + $0xe8] sm:$0xff] }
 0x147   :  { %1219 = vmatprep.mubr.bf16.mxu0 %v4113_v40 }
 0x148   :  { %1260 = vmatprep.mubr.bf16.mxu1 %v4115_v42  ;;  %1220 = vmatmul.mubr.bf16.vlgmr.msra.gmra.mxu0 %v4117_v43 }
 0x149   :  { %1261 = vmatmul.mubr.bf16.vlgmr.msra.gmra.mxu1 %v4120_v47  ;;  %1270 = vmatpush1.bf16.msra.mxu0 %v885_v41  ;;  %v670_v41 = vld [vmem:[#allocation7 + $0x258] sm:$0xff] }
 0x14a   :  { %1311 = vmatpush1.bf16.msra.mxu1 %v1077_v46  ;;  %1301 = vmatprep.mubr.bf16.mxu0 %v4113_v40  ;;  %v766_v46 = vld [vmem:[#allocation7 + $0x558] sm:$0xff] }
 0x14b   :  { %1342 = vmatprep.mubr.bf16.mxu1 %v4115_v42  ;;  %1271 = vmatprep.subr.bf16.mxu0 %v874_v48  ;;  %v969_v48 = vunpack.c.l.s8.bf16 %v681_v33  ;;  %v1138_v57 = vunpack.c.l.s8.bf16 %v766_v46 }
 0x14c   :  { %1312 = vmatprep.subr.bf16.mxu1 %v1066_v50  ;;  %v958_v50 = vunpack.c.h.s8.bf16 %v670_v41 }
 0x14d   :  { %1272 = vmatpush1.bf16.msra.mxu0 %v873_v53  ;;  %v1150_v53 = vunpack.c.h.s8.bf16 %v766_v46  ;;  %v623_v46 = vld [vmem:[#allocation7 + $0xe0] sm:$0xff] }
 0x14e   :  { %1313 = vmatpush1.bf16.msra.mxu1 %v1065_v54  ;;  %1273 = vmatprep.subr.bf16.mxu0 %v862_v55  ;;  %v765_v54 = vld [vmem:[#allocation7 + $0x550] sm:$0xff]  ;;  %v957_v55 = vunpack.c.h.s8.bf16 %v669_v51 }
 0x14f   :  { %1314 = vmatprep.subr.bf16.mxu1 %v1054_v7  ;;  %v1149_v56 = vunpack.c.h.s8.bf16 %v765_v54  ;;  %v946_v7 = vunpack.c.l.s8.bf16 %v670_v41  ;;  %v864_v41 = vunpack.c.h.s8.bf16 %v624_v34 }
 0x151   :  { %1274 = vmatpush1.bf16.msra.mxu0 %v861_v58  ;;  %v658_v58 = vld [vmem:[#allocation7 + $0x1f8] sm:$0xff] }
 0x152   :  { %1315 = vmatpush1.bf16.msra.mxu1 %v1053_v8  ;;  %1275 = vmatprep.subr.bf16.mxu0 %v850_v59  ;;  %v754_v8 = vld [vmem:[#allocation7 + $0x4f8] sm:$0xff]  ;;  %v945_v59 = vunpack.c.l.s8.bf16 %v669_v51  ;;  %v934_v61 = vunpack.c.h.s8.bf16 %v658_v58 }
 0x153   :  { %1316 = vmatprep.subr.bf16.mxu1 %v1042_v60  ;;  %v1137_v60 = vunpack.c.l.s8.bf16 %v765_v54  ;;  %v1114_v4 = vunpack.c.l.s8.bf16 %v754_v8 }
 0x155   :  { %1276 = vmatpush1.bf16.msra.mxu0 %v849_v63  ;;  %v1126_v63 = vunpack.c.h.s8.bf16 %v754_v8  ;;  %v611_v8 = vld [vmem:[#allocation7 + $0x80] sm:$0xff] }
 0x156   :  { %1317 = vmatpush1.bf16.msra.mxu1 %v1041_v0  ;;  %1277 = vmatprep.subr.bf16.mxu0 %v838_v1  ;;  %v753_v0 = vld [vmem:[#allocation7 + $0x4f0] sm:$0xff]  ;;  %v933_v1 = vunpack.c.h.s8.bf16 %v657_v62 }
 0x157   :  { %1318 = vmatprep.subr.bf16.mxu1 %v1030_v3  ;;  %v1125_v2 = vunpack.c.h.s8.bf16 %v753_v0  ;;  %v922_v3 = vunpack.c.l.s8.bf16 %v658_v58 }
 0x159   :  { %1278 = vmatpush1.bf16.msra.mxu0 %v837_v5  ;;  %v646_v5 = vld [vmem:[#allocation7 + $0x198] sm:$0xff] }
 0x15a   :  { %1319 = vmatpush1.bf16.msra.mxu1 %v1029_v6  ;;  %1279 = vmatprep.subr.bf16.mxu0 %v826_v9  ;;  %v742_v6 = vld [vmem:[#allocation7 + $0x498] sm:$0xff]  ;;  %v921_v9 = vunpack.c.l.s8.bf16 %v657_v62  ;;  %v910_v11 = vunpack.c.h.s8.bf16 %v646_v5 }
 0x15b   :  { %1320 = vmatprep.subr.bf16.mxu1 %v1018_v10  ;;  %v1113_v10 = vunpack.c.l.s8.bf16 %v753_v0  ;;  %v1090_v23 = vunpack.c.l.s8.bf16 %v742_v6 }
 0x15d   :  { %1280 = vmatpush1.bf16.msra.mxu0 %v825_v13  ;;  %v1102_v13 = vunpack.c.h.s8.bf16 %v742_v6  ;;  %v599_v6 = vld [vmem:[#allocation7 + $0x20] sm:$0xff] }
 0x15e   :  { %1321 = vmatpush1.bf16.msra.mxu1 %v1017_v14  ;;  %1281 = vmatprep.subr.bf16.mxu0 %v814_v15  ;;  %v741_v14 = vld [vmem:[#allocation7 + $0x490] sm:$0xff]  ;;  %v909_v15 = vunpack.c.h.s8.bf16 %v645_v12 }
 0x15f   :  { %1322 = vmatprep.subr.bf16.mxu1 %v1006_v17  ;;  %v1101_v16 = vunpack.c.h.s8.bf16 %v741_v14  ;;  %v898_v17 = vunpack.c.l.s8.bf16 %v646_v5 }
 0x161   :  { %1282 = vmatpush1.bf16.msra.mxu0 %v813_v24  ;;  %v636_v24 = vld [vmem:[#allocation7 + $0x148] sm:$0xff] }
 0x162   :  { %1323 = vmatpush1.bf16.msra.mxu1 %v1005_v25  ;;  %1283 = vmatprep.subr.bf16.mxu0 %v802_v26  ;;  %v732_v25 = vld [vmem:[#allocation7 + $0x448] sm:$0xff]  ;;  %v897_v26 = vunpack.c.l.s8.bf16 %v645_v12  ;;  %v888_v28 = vunpack.c.h.s8.bf16 %v636_v24 }
 0x163   :  { %1324 = vmatprep.subr.bf16.mxu1 %v994_v27  ;;  %v1089_v27 = vunpack.c.l.s8.bf16 %v741_v14 }
 0x165   :  { %1284 = vmatpush1.bf16.msra.mxu0 %v801_v30  ;;  %v1080_v30 = vunpack.c.h.s8.bf16 %v732_v25 }
 0x166   :  { %1325 = vmatpush1.bf16.msra.mxu1 %v993_v31  ;;  %1285 = vmatprep.subr.bf16.mxu0 %v982_v32  ;;  %v731_v31 = vld [vmem:[#allocation7 + $0x440] sm:$0xff]  ;;  %v887_v32 = vunpack.c.h.s8.bf16 %v635_v29 }
 0x167   :  { %1326 = vmatprep.subr.bf16.mxu1 %v1174_v20  ;;  %v1079_v33 = vunpack.c.h.s8.bf16 %v731_v31  ;;  %v876_v20 = vunpack.c.l.s8.bf16 %v636_v24 }
 0x169   :  { %1286 = vmatpush2.bf16.msra.mxu0 %v981_v35  ;;  %v1068_v35 = vunpack.c.l.s8.bf16 %v732_v25  ;;  %v683_v25 = vld [vmem:[#allocation7 + $0x2c0] sm:$0xff] }
 0x16a   :  { %1327 = vmatpush2.bf16.msra.mxu1 %v1173_v36  ;;  %1287 = vmatprep.subr.bf16.mxu0 %v970_v38  ;;  %v720_v36 = vld [vmem:[#allocation7 + $0x3e8] sm:$0xff]  ;;  %v875_v38 = vunpack.c.l.s8.bf16 %v635_v29 }
 0x16b   :  { %1328 = vmatprep.subr.bf16.mxu1 %v1162_v39  ;;  %v1067_v39 = vunpack.c.l.s8.bf16 %v731_v31  ;;  %v1044_v54 = vunpack.c.l.s8.bf16 %v720_v36 }
 0x16d   :  { %1288 = vmatpush2.bf16.msra.mxu0 %v969_v48  ;;  %v1056_v48 = vunpack.c.h.s8.bf16 %v720_v36  ;;  %v671_v36 = vld [vmem:[#allocation7 + $0x260] sm:$0xff] }
 0x16e   :  { %1329 = vmatpush2.bf16.msra.mxu1 %v1161_v49  ;;  %1289 = vmatprep.subr.bf16.mxu0 %v958_v50  ;;  %v719_v49 = vld [vmem:[#allocation7 + $0x3e0] sm:$0xff]  ;;  %v863_v50 = vunpack.c.h.s8.bf16 %v623_v46 }
 0x16f   :  { %1330 = vmatprep.subr.bf16.mxu1 %v1150_v53  ;;  %v1055_v51 = vunpack.c.h.s8.bf16 %v719_v49  ;;  %v852_v53 = vunpack.c.l.s8.bf16 %v624_v34 }
 0x171   :  { %1290 = vmatpush2.bf16.msra.mxu0 %v957_v55  ;;  %v612_v55 = vld [vmem:[#allocation7 + $0x88] sm:$0xff] }
 0x172   :  { %1331 = vmatpush2.bf16.msra.mxu1 %v1149_v56  ;;  %1291 = vmatprep.subr.bf16.mxu0 %v946_v7  ;;  %v708_v56 = vld [vmem:[#allocation7 + $0x388] sm:$0xff]  ;;  %v851_v7 = vunpack.c.l.s8.bf16 %v623_v46  ;;  %v840_v58 = vunpack.c.h.s8.bf16 %v612_v55 }
 0x173   :  { %1332 = vmatprep.subr.bf16.mxu1 %v1138_v57  ;;  %v1043_v57 = vunpack.c.l.s8.bf16 %v719_v49  ;;  %v1020_v0 = vunpack.c.l.s8.bf16 %v708_v56 }
 0x175   :  { %1292 = vmatpush2.bf16.msra.mxu0 %v945_v59  ;;  %v1032_v59 = vunpack.c.h.s8.bf16 %v708_v56  ;;  %v659_v56 = vld [vmem:[#allocation7 + $0x200] sm:$0xff] }
 0x176   :  { %1333 = vmatpush2.bf16.msra.mxu1 %v1137_v60  ;;  %1293 = vmatprep.subr.bf16.mxu0 %v934_v61  ;;  %v707_v60 = vld [vmem:[#allocation7 + $0x380] sm:$0xff]  ;;  %v839_v61 = vunpack.c.h.s8.bf16 %v611_v8 }
 0x177   :  { %1334 = vmatprep.subr.bf16.mxu1 %v1126_v63  ;;  %v1031_v62 = vunpack.c.h.s8.bf16 %v707_v60  ;;  %v828_v63 = vunpack.c.l.s8.bf16 %v612_v55 }
 0x179   :  { %1294 = vmatpush2.bf16.msra.mxu0 %v933_v1  ;;  %v600_v1 = vld [vmem:[#allocation7 + $0x28] sm:$0xff] }
 0x17a   :  { %1335 = vmatpush2.bf16.msra.mxu1 %v1125_v2  ;;  %1295 = vmatprep.subr.bf16.mxu0 %v922_v3  ;;  %v696_v2 = vld [vmem:[#allocation7 + $0x328] sm:$0xff]  ;;  %v827_v3 = vunpack.c.l.s8.bf16 %v611_v8  ;;  %v816_v5 = vunpack.c.h.s8.bf16 %v600_v1 }
 0x17b   :  { %1336 = vmatprep.subr.bf16.mxu1 %v1114_v4  ;;  %v1019_v4 = vunpack.c.l.s8.bf16 %v707_v60  ;;  %v996_v14 = vunpack.c.l.s8.bf16 %v696_v2 }
 0x17d   :  { %1296 = vmatpush2.bf16.msra.mxu0 %v921_v9  ;;  %v1008_v9 = vunpack.c.h.s8.bf16 %v696_v2  ;;  %v647_v2 = vld [vmem:[#allocation7 + $0x1a0] sm:$0xff] }
 0x17e   :  { %1337 = vmatpush2.bf16.msra.mxu1 %v1113_v10  ;;  %1297 = vmatprep.subr.bf16.mxu0 %v910_v11  ;;  %v695_v10 = vld [vmem:[#allocation7 + $0x320] sm:$0xff]  ;;  %v815_v11 = vunpack.c.h.s8.bf16 %v599_v6 }
 0x17f   :  { %1338 = vmatprep.subr.bf16.mxu1 %v1102_v13  ;;  %v1007_v12 = vunpack.c.h.s8.bf16 %v695_v10  ;;  %v804_v13 = vunpack.c.l.s8.bf16 %v600_v1 }
 0x181   :  { %1298 = vmatpush2.bf16.msra.mxu0 %v909_v15  ;;  %v684_v15 = vld [vmem:[#allocation7 + $0x2c8] sm:$0xff] }
 0x182   :  { %1339 = vmatpush2.bf16.msra.mxu1 %v1101_v16  ;;  %1299 = vmatprep.subr.bf16.mxu0 %v898_v17  ;;  %v780_v16 = vld [vmem:[#allocation7 + $0x5c8] sm:$0xff]  ;;  %v803_v17 = vunpack.c.l.s8.bf16 %v599_v6  ;;  %v984_v24 = vunpack.c.h.s8.bf16 %v684_v15 }
 0x183   :  { %1340 = vmatprep.subr.bf16.mxu1 %v1090_v23  ;;  %v995_v23 = vunpack.c.l.s8.bf16 %v695_v10  ;;  %v1164_v31 = vunpack.c.l.s8.bf16 %v780_v16 }
 0x185   :  { %1300 = vmatpush2.bf16.msra.mxu0 %v897_v26  ;;  %v1176_v26 = vunpack.c.h.s8.bf16 %v780_v16  ;;  %v637_v16 = vld [vmem:[#allocation7 + $0x150] sm:$0xff] }
 0x186   :  { %1341 = vmatpush2.bf16.msra.mxu1 %v1089_v27  ;;  %1351 = vmatprep.subr.bf16.mxu0 %v888_v28  ;;  %v779_v27 = vld [vmem:[#allocation7 + $0x5c0] sm:$0xff]  ;;  %v983_v28 = vunpack.c.h.s8.bf16 %v683_v25 }
 0x187   :  { %1392 = vmatprep.subr.bf16.mxu1 %v1080_v30  ;;  %v1175_v29 = vunpack.c.h.s8.bf16 %v779_v27  ;;  %v972_v30 = vunpack.c.l.s8.bf16 %v684_v15  ;;  %v1163_v34 = vunpack.c.l.s8.bf16 %v779_v27  ;;  %v626_v27 = vld [vmem:[#allocation7 + $0xf8] sm:$0xff] }
 0x188   :  { %1302 = vmatmul.mubr.bf16.vlgmr.msra.gmra.mxu0 %v4117_v43 }
 0x189   :  { %1343 = vmatmul.mubr.bf16.vlgmr.msra.gmra.mxu1 %v4120_v47  ;;  %1352 = vmatpush1.bf16.msra.mxu0 %v887_v32  ;;  %v672_v32 = vld [vmem:[#allocation7 + $0x268] sm:$0xff] }
 0x18a   :  { %1383 = vmatprep.mubr.bf16.mxu0 %v4113_v40  ;;  %1393 = vmatpush1.bf16.msra.mxu1 %v1079_v33  ;;  %v768_v33 = vld [vmem:[#allocation7 + $0x568] sm:$0xff] }
 0x18b   :  { %1424 = vmatprep.mubr.bf16.mxu1 %v4115_v42  ;;  %1353 = vmatprep.subr.bf16.mxu0 %v876_v20  ;;  %v971_v20 = vunpack.c.l.s8.bf16 %v683_v25  ;;  %v1140_v49 = vunpack.c.l.s8.bf16 %v768_v33 }
 0x18c   :  { %1394 = vmatprep.subr.bf16.mxu1 %v1068_v35  ;;  %v960_v35 = vunpack.c.h.s8.bf16 %v672_v32 }
 0x18d   :  { %1354 = vmatpush1.bf16.msra.mxu0 %v875_v38  ;;  %v1152_v38 = vunpack.c.h.s8.bf16 %v768_v33  ;;  %v625_v33 = vld [vmem:[#allocation7 + $0xf0] sm:$0xff] }
 0x18e   :  { %1395 = vmatpush1.bf16.msra.mxu1 %v1067_v39  ;;  %1355 = vmatprep.subr.bf16.mxu0 %v864_v41  ;;  %v767_v39 = vld [vmem:[#allocation7 + $0x560] sm:$0xff]  ;;  %v959_v41 = vunpack.c.h.s8.bf16 %v671_v36 }
 0x18f   :  { %1396 = vmatprep.subr.bf16.mxu1 %v1056_v48  ;;  %v1151_v46 = vunpack.c.h.s8.bf16 %v767_v39  ;;  %v948_v48 = vunpack.c.l.s8.bf16 %v672_v32  ;;  %v866_v32 = vunpack.c.h.s8.bf16 %v626_v27 }
 0x191   :  { %1356 = vmatpush1.bf16.msra.mxu0 %v863_v50  ;;  %v660_v50 = vld [vmem:[#allocation7 + $0x208] sm:$0xff] }
 0x192   :  { %1397 = vmatpush1.bf16.msra.mxu1 %v1055_v51  ;;  %1357 = vmatprep.subr.bf16.mxu0 %v852_v53  ;;  %v756_v51 = vld [vmem:[#allocation7 + $0x508] sm:$0xff]  ;;  %v947_v53 = vunpack.c.l.s8.bf16 %v671_v36  ;;  %v936_v55 = vunpack.c.h.s8.bf16 %v660_v50 }
 0x193   :  { %1398 = vmatprep.subr.bf16.mxu1 %v1044_v54  ;;  %v1139_v54 = vunpack.c.l.s8.bf16 %v767_v39  ;;  %v1116_v60 = vunpack.c.l.s8.bf16 %v756_v51 }
 0x195   :  { %1358 = vmatpush1.bf16.msra.mxu0 %v851_v7  ;;  %v1128_v7 = vunpack.c.h.s8.bf16 %v756_v51  ;;  %v613_v51 = vld [vmem:[#allocation7 + $0x90] sm:$0xff] }
 0x196   :  { %1399 = vmatpush1.bf16.msra.mxu1 %v1043_v57  ;;  %1359 = vmatprep.subr.bf16.mxu0 %v840_v58  ;;  %v755_v57 = vld [vmem:[#allocation7 + $0x500] sm:$0xff]  ;;  %v935_v58 = vunpack.c.h.s8.bf16 %v659_v56 }
 0x197   :  { %1400 = vmatprep.subr.bf16.mxu1 %v1032_v59  ;;  %v1127_v8 = vunpack.c.h.s8.bf16 %v755_v57  ;;  %v924_v59 = vunpack.c.l.s8.bf16 %v660_v50 }
 0x199   :  { %1360 = vmatpush1.bf16.msra.mxu0 %v839_v61  ;;  %v648_v61 = vld [vmem:[#allocation7 + $0x1a8] sm:$0xff] }
 0x19a   :  { %1401 = vmatpush1.bf16.msra.mxu1 %v1031_v62  ;;  %1361 = vmatprep.subr.bf16.mxu0 %v828_v63  ;;  %v744_v62 = vld [vmem:[#allocation7 + $0x4a8] sm:$0xff]  ;;  %v923_v63 = vunpack.c.l.s8.bf16 %v659_v56  ;;  %v912_v1 = vunpack.c.h.s8.bf16 %v648_v61 }
 0x19b   :  { %1402 = vmatprep.subr.bf16.mxu1 %v1020_v0  ;;  %v1115_v0 = vunpack.c.l.s8.bf16 %v755_v57  ;;  %v1092_v10 = vunpack.c.l.s8.bf16 %v744_v62 }
 0x19d   :  { %1362 = vmatpush1.bf16.msra.mxu0 %v827_v3  ;;  %v1104_v3 = vunpack.c.h.s8.bf16 %v744_v62  ;;  %v601_v62 = vld [vmem:[#allocation7 + $0x30] sm:$0xff] }
 0x19e   :  { %1403 = vmatpush1.bf16.msra.mxu1 %v1019_v4  ;;  %1363 = vmatprep.subr.bf16.mxu0 %v816_v5  ;;  %v743_v4 = vld [vmem:[#allocation7 + $0x4a0] sm:$0xff]  ;;  %v911_v5 = vunpack.c.h.s8.bf16 %v647_v2 }
 0x19f   :  { %1404 = vmatprep.subr.bf16.mxu1 %v1008_v9  ;;  %v1103_v6 = vunpack.c.h.s8.bf16 %v743_v4  ;;  %v900_v9 = vunpack.c.l.s8.bf16 %v648_v61 }
 0x1a1   :  { %1364 = vmatpush1.bf16.msra.mxu0 %v815_v11  ;;  %v638_v11 = vld [vmem:[#allocation7 + $0x158] sm:$0xff] }
 0x1a2   :  { %1405 = vmatpush1.bf16.msra.mxu1 %v1007_v12  ;;  %1365 = vmatprep.subr.bf16.mxu0 %v804_v13  ;;  %v734_v12 = vld [vmem:[#allocation7 + $0x458] sm:$0xff]  ;;  %v899_v13 = vunpack.c.l.s8.bf16 %v647_v2  ;;  %v890_v15 = vunpack.c.h.s8.bf16 %v638_v11 }
 0x1a3   :  { %1406 = vmatprep.subr.bf16.mxu1 %v996_v14  ;;  %v1091_v14 = vunpack.c.l.s8.bf16 %v743_v4 }
 0x1a5   :  { %1366 = vmatpush1.bf16.msra.mxu0 %v803_v17  ;;  %v1082_v17 = vunpack.c.h.s8.bf16 %v734_v12 }
 0x1a6   :  { %1407 = vmatpush1.bf16.msra.mxu1 %v995_v23  ;;  %1367 = vmatprep.subr.bf16.mxu0 %v984_v24  ;;  %v733_v23 = vld [vmem:[#allocation7 + $0x450] sm:$0xff]  ;;  %v889_v24 = vunpack.c.h.s8.bf16 %v637_v16 }
 0x1a7   :  { %1408 = vmatprep.subr.bf16.mxu1 %v1176_v26  ;;  %v1081_v25 = vunpack.c.h.s8.bf16 %v733_v23  ;;  %v878_v26 = vunpack.c.l.s8.bf16 %v638_v11 }
 0x1a9   :  { %1368 = vmatpush2.bf16.msra.mxu0 %v983_v28  ;;  %v1070_v28 = vunpack.c.l.s8.bf16 %v734_v12  ;;  %v685_v12 = vld [vmem:[#allocation7 + $0x2d0] sm:$0xff] }
 0x1aa   :  { %1409 = vmatpush2.bf16.msra.mxu1 %v1175_v29  ;;  %1369 = vmatprep.subr.bf16.mxu0 %v972_v30  ;;  %v722_v29 = vld [vmem:[#allocation7 + $0x3f8] sm:$0xff]  ;;  %v877_v30 = vunpack.c.l.s8.bf16 %v637_v16 }
 0x1ab   :  { %1410 = vmatprep.subr.bf16.mxu1 %v1164_v31  ;;  %v1069_v31 = vunpack.c.l.s8.bf16 %v733_v23  ;;  %v1046_v39 = vunpack.c.l.s8.bf16 %v722_v29 }
 0x1ad   :  { %1370 = vmatpush2.bf16.msra.mxu0 %v971_v20  ;;  %v1058_v20 = vunpack.c.h.s8.bf16 %v722_v29  ;;  %v673_v29 = vld [vmem:[#allocation7 + $0x270] sm:$0xff] }
 0x1ae   :  { %1411 = vmatpush2.bf16.msra.mxu1 %v1163_v34  ;;  %1371 = vmatprep.subr.bf16.mxu0 %v960_v35  ;;  %v721_v34 = vld [vmem:[#allocation7 + $0x3f0] sm:$0xff]  ;;  %v865_v35 = vunpack.c.h.s8.bf16 %v625_v33 }
 0x1af   :  { %1412 = vmatprep.subr.bf16.mxu1 %v1152_v38  ;;  %v1057_v36 = vunpack.c.h.s8.bf16 %v721_v34  ;;  %v854_v38 = vunpack.c.l.s8.bf16 %v626_v27 }
 0x1b1   :  { %1372 = vmatpush2.bf16.msra.mxu0 %v959_v41  ;;  %v614_v41 = vld [vmem:[#allocation7 + $0x98] sm:$0xff] }
 0x1b2   :  { %1413 = vmatpush2.bf16.msra.mxu1 %v1151_v46  ;;  %1373 = vmatprep.subr.bf16.mxu0 %v948_v48  ;;  %v710_v46 = vld [vmem:[#allocation7 + $0x398] sm:$0xff]  ;;  %v853_v48 = vunpack.c.l.s8.bf16 %v625_v33  ;;  %v842_v50 = vunpack.c.h.s8.bf16 %v614_v41 }
 0x1b3   :  { %1414 = vmatprep.subr.bf16.mxu1 %v1140_v49  ;;  %v1045_v49 = vunpack.c.l.s8.bf16 %v721_v34  ;;  %v1022_v57 = vunpack.c.l.s8.bf16 %v710_v46 }
 0x1b5   :  { %1374 = vmatpush2.bf16.msra.mxu0 %v947_v53  ;;  %v1034_v53 = vunpack.c.h.s8.bf16 %v710_v46  ;;  %v661_v46 = vld [vmem:[#allocation7 + $0x210] sm:$0xff] }
 0x1b6   :  { %1415 = vmatpush2.bf16.msra.mxu1 %v1139_v54  ;;  %1375 = vmatprep.subr.bf16.mxu0 %v936_v55  ;;  %v709_v54 = vld [vmem:[#allocation7 + $0x390] sm:$0xff]  ;;  %v841_v55 = vunpack.c.h.s8.bf16 %v613_v51 }
 0x1b7   :  { %1416 = vmatprep.subr.bf16.mxu1 %v1128_v7  ;;  %v1033_v56 = vunpack.c.h.s8.bf16 %v709_v54  ;;  %v830_v7 = vunpack.c.l.s8.bf16 %v614_v41 }
 0x1b9   :  { %1376 = vmatpush2.bf16.msra.mxu0 %v935_v58  ;;  %v602_v58 = vld [vmem:[#allocation7 + $0x38] sm:$0xff] }
 0x1ba   :  { %1417 = vmatpush2.bf16.msra.mxu1 %v1127_v8  ;;  %1377 = vmatprep.subr.bf16.mxu0 %v924_v59  ;;  %v698_v8 = vld [vmem:[#allocation7 + $0x338] sm:$0xff]  ;;  %v829_v59 = vunpack.c.l.s8.bf16 %v613_v51  ;;  %v818_v61 = vunpack.c.h.s8.bf16 %v602_v58 }
 0x1bb   :  { %1418 = vmatprep.subr.bf16.mxu1 %v1116_v60  ;;  %v1021_v60 = vunpack.c.l.s8.bf16 %v709_v54  ;;  %v998_v4 = vunpack.c.l.s8.bf16 %v698_v8 }
 0x1bd   :  { %1378 = vmatpush2.bf16.msra.mxu0 %v923_v63  ;;  %v1010_v63 = vunpack.c.h.s8.bf16 %v698_v8  ;;  %v649_v8 = vld [vmem:[#allocation7 + $0x1b0] sm:$0xff] }
 0x1be   :  { %1419 = vmatpush2.bf16.msra.mxu1 %v1115_v0  ;;  %1379 = vmatprep.subr.bf16.mxu0 %v912_v1  ;;  %v697_v0 = vld [vmem:[#allocation7 + $0x330] sm:$0xff]  ;;  %v817_v1 = vunpack.c.h.s8.bf16 %v601_v62 }
 0x1bf   :  { %1420 = vmatprep.subr.bf16.mxu1 %v1104_v3  ;;  %v1009_v2 = vunpack.c.h.s8.bf16 %v697_v0  ;;  %v806_v3 = vunpack.c.l.s8.bf16 %v602_v58 }
 0x1c1   :  { %1380 = vmatpush2.bf16.msra.mxu0 %v911_v5  ;;  %v686_v5 = vld [vmem:[#allocation7 + $0x2d8] sm:$0xff] }
 0x1c2   :  { %1421 = vmatpush2.bf16.msra.mxu1 %v1103_v6  ;;  %1381 = vmatprep.subr.bf16.mxu0 %v900_v9  ;;  %v782_v6 = vld [vmem:[#allocation7 + $0x5d8] sm:$0xff]  ;;  %v805_v9 = vunpack.c.l.s8.bf16 %v601_v62  ;;  %v986_v11 = vunpack.c.h.s8.bf16 %v686_v5 }
 0x1c3   :  { %1422 = vmatprep.subr.bf16.mxu1 %v1092_v10  ;;  %v997_v10 = vunpack.c.l.s8.bf16 %v697_v0  ;;  %v1166_v23 = vunpack.c.l.s8.bf16 %v782_v6 }
 0x1c5   :  { %1382 = vmatpush2.bf16.msra.mxu0 %v899_v13  ;;  %v1178_v13 = vunpack.c.h.s8.bf16 %v782_v6  ;;  %v639_v6 = vld [vmem:[#allocation7 + $0x160] sm:$0xff] }
 0x1c6   :  { %1423 = vmatpush2.bf16.msra.mxu1 %v1091_v14  ;;  %1433 = vmatprep.subr.bf16.mxu0 %v890_v15  ;;  %v781_v14 = vld [vmem:[#allocation7 + $0x5d0] sm:$0xff]  ;;  %v985_v15 = vunpack.c.h.s8.bf16 %v685_v12 }
 0x1c7   :  { %1474 = vmatprep.subr.bf16.mxu1 %v1082_v17  ;;  %v1177_v16 = vunpack.c.h.s8.bf16 %v781_v14  ;;  %v974_v17 = vunpack.c.l.s8.bf16 %v686_v5  ;;  %v1165_v27 = vunpack.c.l.s8.bf16 %v781_v14  ;;  %v628_v14 = vld [vmem:[#allocation7 + $0x108] sm:$0xff] }
 0x1c8   :  { %1384 = vmatmul.mubr.bf16.vlgmr.msra.gmra.mxu0 %v4117_v43 }
 0x1c9   :  { %1425 = vmatmul.mubr.bf16.vlgmr.msra.gmra.mxu1 %v4120_v47  ;;  %1434 = vmatpush1.bf16.msra.mxu0 %v889_v24  ;;  %v674_v24 = vld [vmem:[#allocation7 + $0x278] sm:$0xff] }
 0x1ca   :  { %1465 = vmatprep.mubr.bf16.mxu0 %v4113_v40  ;;  %1475 = vmatpush1.bf16.msra.mxu1 %v1081_v25  ;;  %v770_v25 = vld [vmem:[#allocation7 + $0x578] sm:$0xff] }
 0x1cb   :  { %1506 = vmatprep.mubr.bf16.mxu1 %v4115_v42  ;;  %1435 = vmatprep.subr.bf16.mxu0 %v878_v26  ;;  %v973_v26 = vunpack.c.l.s8.bf16 %v685_v12  ;;  %v1142_v34 = vunpack.c.l.s8.bf16 %v770_v25 }
 0x1cc   :  { %1476 = vmatprep.subr.bf16.mxu1 %v1070_v28  ;;  %v962_v28 = vunpack.c.h.s8.bf16 %v674_v24 }
 0x1cd   :  { %1436 = vmatpush1.bf16.msra.mxu0 %v877_v30  ;;  %v1154_v30 = vunpack.c.h.s8.bf16 %v770_v25 }
 0x1ce   :  { %1477 = vmatpush1.bf16.msra.mxu1 %v1069_v31  ;;  %1437 = vmatprep.subr.bf16.mxu0 %v866_v32  ;;  %v769_v31 = vld [vmem:[#allocation7 + $0x570] sm:$0xff]  ;;  %v961_v32 = vunpack.c.h.s8.bf16 %v673_v29 }
 0x1cf   :  { %1478 = vmatprep.subr.bf16.mxu1 %v1058_v20  ;;  %v1153_v33 = vunpack.c.h.s8.bf16 %v769_v31  ;;  %v950_v20 = vunpack.c.l.s8.bf16 %v674_v24  ;;  %v879_v24 = vunpack.c.l.s8.bf16 %v639_v6 }
 0x1d1   :  { %1438 = vmatpush1.bf16.msra.mxu0 %v865_v35  ;;  %v662_v35 = vld [vmem:[#allocation7 + $0x218] sm:$0xff] }
 0x1d2   :  { %1479 = vmatpush1.bf16.msra.mxu1 %v1057_v36  ;;  %1439 = vmatprep.subr.bf16.mxu0 %v854_v38  ;;  %v758_v36 = vld [vmem:[#allocation7 + $0x518] sm:$0xff]  ;;  %v949_v38 = vunpack.c.l.s8.bf16 %v673_v29  ;;  %v938_v41 = vunpack.c.h.s8.bf16 %v662_v35  ;;  %v627_v29 = vld [vmem:[#allocation7 + $0x100] sm:$0xff] }
 0x1d3   :  { %1480 = vmatprep.subr.bf16.mxu1 %v1046_v39  ;;  %v1141_v39 = vunpack.c.l.s8.bf16 %v769_v31  ;;  %v1118_v54 = vunpack.c.l.s8.bf16 %v758_v36 }
 0x1d5   :  { %1440 = vmatpush1.bf16.msra.mxu0 %v853_v48  ;;  %v1130_v48 = vunpack.c.h.s8.bf16 %v758_v36 }
 0x1d6   :  { %1481 = vmatpush1.bf16.msra.mxu1 %v1045_v49  ;;  %1441 = vmatprep.subr.bf16.mxu0 %v842_v50  ;;  %v757_v49 = vld [vmem:[#allocation7 + $0x510] sm:$0xff]  ;;  %v937_v50 = vunpack.c.h.s8.bf16 %v661_v46 }
 0x1d7   :  { %1482 = vmatprep.subr.bf16.mxu1 %v1034_v53  ;;  %v1129_v51 = vunpack.c.h.s8.bf16 %v757_v49  ;;  %v926_v53 = vunpack.c.l.s8.bf16 %v662_v35  ;;  %v867_v35 = vunpack.c.h.s8.bf16 %v627_v29 }
 0x1d9   :  { %1442 = vmatpush1.bf16.msra.mxu0 %v841_v55  ;;  %v650_v55 = vld [vmem:[#allocation7 + $0x1b8] sm:$0xff] }
 0x1da   :  { %1483 = vmatpush1.bf16.msra.mxu1 %v1033_v56  ;;  %1443 = vmatprep.subr.bf16.mxu0 %v830_v7  ;;  %v746_v56 = vld [vmem:[#allocation7 + $0x4b8] sm:$0xff]  ;;  %v925_v7 = vunpack.c.l.s8.bf16 %v661_v46  ;;  %v914_v58 = vunpack.c.h.s8.bf16 %v650_v55 }
 0x1db   :  { %1484 = vmatprep.subr.bf16.mxu1 %v1022_v57  ;;  %v1117_v57 = vunpack.c.l.s8.bf16 %v757_v49  ;;  %v1094_v0 = vunpack.c.l.s8.bf16 %v746_v56  ;;  %v712_v49 = vld [vmem:[#allocation7 + $0x3a8] sm:$0xff] }
 0x1dd   :  { %1444 = vmatpush1.bf16.msra.mxu0 %v829_v59  ;;  %v1106_v59 = vunpack.c.h.s8.bf16 %v746_v56  ;;  %v711_v56 = vld [vmem:[#allocation7 + $0x3a0] sm:$0xff] }
 0x1de   :  { %1485 = vmatpush1.bf16.msra.mxu1 %v1021_v60  ;;  %1445 = vmatprep.subr.bf16.mxu0 %v818_v61  ;;  %v745_v60 = vld [vmem:[#allocation7 + $0x4b0] sm:$0xff]  ;;  %v913_v61 = vunpack.c.h.s8.bf16 %v649_v8 }
 0x1df   :  { %1486 = vmatprep.subr.bf16.mxu1 %v1010_v63  ;;  %v1105_v62 = vunpack.c.h.s8.bf16 %v745_v60  ;;  %v902_v63 = vunpack.c.l.s8.bf16 %v650_v55  ;;  %v1036_v55 = vunpack.c.h.s8.bf16 %v712_v49 }
 0x1e1   :  { %1446 = vmatpush1.bf16.msra.mxu0 %v817_v1  ;;  %v640_v1 = vld [vmem:[#allocation7 + $0x168] sm:$0xff] }
 0x1e2   :  { %1487 = vmatpush1.bf16.msra.mxu1 %v1009_v2  ;;  %1447 = vmatprep.subr.bf16.mxu0 %v806_v3  ;;  %v736_v2 = vld [vmem:[#allocation7 + $0x468] sm:$0xff]  ;;  %v901_v3 = vunpack.c.l.s8.bf16 %v649_v8  ;;  %v892_v5 = vunpack.c.h.s8.bf16 %v640_v1  ;;  %v1024_v8 = vunpack.c.l.s8.bf16 %v712_v49 }
 0x1e3   :  { %1488 = vmatprep.subr.bf16.mxu1 %v998_v4  ;;  %v1093_v4 = vunpack.c.l.s8.bf16 %v745_v60  ;;  %v700_v60 = vld [vmem:[#allocation7 + $0x348] sm:$0xff] }
 0x1e5   :  { %1448 = vmatpush1.bf16.msra.mxu0 %v805_v9  ;;  %v1084_v9 = vunpack.c.h.s8.bf16 %v736_v2 }
 0x1e6   :  { %1489 = vmatpush1.bf16.msra.mxu1 %v997_v10  ;;  %1449 = vmatprep.subr.bf16.mxu0 %v986_v11  ;;  %v735_v10 = vld [vmem:[#allocation7 + $0x460] sm:$0xff]  ;;  %v891_v11 = vunpack.c.h.s8.bf16 %v639_v6  ;;  %v1000_v6 = vunpack.c.l.s8.bf16 %v700_v60 }
 0x1e7   :  { %1490 = vmatprep.subr.bf16.mxu1 %v1178_v13  ;;  %v1083_v12 = vunpack.c.h.s8.bf16 %v735_v10  ;;  %v880_v13 = vunpack.c.l.s8.bf16 %v640_v1  ;;  %v1012_v1 = vunpack.c.h.s8.bf16 %v700_v60 }
 0x1e9   :  { %1450 = vmatpush2.bf16.msra.mxu0 %v985_v15 }
 0x1ea   :  { %1491 = vmatpush2.bf16.msra.mxu1 %v1177_v16  ;;  %1451 = vmatprep.subr.bf16.mxu0 %v974_v17  ;;  %v1072_v16 = vunpack.c.l.s8.bf16 %v736_v2  ;;  %v724_v17 = vld [vmem:[#allocation7 + $0x408] sm:$0xff]  ;;  %v699_v2 = vld [vmem:[#allocation7 + $0x340] sm:$0xff] }
 0x1eb   :  { %1492 = vmatprep.subr.bf16.mxu1 %v1166_v23  ;;  %v1060_v31 = vunpack.c.h.s8.bf16 %v724_v17  ;;  %v1048_v46 = vunpack.c.l.s8.bf16 %v724_v17 }
 0x1ed   :  { %1452 = vmatpush2.bf16.msra.mxu0 %v973_v26 }
 0x1ee   :  { %1493 = vmatpush2.bf16.msra.mxu1 %v1165_v27  ;;  %1453 = vmatprep.subr.bf16.mxu0 %v962_v28  ;;  %v1071_v27 = vunpack.c.l.s8.bf16 %v735_v10  ;;  %v868_v28 = vunpack.c.h.s8.bf16 %v628_v14  ;;  %v784_v10 = vld [vmem:[#allocation7 + $0x5e8] sm:$0xff] }
 0x1ef   :  { %1494 = vmatprep.subr.bf16.mxu1 %v1154_v30 }
 0x1f1   :  { %1454 = vmatpush2.bf16.msra.mxu0 %v961_v32  ;;  %v723_v32 = vld [vmem:[#allocation7 + $0x400] sm:$0xff] }
 0x1f2   :  { %1495 = vmatpush2.bf16.msra.mxu1 %v1153_v33  ;;  %1455 = vmatprep.subr.bf16.mxu0 %v950_v20 }
 0x1f3   :  { %1496 = vmatprep.subr.bf16.mxu1 %v1142_v34 }
 0x1f5   :  { %1456 = vmatpush2.bf16.msra.mxu0 %v949_v38  ;;  %v1059_v38 = vunpack.c.h.s8.bf16 %v723_v32 }
 0x1f6   :  { %1497 = vmatpush2.bf16.msra.mxu1 %v1141_v39  ;;  %1457 = vmatprep.subr.bf16.mxu0 %v938_v41  ;;  %v856_v39 = vunpack.c.l.s8.bf16 %v628_v14  ;;  %v687_v14 = vld [vmem:[#allocation7 + $0x2e0] sm:$0xff] }
 0x1f7   :  { %1498 = vmatprep.subr.bf16.mxu1 %v1130_v48  ;;  %v616_v48 = vld [vmem:[#allocation7 + $0xa8] sm:$0xff]  ;;  %v987_v17 = vunpack.c.h.s8.bf16 %v687_v14 }
 0x1f9   :  { %1458 = vmatpush2.bf16.msra.mxu0 %v937_v50  ;;  %v855_v50 = vunpack.c.l.s8.bf16 %v627_v29  ;;  %v975_v29 = vunpack.c.l.s8.bf16 %v687_v14  ;;  %v737_v14 = vld [vmem:[#allocation7 + $0x470] sm:$0xff] }
 0x1fa   :  { %1499 = vmatpush2.bf16.msra.mxu1 %v1129_v51  ;;  %1459 = vmatprep.subr.bf16.mxu0 %v926_v53  ;;  %v1047_v51 = vunpack.c.l.s8.bf16 %v723_v32  ;;  %v844_v53 = vunpack.c.h.s8.bf16 %v616_v48  ;;  %v675_v32 = vld [vmem:[#allocation7 + $0x280] sm:$0xff] }
 0x1fb   :  { %1500 = vmatprep.subr.bf16.mxu1 %v1118_v54  ;;  %v615_v54 = vld [vmem:[#allocation7 + $0xa0] sm:$0xff] }
 0x1fd   :  { %1460 = vmatpush2.bf16.msra.mxu0 %v925_v7  ;;  %v843_v7 = vunpack.c.h.s8.bf16 %v615_v54 }
 0x1fe   :  { %1501 = vmatpush2.bf16.msra.mxu1 %v1117_v57  ;;  %1461 = vmatprep.subr.bf16.mxu0 %v914_v58  ;;  %v1035_v57 = vunpack.c.h.s8.bf16 %v711_v56  ;;  %v832_v58 = vunpack.c.l.s8.bf16 %v616_v48  ;;  %v951_v48 = vunpack.c.l.s8.bf16 %v675_v32 }
 0x1ff   :  { %1502 = vmatprep.subr.bf16.mxu1 %v1106_v59  ;;  %v604_v59 = vld [vmem:[#allocation7 + $0x48] sm:$0xff] }
 0x201   :  { %1462 = vmatpush2.bf16.msra.mxu0 %v913_v61  ;;  %v831_v61 = vunpack.c.l.s8.bf16 %v615_v54  ;;  %v759_v54 = vld [vmem:[#allocation7 + $0x520] sm:$0xff] }
 0x202   :  { %1503 = vmatpush2.bf16.msra.mxu1 %v1105_v62  ;;  %1463 = vmatprep.subr.bf16.mxu0 %v902_v63  ;;  %v1023_v62 = vunpack.c.l.s8.bf16 %v711_v56  ;;  %v820_v63 = vunpack.c.h.s8.bf16 %v604_v59  ;;  %v1131_v56 = vunpack.c.h.s8.bf16 %v759_v54  ;;  %v1119_v60 = vunpack.c.l.s8.bf16 %v759_v54  ;;  %v714_v54 = vld [vmem:[#allocation7 + $0x3b8] sm:$0xff] }
 0x203   :  { %1504 = vmatprep.subr.bf16.mxu1 %v1094_v0  ;;  %v603_v0 = vld [vmem:[#allocation7 + $0x40] sm:$0xff] }
 0x205   :  { %1464 = vmatpush2.bf16.msra.mxu0 %v901_v3  ;;  %v819_v3 = vunpack.c.h.s8.bf16 %v603_v0 }
 0x206   :  { %1505 = vmatpush2.bf16.msra.mxu1 %v1093_v4  ;;  %1515 = vmatprep.subr.bf16.mxu0 %v892_v5  ;;  %v1011_v4 = vunpack.c.h.s8.bf16 %v699_v2  ;;  %v808_v5 = vunpack.c.l.s8.bf16 %v604_v59 }
 0x207   :  { %1556 = vmatprep.subr.bf16.mxu1 %v1084_v9  ;;  %v688_v9 = vld [vmem:[#allocation7 + $0x2e8] sm:$0xff] }
 0x208   :  { %1466 = vmatmul.mubr.bf16.vlgmr.msra.gmra.mxu0 %v4117_v43  ;;  %v1221_v15 = vpop.f32.mrf.mxu0 }
 0x209   :  { %1507 = vmatmul.mubr.bf16.vlgmr.msra.gmra.mxu1 %v4120_v47  ;;  %v1262_v23 = vpop.f32.mrf.mxu1  ;;  %1516 = vmatpush1.bf16.msra.mxu0 %v891_v11  ;;  %v807_v11 = vunpack.c.l.s8.bf16 %v603_v0  ;;  %v747_v0 = vld [vmem:[#allocation7 + $0x4c0] sm:$0xff] }
 0x20a   :  { %v4139_v25 = vadd.f32 %v1262_v23, %v1221_v15  ;;  %1547 = vmatprep.mubr.bf16.mxu0 %v4113_v40  ;;  %1557 = vmatpush1.bf16.msra.mxu1 %v1083_v12  ;;  %v1223_v26 = vpop.f32.mrf.mxu0  ;;  %v999_v12 = vunpack.c.l.s8.bf16 %v699_v2  ;;  %v1180_v15 = vunpack.c.h.s8.bf16 %v784_v10  ;;  %v1107_v2 = vunpack.c.h.s8.bf16 %v747_v0 }
 0x20b   :  { %1588 = vmatprep.mubr.bf16.mxu1 %v4115_v42  ;;  %v1264_v30 = vpop.f32.mrf.mxu1  ;;  %1517 = vmatprep.subr.bf16.mxu0 %v880_v13  ;;  %v988_v13 = vunpack.c.h.s8.bf16 %v688_v9 }
 0x20c   :  { %v4143_v33 = vadd.f32 %v1264_v30, %v1223_v26  ;;  %1558 = vmatprep.subr.bf16.mxu1 %v1072_v16  ;;  %v1225_v20 = vpop.f32.mrf.mxu0  ;;  %v783_v16 = vld [vmem:[#allocation7 + $0x5e0] sm:$0xff]  ;;  %v1168_v26 = vunpack.c.l.s8.bf16 %v784_v10  ;;  %v1095_v10 = vunpack.c.l.s8.bf16 %v747_v0  ;;  %v702_v0 = vld [vmem:[#allocation7 + $0x358] sm:$0xff] }
 0x20d   :  { %v1266_v34 = vpop.f32.mrf.mxu1  ;;  %1518 = vmatpush1.bf16.msra.mxu0 %v879_v24  ;;  %v1179_v23 = vunpack.c.h.s8.bf16 %v783_v16  ;;  %v976_v24 = vunpack.c.l.s8.bf16 %v688_v9  ;;  %v1167_v30 = vunpack.c.l.s8.bf16 %v783_v16  ;;  %v1085_v16 = vunpack.c.h.s8.bf16 %v737_v14 }
 0x20e   :  { %1559 = vmatpush1.bf16.msra.mxu1 %v1071_v27  ;;  %v1226_v36 = vpop.f32.mrf.mxu0  ;;  %1519 = vmatprep.subr.bf16.mxu0 %v868_v28  ;;  %v676_v27 = vld [vmem:[#allocation7 + $0x288] sm:$0xff]  ;;  %v771_v34 = vld [vmem:[#allocation7 + $0x580] sm:$0xff] }
 0x20f   :  { %v1267_v41 = vpop.f32.mrf.mxu1  ;;  %1560 = vmatprep.subr.bf16.mxu1 %v1060_v31  ;;  %v772_v28 = vld [vmem:[#allocation7 + $0x588] sm:$0xff]  ;;  %v964_v31 = vunpack.c.h.s8.bf16 %v676_v27  ;;  %v1155_v36 = vunpack.c.h.s8.bf16 %v771_v34  ;;  %v1143_v49 = vunpack.c.l.s8.bf16 %v771_v34  ;;  %v629_v34 = vld [vmem:[#allocation7 + $0x110] sm:$0xff] }
 0x210   :  { %v1156_v20 = vunpack.c.h.s8.bf16 %v772_v28  ;;  %v664_v41 = vld [vmem:[#allocation7 + $0x228] sm:$0xff] }
 0x211   :  { %1520 = vmatpush1.bf16.msra.mxu0 %v867_v35  ;;  %v963_v35 = vunpack.c.h.s8.bf16 %v675_v32  ;;  %v1073_v32 = vunpack.c.l.s8.bf16 %v737_v14  ;;  %v786_v14 = vld [vmem:[#allocation7 + $0x5f8] sm:$0xff] }
 0x212   :  { %1561 = vmatpush1.bf16.msra.mxu1 %v1059_v38  ;;  %1521 = vmatprep.subr.bf16.mxu0 %v856_v39  ;;  %v952_v38 = vunpack.c.l.s8.bf16 %v676_v27  ;;  %v1144_v39 = vunpack.c.l.s8.bf16 %v772_v28  ;;  %v726_v27 = vld [vmem:[#allocation7 + $0x418] sm:$0xff] }
 0x213   :  { %1562 = vmatprep.subr.bf16.mxu1 %v1048_v46  ;;  %v760_v46 = vld [vmem:[#allocation7 + $0x528] sm:$0xff] }
 0x215   :  { %1522 = vmatpush1.bf16.msra.mxu0 %v855_v50  ;;  %v940_v50 = vunpack.c.h.s8.bf16 %v664_v41 }
 0x216   :  { %1563 = vmatpush1.bf16.msra.mxu1 %v1047_v51  ;;  %1523 = vmatprep.subr.bf16.mxu0 %v844_v53  ;;  %v663_v51 = vld [vmem:[#allocation7 + $0x220] sm:$0xff]  ;;  %v1132_v53 = vunpack.c.h.s8.bf16 %v760_v46 }
 0x217   :  { %1564 = vmatprep.subr.bf16.mxu1 %v1036_v55  ;;  %v939_v55 = vunpack.c.h.s8.bf16 %v663_v51  ;;  %v927_v59 = vunpack.c.l.s8.bf16 %v663_v51 }
 0x219   :  { %1524 = vmatpush1.bf16.msra.mxu0 %v843_v7  ;;  %v928_v7 = vunpack.c.l.s8.bf16 %v664_v41 }
 0x21a   :  { %1565 = vmatpush1.bf16.msra.mxu1 %v1035_v57  ;;  %1525 = vmatprep.subr.bf16.mxu0 %v832_v58  ;;  %v1120_v57 = vunpack.c.l.s8.bf16 %v760_v46  ;;  %v652_v58 = vld [vmem:[#allocation7 + $0x1c8] sm:$0xff] }
 0x21b   :  { %1566 = vmatprep.subr.bf16.mxu1 %v1024_v8  ;;  %v748_v8 = vld [vmem:[#allocation7 + $0x4c8] sm:$0xff] }
 0x21d   :  { %1526 = vmatpush1.bf16.msra.mxu0 %v831_v61  ;;  %v916_v61 = vunpack.c.h.s8.bf16 %v652_v58 }
 0x21e   :  { %1567 = vmatpush1.bf16.msra.mxu1 %v1023_v62  ;;  %1527 = vmatprep.subr.bf16.mxu0 %v820_v63  ;;  %v651_v62 = vld [vmem:[#allocation7 + $0x1c0] sm:$0xff]  ;;  %v1108_v63 = vunpack.c.h.s8.bf16 %v748_v8 }
 0x21f   :  { %1568 = vmatprep.subr.bf16.mxu1 %v1012_v1  ;;  %v915_v1 = vunpack.c.h.s8.bf16 %v651_v62  ;;  %v903_v9 = vunpack.c.l.s8.bf16 %v651_v62  ;;  %v1026_v62 = vunpack.c.l.s8.bf16 %v714_v54 }
 0x221   :  { %1528 = vmatpush1.bf16.msra.mxu0 %v819_v3  ;;  %v904_v3 = vunpack.c.l.s8.bf16 %v652_v58  ;;  %v1038_v58 = vunpack.c.h.s8.bf16 %v714_v54 }
 0x222   :  { %1569 = vmatpush1.bf16.msra.mxu1 %v1011_v4  ;;  %1529 = vmatprep.subr.bf16.mxu0 %v808_v5  ;;  %v1096_v4 = vunpack.c.l.s8.bf16 %v748_v8  ;;  %v642_v5 = vld [vmem:[#allocation7 + $0x178] sm:$0xff]  ;;  %v713_v8 = vld [vmem:[#allocation7 + $0x3b0] sm:$0xff] }
 0x223   :  { %1570 = vmatprep.subr.bf16.mxu1 %v1000_v6  ;;  %v738_v6 = vld [vmem:[#allocation7 + $0x478] sm:$0xff] }
 0x225   :  { %1530 = vmatpush1.bf16.msra.mxu0 %v807_v11  ;;  %v894_v11 = vunpack.c.h.s8.bf16 %v642_v5 }
 0x226   :  { %1571 = vmatpush1.bf16.msra.mxu1 %v999_v12  ;;  %1531 = vmatprep.subr.bf16.mxu0 %v988_v13  ;;  %v641_v12 = vld [vmem:[#allocation7 + $0x170] sm:$0xff]  ;;  %v1086_v13 = vunpack.c.h.s8.bf16 %v738_v6 }
 0x227   :  { %1572 = vmatprep.subr.bf16.mxu1 %v1180_v15  ;;  %v893_v15 = vunpack.c.h.s8.bf16 %v641_v12 }
 0x229   :  { %1532 = vmatpush2.bf16.msra.mxu0 %v987_v17  ;;  %v882_v17 = vunpack.c.l.s8.bf16 %v642_v5  ;;  %v1014_v5 = vunpack.c.h.s8.bf16 %v702_v0 }
 0x22a   :  { %1573 = vmatpush2.bf16.msra.mxu1 %v1179_v23  ;;  %1533 = vmatprep.subr.bf16.mxu0 %v976_v24  ;;  %v630_v23 = vld [vmem:[#allocation7 + $0x118] sm:$0xff] }
 0x22b   :  { %1574 = vmatprep.subr.bf16.mxu1 %v1168_v26  ;;  %v1074_v26 = vunpack.c.l.s8.bf16 %v738_v6  ;;  %v701_v6 = vld [vmem:[#allocation7 + $0x350] sm:$0xff] }
 0x22d   :  { %1534 = vmatpush2.bf16.msra.mxu0 %v975_v29  ;;  %v881_v29 = vunpack.c.l.s8.bf16 %v641_v12  ;;  %v1002_v12 = vunpack.c.l.s8.bf16 %v702_v0 }
 0x22e   :  { %1575 = vmatpush2.bf16.msra.mxu1 %v1167_v30  ;;  %1535 = vmatprep.subr.bf16.mxu0 %v964_v31 }
 0x22f   :  { %1576 = vmatprep.subr.bf16.mxu1 %v1156_v20  ;;  %v870_v20 = vunpack.c.h.s8.bf16 %v630_v23 }
 0x231   :  { %1536 = vmatpush2.bf16.msra.mxu0 %v963_v35 }
 0x232   :  { %1577 = vmatpush2.bf16.msra.mxu1 %v1155_v36  ;;  %1537 = vmatprep.subr.bf16.mxu0 %v952_v38  ;;  %v1062_v36 = vunpack.c.h.s8.bf16 %v726_v27  ;;  %v725_v38 = vld [vmem:[#allocation7 + $0x410] sm:$0xff] }
 0x233   :  { %1578 = vmatprep.subr.bf16.mxu1 %v1144_v39 }
 0x235   :  { %1538 = vmatpush2.bf16.msra.mxu0 %v951_v48  ;;  %v869_v48 = vunpack.c.h.s8.bf16 %v629_v34 }
 0x236   :  { %1579 = vmatpush2.bf16.msra.mxu1 %v1143_v49  ;;  %1539 = vmatprep.subr.bf16.mxu0 %v940_v50  ;;  %v1061_v49 = vunpack.c.h.s8.bf16 %v725_v38  ;;  %v858_v50 = vunpack.c.l.s8.bf16 %v630_v23  ;;  %v689_v23 = vld [vmem:[#allocation7 + $0x2f0] sm:$0xff] }
 0x237   :  { %1580 = vmatprep.subr.bf16.mxu1 %v1132_v53  ;;  %v1050_v53 = vunpack.c.l.s8.bf16 %v726_v27  ;;  %v788_v27 = vld [vmem:[#allocation10 + $0x1] ss:$8 sm:$0xf] }
 0x239   :  { %1540 = vmatpush2.bf16.msra.mxu0 %v939_v55  ;;  %v857_v55 = vunpack.c.l.s8.bf16 %v629_v34  ;;  %v794_v34 = vld [vmem:[#allocation10 + $0x4] ss:$8 sm:$0xf] }
 0x23a   :  { %1581 = vmatpush2.bf16.msra.mxu1 %v1131_v56  ;;  %1541 = vmatprep.subr.bf16.mxu0 %v928_v7  ;;  %v1049_v56 = vunpack.c.l.s8.bf16 %v725_v38  ;;  %v795_v38 = vld [vmem:[#allocation10 + $0x4] ss:$8 sm:$0xf0] }
 0x23b   :  { %1582 = vmatprep.subr.bf16.mxu1 %v1120_v57  ;;  %v617_v57 = vld [vmem:[#allocation7 + $0xb0] sm:$0xff] }
 0x23d   :  { %1542 = vmatpush2.bf16.msra.mxu0 %v927_v59  ;;  %v845_v59 = vunpack.c.h.s8.bf16 %v617_v57 }
 0x23e   :  { %1583 = vmatpush2.bf16.msra.mxu1 %v1119_v60  ;;  %1543 = vmatprep.subr.bf16.mxu0 %v916_v61  ;;  %v1037_v60 = vunpack.c.h.s8.bf16 %v713_v8 }
 0x23f   :  { %1584 = vmatprep.subr.bf16.mxu1 %v1108_v63  ;;  %v606_v63 = vld [vmem:[#allocation7 + $0x58] sm:$0xff] }
 0x241   :  { %1544 = vmatpush2.bf16.msra.mxu0 %v915_v1  ;;  %v833_v1 = vunpack.c.l.s8.bf16 %v617_v57 }
 0x242   :  { %1585 = vmatpush2.bf16.msra.mxu1 %v1107_v2  ;;  %1545 = vmatprep.subr.bf16.mxu0 %v904_v3  ;;  %v1025_v2 = vunpack.c.l.s8.bf16 %v713_v8  ;;  %v822_v3 = vunpack.c.h.s8.bf16 %v606_v63 }
 0x243   :  { %1586 = vmatprep.subr.bf16.mxu1 %v1096_v4  ;;  %v605_v4 = vld [vmem:[#allocation7 + $0x50] sm:$0xff] }
 0x245   :  { %1546 = vmatpush2.bf16.msra.mxu0 %v903_v9  ;;  %v821_v9 = vunpack.c.h.s8.bf16 %v605_v4 }
 0x246   :  { %1587 = vmatpush2.bf16.msra.mxu1 %v1095_v10  ;;  %1597 = vmatprep.subr.bf16.mxu0 %v894_v11  ;;  %v1013_v10 = vunpack.c.h.s8.bf16 %v701_v6  ;;  %v810_v11 = vunpack.c.l.s8.bf16 %v606_v63 }
 0x247   :  { %1638 = vmatprep.subr.bf16.mxu1 %v1086_v13  ;;  %v690_v13 = vld [vmem:[#allocation7 + $0x2f8] sm:$0xff] }
 0x248   :  { %v1303_v24 = vpop.f32.mrf.mxu0  ;;  %1548 = vmatmul.mubr.bf16.vlgmr.msra.gmra.mxu0 %v4117_v43 }
 0x249   :  { %v1344_v28 = vpop.f32.mrf.mxu1  ;;  %1589 = vmatmul.mubr.bf16.vlgmr.msra.gmra.mxu1 %v4120_v47  ;;  %1598 = vmatpush1.bf16.msra.mxu0 %v893_v15  ;;  %v809_v15 = vunpack.c.l.s8.bf16 %v605_v4  ;;  %v761_v4 = vld [vmem:[#allocation7 + $0x530] sm:$0xff] }
 0x24a   :  { %v4147_v30 = vadd.f32 %v1344_v28, %v1303_v24  ;;  %1629 = vmatprep.mubr.bf16.mxu0 %v4113_v40  ;;  %1639 = vmatpush1.bf16.msra.mxu1 %v1085_v16  ;;  %v1305_v31 = vpop.f32.mrf.mxu0  ;;  %v1001_v16 = vunpack.c.l.s8.bf16 %v701_v6  ;;  %v1182_v24 = vunpack.c.h.s8.bf16 %v786_v14  ;;  %v789_v28 = vld [vmem:[#allocation10 + $0x1] ss:$8 sm:$0xf0] }
 0x24b   :  { %1670 = vmatprep.mubr.bf16.mxu1 %v4115_v42  ;;  %v1346_v35 = vpop.f32.mrf.mxu1  ;;  %1599 = vmatprep.subr.bf16.mxu0 %v882_v17  ;;  %v618_v42 = vld [vmem:[#allocation7 + $0xb8] sm:$0xff]  ;;  %v990_v17 = vunpack.c.h.s8.bf16 %v690_v13 }
 0x24c   :  { %v4151_v39 = vadd.f32 %v1346_v35, %v1305_v31  ;;  %v1307_v41 = vpop.f32.mrf.mxu0  ;;  %1640 = vmatprep.subr.bf16.mxu1 %v1074_v26  ;;  %v846_v7 = vunpack.c.h.s8.bf16 %v618_v42  ;;  %v834_v61 = vunpack.c.l.s8.bf16 %v618_v42  ;;  %v785_v26 = vld [vmem:[#allocation7 + $0x5f0] sm:$0xff]  ;;  %v1170_v35 = vunpack.c.l.s8.bf16 %v786_v14 }
 0x24d   :  { %v1348_v46 = vpop.f32.mrf.mxu1  ;;  %1600 = vmatpush1.bf16.msra.mxu0 %v881_v29  ;;  %v989_v29 = vunpack.c.h.s8.bf16 %v689_v23  ;;  %v1181_v31 = vunpack.c.h.s8.bf16 %v785_v26  ;;  %v774_v41 = vld [vmem:[#allocation7 + $0x598] sm:$0xff]  ;;  %v773_v42 = vld [vmem:[#allocation7 + $0x590] sm:$0xff] }
 0x24e   :  { %1641 = vmatpush1.bf16.msra.mxu1 %v1073_v32  ;;  %v1308_v40 = vpop.f32.mrf.mxu0  ;;  %1601 = vmatprep.subr.bf16.mxu0 %v870_v20  ;;  %v978_v32 = vunpack.c.l.s8.bf16 %v690_v13  ;;  %v4153_v20 = vor.u32 %v789_v28, %v788_v27  ;;  %v977_v46 = vunpack.c.l.s8.bf16 %v689_v23  ;;  %v1146_v8 = vunpack.c.l.s8.bf16 %v774_v41  ;;  %v750_v13 = vld [vmem:[#allocation7 + $0x4d8] sm:$0xff]  ;;  %v653_v23 = vld [vmem:[#allocation7 + $0x1d0] sm:$0xff] }
 0x24f   :  { %v1349_v51 = vpop.f32.mrf.mxu1  ;;  %1642 = vmatprep.subr.bf16.mxu1 %v1062_v36  ;;  %v678_v36 = vld [vmem:[#allocation7 + $0x298] sm:$0xff]  ;;  %v1145_v0 = vunpack.c.l.s8.bf16 %v773_v42  ;;  %v917_v27 = vunpack.c.h.s8.bf16 %v653_v23 }
 0x250   :  { %v966_v40 = vunpack.c.h.s8.bf16 %v678_v36  ;;  %v1684_v51 = vrot.slane %v4153_v20, %v4055_v18  ;;  %v1688_v54 = vrot.slane %v4153_v20, %v4061_v21 }
 0x251   :  { %1602 = vmatpush1.bf16.msra.mxu0 %v869_v48  ;;  %v1169_v48 = vunpack.c.l.s8.bf16 %v785_v26  ;;  %v749_v26 = vld [vmem:[#allocation7 + $0x4d0] sm:$0xff] }
 0x252   :  { %1643 = vmatpush1.bf16.msra.mxu1 %v1061_v49  ;;  %1603 = vmatprep.subr.bf16.mxu0 %v858_v50  ;;  %v677_v49 = vld [vmem:[#allocation7 + $0x290] sm:$0xff]  ;;  %v4155_v50 = vor.u32 %v795_v38, %v794_v34  ;;  %v1741_v57 = vmul.f32 %v1684_v51, %v4139_v25  ;;  %v1109_v28 = vunpack.c.h.s8.bf16 %v749_v26  ;;  %v905_v34 = vunpack.c.l.s8.bf16 %v653_v23  ;;  %v1928_v38 = vld [vmem:[#allocation7 + $0x720] sm:$0xff] }
 0x253   :  { %1644 = vmatprep.subr.bf16.mxu1 %v1050_v53  ;;  %v1158_v53 = vunpack.c.h.s8.bf16 %v774_v41  ;;  %v953_v63 = vunpack.c.l.s8.bf16 %v677_v49  ;;  %v2180_v41 = vunpack.c.h.s8.bf16 %v1928_v38  ;;  %v1700_v51 = vrot.slane %v4153_v20, %v4081_v37 }
 0x255   :  { %1604 = vmatpush1.bf16.msra.mxu0 %v857_v55  ;;  %v965_v55 = vunpack.c.h.s8.bf16 %v677_v49 }
 0x256   :  { %1645 = vmatpush1.bf16.msra.mxu1 %v1049_v56  ;;  %1605 = vmatprep.subr.bf16.mxu0 %v846_v7  ;;  %v1157_v56 = vunpack.c.h.s8.bf16 %v773_v42  ;;  %v954_v7 = vunpack.c.l.s8.bf16 %v678_v36  ;;  %v2168_v42 = vunpack.c.l.s8.bf16 %v1928_v38  ;;  %v1976_v38 = vld [vmem:[#allocation7 + $0x8a0] sm:$0xff] }
 0x257   :  { %1646 = vmatprep.subr.bf16.mxu1 %v1038_v58  ;;  %v1758_v58 = vrot.slane %v4155_v50, %v4055_v18 }
 0x259   :  { %1606 = vmatpush1.bf16.msra.mxu0 %v845_v59  ;;  %v666_v59 = vld [vmem:[#allocation7 + $0x238] sm:$0xff]  ;;  %v1815_v25 = vadd.f32 %v1758_v58, %v1741_v57  ;;  %v1704_v57 = vrot.slane %v4153_v20, %v4085_v45 }
 0x25a   :  { %1647 = vmatpush1.bf16.msra.mxu1 %v1037_v60  ;;  %1607 = vmatprep.subr.bf16.mxu0 %v834_v61  ;;  %v762_v60 = vld [vmem:[#allocation7 + $0x538] sm:$0xff]  ;;  %v1742_v61 = vmul.f32 %v1688_v54, %v4143_v33  ;;  %v1133_v33 = vunpack.c.h.s8.bf16 %v761_v4 }
 0x25b   :  { %1648 = vmatprep.subr.bf16.mxu1 %v1026_v62  ;;  %v1762_v62 = vrot.slane %v4155_v50, %v4061_v21 }
 0x25d   :  { %1608 = vmatpush1.bf16.msra.mxu0 %v833_v1  ;;  %v942_v1 = vunpack.c.h.s8.bf16 %v666_v59 }
 0x25e   :  { %1649 = vmatpush1.bf16.msra.mxu1 %v1025_v2  ;;  %1609 = vmatprep.subr.bf16.mxu0 %v822_v3  ;;  %v665_v2 = vld [vmem:[#allocation7 + $0x230] sm:$0xff]  ;;  %v1134_v3 = vunpack.c.h.s8.bf16 %v762_v60 }
 0x25f   :  { %1650 = vmatprep.subr.bf16.mxu1 %v1014_v5  ;;  %v1816_v5 = vadd.f32 %v1762_v62, %v1742_v61  ;;  %v941_v6 = vunpack.c.h.s8.bf16 %v665_v2 }
 0x261   :  { %1610 = vmatpush1.bf16.msra.mxu0 %v821_v9  ;;  %v930_v9 = vunpack.c.l.s8.bf16 %v666_v59  ;;  %v3568_v14 = vmul.f32 -1.442695, %v1816_v5 }
 0x262   :  { %1651 = vmatpush1.bf16.msra.mxu1 %v1013_v10  ;;  %1611 = vmatprep.subr.bf16.mxu0 %v810_v11  ;;  %v3567_v10 = vmul.f32 -1.442695, %v1815_v25  ;;  %v1122_v11 = vunpack.c.l.s8.bf16 %v762_v60 }
 0x263   :  { %1652 = vmatprep.subr.bf16.mxu1 %v1002_v12  ;;  %v654_v12 = vld [vmem:[#allocation7 + $0x1d8] sm:$0xff] }
 0x264   :  { %3751 = vpow2.f32 %v3567_v10 }
 0x265   :  { %1612 = vmatpush1.bf16.msra.mxu0 %v809_v15  ;;  %v929_v15 = vunpack.c.l.s8.bf16 %v665_v2  ;;  %3753 = vpow2.f32 %v3568_v14  ;;  %v1893_v14 = vld [vmem:[#allocation7 + $0x608] sm:$0xff] }
 0x266   :  { %1653 = vmatpush1.bf16.msra.mxu1 %v1001_v16  ;;  %1613 = vmatprep.subr.bf16.mxu0 %v990_v17  ;;  %v1121_v16 = vunpack.c.l.s8.bf16 %v761_v4  ;;  %v918_v17 = vunpack.c.h.s8.bf16 %v654_v12 }
 0x267   :  { %1654 = vmatprep.subr.bf16.mxu1 %v1182_v24  ;;  %v1110_v24 = vunpack.c.h.s8.bf16 %v750_v13 }
 0x269   :  { %1614 = vmatpush2.bf16.msra.mxu0 %v989_v29  ;;  %v906_v29 = vunpack.c.l.s8.bf16 %v654_v12 }
 0x26a   :  { %1655 = vmatpush2.bf16.msra.mxu1 %v1181_v31  ;;  %1615 = vmatprep.subr.bf16.mxu0 %v978_v32  ;;  %v1098_v31 = vunpack.c.l.s8.bf16 %v750_v13  ;;  %v1929_v32 = vld [vmem:[#allocation7 + $0x728] sm:$0xff] }
 0x26b   :  { %1656 = vmatprep.subr.bf16.mxu1 %v1170_v35  ;;  %v1097_v35 = vunpack.c.l.s8.bf16 %v749_v26  ;;  %v2181_v36 = vunpack.c.h.s8.bf16 %v1929_v32 }
 0x26d   :  { %1616 = vmatpush2.bf16.msra.mxu0 %v977_v46  ;;  %v2169_v46 = vunpack.c.l.s8.bf16 %v1929_v32  ;;  %v1977_v32 = vld [vmem:[#allocation7 + $0x8a8] sm:$0xff] }
 0x26e   :  { %1657 = vmatpush2.bf16.msra.mxu1 %v1169_v48  ;;  %1617 = vmatprep.subr.bf16.mxu0 %v966_v40  ;;  %v1917_v48 = vld [vmem:[#allocation7 + $0x6c8] sm:$0xff] }
 0x26f   :  { %1658 = vmatprep.subr.bf16.mxu1 %v1158_v53  ;;  %v2157_v58 = vunpack.c.h.s8.bf16 %v1917_v48  ;;  %v2145_v4 = vunpack.c.l.s8.bf16 %v1917_v48  ;;  %v1965_v48 = vld [vmem:[#allocation7 + $0x848] sm:$0xff] }
 0x271   :  { %1618 = vmatpush2.bf16.msra.mxu0 %v965_v55  ;;  %v3752_v40 = vpop.eup %3751 }
 0x272   :  { %1659 = vmatpush2.bf16.msra.mxu1 %v1157_v56  ;;  %1619 = vmatprep.subr.bf16.mxu0 %v954_v7  ;;  %v3754_v54 = vpop.eup %3753  ;;  %v1774_v56 = vrot.slane %v4155_v50, %v4081_v37  ;;  %v1839_v59 = vadd.f32 1.0, %v3752_v40  ;;  %v2264_v40 = vunpack.c.l.s8.bf16 %v1976_v38 }
 0x273   :  { %1660 = vmatprep.subr.bf16.mxu1 %v1146_v8  ;;  %v1916_v8 = vld [vmem:[#allocation7 + $0x6c0] sm:$0xff] }
 0x274   :  { %3755 = vrcp.f32 %v1839_v59 }
 0x275   :  { %1620 = vmatpush2.bf16.msra.mxu0 %v953_v63  ;;  %v1840_v63 = vadd.f32 1.0, %v3754_v54 }
 0x276   :  { %1661 = vmatpush2.bf16.msra.mxu1 %v1145_v0  ;;  %1621 = vmatprep.subr.bf16.mxu0 %v942_v1  ;;  %v2156_v1 = vunpack.c.h.s8.bf16 %v1916_v8 }
 0x277   :  { %1662 = vmatprep.subr.bf16.mxu1 %v1134_v3 }
 0x279   :  { %1622 = vmatpush2.bf16.msra.mxu0 %v941_v6  ;;  %v1905_v6 = vld [vmem:[#allocation7 + $0x668] sm:$0xff] }
 0x27a   :  { %1663 = vmatpush2.bf16.msra.mxu1 %v1133_v33  ;;  %1623 = vmatprep.subr.bf16.mxu0 %v930_v9  ;;  %v2144_v9 = vunpack.c.l.s8.bf16 %v1916_v8  ;;  %v2133_v10 = vunpack.c.h.s8.bf16 %v1905_v6  ;;  %v2121_v13 = vunpack.c.l.s8.bf16 %v1905_v6  ;;  %v1770_v8 = vrot.slane %v4155_v50, %v4063_v22 }
 0x27b   :  { %1664 = vmatprep.subr.bf16.mxu1 %v1122_v11  ;;  %v1904_v11 = vld [vmem:[#allocation7 + $0x660] sm:$0xff] }
 0x27c   :  { %v2132_v12 = vunpack.c.h.s8.bf16 %v1904_v11 }
 0x27d   :  { %1624 = vmatpush2.bf16.msra.mxu0 %v929_v15  ;;  %v2120_v15 = vunpack.c.l.s8.bf16 %v1904_v11 }
 0x27e   :  { %1665 = vmatpush2.bf16.msra.mxu1 %v1121_v16  ;;  %1625 = vmatprep.subr.bf16.mxu0 %v918_v17  ;;  %v2109_v16 = vunpack.c.h.s8.bf16 %v1893_v14  ;;  %v1892_v17 = vld [vmem:[#allocation7 + $0x600] sm:$0xff] }
 0x27f   :  { %1666 = vmatprep.subr.bf16.mxu1 %v1110_v24  ;;  %v2108_v26 = vunpack.c.h.s8.bf16 %v1892_v17 }
 0x281   :  { %1626 = vmatpush2.bf16.msra.mxu0 %v917_v27  ;;  %v3756_v23 = vpop.eup %3755 }
 0x282   :  { %1667 = vmatpush2.bf16.msra.mxu1 %v1109_v28  ;;  %1627 = vmatprep.subr.bf16.mxu0 %v906_v29  ;;  %v2097_v29 = vunpack.c.l.s8.bf16 %v1893_v14 }
 0x283   :  { %1668 = vmatprep.subr.bf16.mxu1 %v1098_v31 }
 0x285   :  { %1628 = vmatpush2.bf16.msra.mxu0 %v905_v34 }
 0x286   :  { %1669 = vmatpush2.bf16.msra.mxu1 %v1097_v35  ;;  %2484 = vmatprep.subr.bf16.mxu0 %v2181_v36  ;;  %v2096_v35 = vunpack.c.l.s8.bf16 %v1892_v17  ;;  %v2277_v36 = vunpack.c.h.s8.bf16 %v1977_v32 }
 0x288   :  { %v1385_v49 = vpop.f32.mrf.mxu0  ;;  %1630 = vmatmul.mubr.bf16.vlgmr.msra.gmra.mxu0 %v4117_v43 }
 0x289   :  { %v1426_v53 = vpop.f32.mrf.mxu1  ;;  %1671 = vmatmul.mubr.bf16.vlgmr.msra.gmra.mxu1 %v4120_v47  ;;  %2485 = vmatpush1.bf16.msra.mxu0 %v2180_v41  ;;  %v1778_v47 = vrot.slane %v4155_v50, %v4085_v45  ;;  %v2276_v41 = vunpack.c.h.s8.bf16 %v1976_v38  ;;  %v1708_v38 = vrot.slane %v4153_v20, %v4083_v44 }
 0x28a   :  { %v1427_v55 = vadd.f32 %v1426_v53, %v1385_v49  ;;  %v1387_v7 = vpop.f32.mrf.mxu0  ;;  %2486 = vmatprep.subr.bf16.mxu0 %v2169_v46  ;;  %v2265_v46 = vunpack.c.l.s8.bf16 %v1977_v32  ;;  %v2253_v49 = vunpack.c.h.s8.bf16 %v1965_v48  ;;  %v1692_v53 = vrot.slane %v4153_v20, %v4057_v19 }
 0x28b   :  { %v1428_v60 = vpop.f32.mrf.mxu1 }
 0x28c   :  { %v1745_v43 = vmul.f32 %v1700_v51, %v1427_v55  ;;  %v1429_v61 = vadd.f32 %v1428_v60, %v1387_v7  ;;  %v1389_v62 = vpop.f32.mrf.mxu0  ;;  %v1964_v51 = vld [vmem:[#allocation7 + $0x840] sm:$0xff]  ;;  %v2241_v55 = vunpack.c.l.s8.bf16 %v1965_v48  ;;  %v1766_v7 = vrot.slane %v4155_v50, %v4057_v19 }
 0x28d   :  { %v1430_v0 = vpop.f32.mrf.mxu1  ;;  %2487 = vmatpush1.bf16.msra.mxu0 %v2168_v42  ;;  %v1696_v42 = vrot.slane %v4153_v20, %v4063_v22  ;;  %v2252_v54 = vunpack.c.h.s8.bf16 %v1964_v51  ;;  %v2240_v59 = vunpack.c.l.s8.bf16 %v1964_v51 }
 0x28e   :  { %v1819_v2 = vadd.f32 %v1774_v56, %v1745_v43  ;;  %v1746_v25 = vmul.f32 %v1704_v57, %v1429_v61  ;;  %v1390_v3 = vpop.f32.mrf.mxu0  ;;  %2488 = vmatprep.subr.bf16.mxu0 %v2157_v58  ;;  %v1743_v56 = vmul.f32 %v1692_v53, %v4147_v30  ;;  %v1953_v57 = vld [vmem:[#allocation7 + $0x7e8] sm:$0xff]  ;;  %v1952_v43 = vld [vmem:[#allocation7 + $0x7e0] sm:$0xff]  ;;  %v1712_v53 = vrot.slane %v4153_v20, %v4087_v52 }
 0x28f   :  { %v1431_v5 = vpop.f32.mrf.mxu1  ;;  %v1744_v58 = vmul.f32 %v1696_v42, %v4151_v39  ;;  %v2229_v60 = vunpack.c.h.s8.bf16 %v1953_v57  ;;  %v2024_v0 = vld [vmem:[#allocation7 + $0xa20] sm:$0xff]  ;;  %v1941_v39 = vld [vmem:[#allocation7 + $0x788] sm:$0xff] }
 0x290   :  { %3757 = vtanh.f32 %v1819_v2  ;;  %v1820_v33 = vadd.f32 %v1778_v47, %v1746_v25  ;;  %v1817_v61 = vadd.f32 %v1766_v7, %v1743_v56  ;;  %v2025_v47 = vld [vmem:[#allocation7 + $0xa28] sm:$0xff]  ;;  %v2372_v2 = vunpack.c.h.s8.bf16 %v2024_v0 }
 0x291   :  { %3759 = vrcp.f32 %v1840_v63  ;;  %2489 = vmatpush1.bf16.msra.mxu0 %v2156_v1  ;;  %v1818_v62 = vadd.f32 %v1770_v8, %v1744_v58  ;;  %v2228_v63 = vunpack.c.h.s8.bf16 %v1952_v43  ;;  %v2373_v30 = vunpack.c.h.s8.bf16 %v2025_v47  ;;  %v1989_v8 = vld [vmem:[#allocation7 + $0x908] sm:$0xff] }
 0x292   :  { %3761 = vtanh.f32 %v1820_v33  ;;  %2490 = vmatprep.subr.bf16.mxu0 %v2145_v4  ;;  %v2217_v1 = vunpack.c.l.s8.bf16 %v1953_v57  ;;  %v3569_v25 = vmul.f32 -1.442695, %v1817_v61  ;;  %v2361_v3 = vunpack.c.l.s8.bf16 %v2025_v47  ;;  %v1988_v61 = vld [vmem:[#allocation7 + $0x900] sm:$0xff] }
 0x293   :  { %2525 = vmatprep.subr.bf16.mxu1 %v2373_v30  ;;  %v3570_v4 = vmul.f32 -1.442695, %v1818_v62  ;;  %v2216_v5 = vunpack.c.l.s8.bf16 %v1952_v43  ;;  %v2360_v6 = vunpack.c.l.s8.bf16 %v2024_v0  ;;  %v2205_v33 = vunpack.c.h.s8.bf16 %v1941_v39 }
 0x294   :  { %2526 = vmatpush1.bf16.msra.mxu1 %v2372_v2  ;;  %3763 = vpow2.f32 %v3569_v25  ;;  %v2193_v14 = vunpack.c.l.s8.bf16 %v1941_v39  ;;  %v1786_v57 = vrot.slane %v4155_v50, %v4087_v52  ;;  %v2301_v43 = vunpack.c.h.s8.bf16 %v1989_v8  ;;  %v2073_v2 = vld [vmem:[#allocation7 + $0xba8] sm:$0xff]  ;;  %v2072_v39 = vld [vmem:[#allocation7 + $0xba0] sm:$0xff] }
 0x295   :  { %2491 = vmatpush1.bf16.msra.mxu0 %v2144_v9  ;;  %v1940_v9 = vld [vmem:[#allocation7 + $0x780] sm:$0xff]  ;;  %2527 = vmatprep.subr.bf16.mxu1 %v2361_v3  ;;  %3765 = vpow2.f32 %v3570_v4  ;;  %v2300_v20 = vunpack.c.h.s8.bf16 %v1988_v61  ;;  %v2469_v25 = vunpack.c.h.s8.bf16 %v2073_v2  ;;  %v2468_v3 = vunpack.c.h.s8.bf16 %v2072_v39 }
 0x296   :  { %2492 = vmatprep.subr.bf16.mxu0 %v2133_v10  ;;  %v2013_v10 = vld [vmem:[#allocation7 + $0x9c8] sm:$0xff]  ;;  %v2204_v11 = vunpack.c.h.s8.bf16 %v1940_v9  ;;  %v2457_v4 = vunpack.c.l.s8.bf16 %v2073_v2 }
 0x297   :  { %v2337_v17 = vunpack.c.l.s8.bf16 %v2013_v10 }
 0x298   :  { %2528 = vmatpush1.bf16.msra.mxu1 %v2360_v6 }
 0x299   :  { %2493 = vmatpush1.bf16.msra.mxu0 %v2132_v12  ;;  %v2349_v12 = vunpack.c.h.s8.bf16 %v2013_v10 }
 0x29a   :  { %2494 = vmatprep.subr.bf16.mxu0 %v2121_v13  ;;  %v2012_v13 = vld [vmem:[#allocation7 + $0x9c0] sm:$0xff] }
 0x29b   :  { %2529 = vmatprep.subr.bf16.mxu1 %v2349_v12 }
 0x29d   :  { %v3758_v24 = vpop.eup %3757  ;;  %2495 = vmatpush1.bf16.msra.mxu0 %v2120_v15  ;;  %v2348_v15 = vunpack.c.h.s8.bf16 %v2012_v13 }
 0x29e   :  { %v3760_v27 = vpop.eup %3759  ;;  %v4177_v28 = vmul.f32 %v3758_v24, %v3756_v23  ;;  %2496 = vmatprep.subr.bf16.mxu0 %v2109_v16  ;;  %v4191_v16 = vld [vmem:[#allocation7 + $0x738] sm:$0xff]  ;;  %v2192_v23 = vunpack.c.l.s8.bf16 %v1940_v9  ;;  %v2336_v24 = vunpack.c.l.s8.bf16 %v2012_v13 }
 0x29f   :  { %v3762_v31 = vpop.eup %3761  ;;  %2530 = vmatpush1.bf16.msra.mxu1 %v2348_v15 }
 0x2a0   :  { %v4179_v34 = vmul.f32 %v3762_v31, %v3760_v27  ;;  %2531 = vmatprep.subr.bf16.mxu1 %v2337_v17  ;;  %v2001_v27 = vld [vmem:[#allocation7 + $0x968] sm:$0xff]  ;;  %v2000_v31 = vld [vmem:[#allocation7 + $0x960] sm:$0xff] }
 0x2a1   :  { %2497 = vmatpush1.bf16.msra.mxu0 %v2108_v26  ;;  %v2183_v26 = vunpack.c.h.s8.bf16 %v4191_v16  ;;  %v2324_v32 = vunpack.c.h.s8.bf16 %v2000_v31  ;;  %v2312_v42 = vunpack.c.l.s8.bf16 %v2000_v31 }
 0x2a2   :  { %2498 = vmatprep.subr.bf16.mxu0 %v2097_v29  ;;  %v2325_v29 = vunpack.c.h.s8.bf16 %v2001_v27 }
 0x2a3   :  { %2532 = vmatpush1.bf16.msra.mxu1 %v2336_v24 }
 0x2a4   :  { %2533 = vmatprep.subr.bf16.mxu1 %v2325_v29  ;;  %v2048_v29 = vld [vmem:[#allocation7 + $0xae0] sm:$0xff] }
 0x2a5   :  { %2499 = vmatpush1.bf16.msra.mxu0 %v2096_v35  ;;  %v3764_v35 = vpop.eup %3763  ;;  %v2420_v31 = vunpack.c.h.s8.bf16 %v2048_v29 }
 0x2a6   :  { %2500 = vmatprep.subr.bf16.mxu0 %v2277_v36  ;;  %v3766_v48 = vpop.eup %3765 }
 0x2a7   :  { %2534 = vmatpush1.bf16.msra.mxu1 %v2324_v32 }
 0x2a9   :  { %2501 = vmatpush2.bf16.msra.mxu0 %v2276_v41 }
 0x2aa   :  { %2502 = vmatprep.subr.bf16.mxu0 %v2265_v46  ;;  %v2313_v46 = vunpack.c.l.s8.bf16 %v2001_v27 }
 0x2ac   :  { %2535 = vmatprep.subr.bf16.mxu1 %v2313_v46 }
 0x2ad   :  { %2503 = vmatpush2.bf16.msra.mxu0 %v2264_v40  ;;  %2536 = vmatpush1.bf16.msra.mxu1 %v2312_v42  ;;  %v4211_v42 = vld [vmem:[#allocation10 + $0x44] ss:$8 sm:$0xf] }
 0x2ae   :  { %2504 = vmatprep.subr.bf16.mxu0 %v2253_v49  ;;  %v1782_v49 = vrot.slane %v4155_v50, %v4083_v44  ;;  %2537 = vmatprep.subr.bf16.mxu1 %v2301_v43  ;;  %v2288_v50 = vunpack.c.l.s8.bf16 %v1988_v61  ;;  %v1794_v61 = vrot.slane %v4211_v42, %v4061_v21 }
 0x2b1   :  { %2505 = vmatpush2.bf16.msra.mxu0 %v2252_v54  ;;  %v1841_v54 = vadd.f32 1.0, %v3764_v35  ;;  %2538 = vmatpush1.bf16.msra.mxu1 %v2300_v20  ;;  %v2408_v35 = vunpack.c.l.s8.bf16 %v2048_v29 }
 0x2b2   :  { %2506 = vmatprep.subr.bf16.mxu0 %v2241_v55 }
 0x2b3   :  { %3767 = vrcp.f32 %v1841_v54 }
 0x2b5   :  { %2507 = vmatpush2.bf16.msra.mxu0 %v2240_v59  ;;  %v1842_v59 = vadd.f32 1.0, %v3766_v48 }
 0x2b6   :  { %2508 = vmatprep.subr.bf16.mxu0 %v2229_v60 }
 0x2b9   :  { %2509 = vmatpush2.bf16.msra.mxu0 %v2228_v63 }
 0x2ba   :  { %2510 = vmatprep.subr.bf16.mxu0 %v2217_v1  ;;  %v2289_v1 = vunpack.c.l.s8.bf16 %v1989_v8 }
 0x2bc   :  { %2539 = vmatprep.subr.bf16.mxu1 %v2289_v1 }
 0x2bd   :  { %2511 = vmatpush2.bf16.msra.mxu0 %v2216_v5  ;;  %2540 = vmatpush1.bf16.msra.mxu1 %v2288_v50  ;;  %v2456_v5 = vunpack.c.l.s8.bf16 %v2072_v39 }
 0x2be   :  { %2512 = vmatprep.subr.bf16.mxu0 %v2205_v33  ;;  %2541 = vmatprep.subr.bf16.mxu1 %v2469_v25  ;;  %v2061_v33 = vld [vmem:[#allocation7 + $0xb48] sm:$0xff] }
 0x2bf   :  { %v2445_v10 = vunpack.c.h.s8.bf16 %v2061_v33 }
 0x2c0   :  { %v3768_v6 = vpop.eup %3767 }
 0x2c1   :  { %2513 = vmatpush2.bf16.msra.mxu0 %v2204_v11  ;;  %2542 = vmatpush2.bf16.msra.mxu1 %v2468_v3  ;;  %v2060_v11 = vld [vmem:[#allocation7 + $0xb40] sm:$0xff] }
 0x2c2   :  { %2514 = vmatprep.subr.bf16.mxu0 %v2193_v14  ;;  %2543 = vmatprep.subr.bf16.mxu1 %v2457_v4  ;;  %v2444_v14 = vunpack.c.h.s8.bf16 %v2060_v11  ;;  %v2432_v24 = vunpack.c.l.s8.bf16 %v2060_v11  ;;  %v1930_v11 = vld [vmem:[#allocation7 + $0x730] sm:$0xff] }
 0x2c5   :  { %2515 = vmatpush2.bf16.msra.mxu0 %v2192_v23  ;;  %2544 = vmatpush2.bf16.msra.mxu1 %v2456_v5  ;;  %v2433_v23 = vunpack.c.l.s8.bf16 %v2061_v33 }
 0x2c6   :  { %2566 = vmatprep.subr.bf16.mxu0 %v2183_v26  ;;  %2545 = vmatprep.subr.bf16.mxu1 %v2445_v10  ;;  %v2049_v26 = vld [vmem:[#allocation7 + $0xae8] sm:$0xff] }
 0x2c7   :  { %v2421_v27 = vunpack.c.h.s8.bf16 %v2049_v26  ;;  %v2409_v32 = vunpack.c.l.s8.bf16 %v2049_v26 }
 0x2c8   :  { %v1467_v36 = vpop.f32.mrf.mxu0 }
 0x2c9   :  { %v1508_v41 = vpop.f32.mrf.mxu1  ;;  %2546 = vmatpush2.bf16.msra.mxu1 %v2444_v14 }
 0x2ca   :  { %v1509_v40 = vadd.f32 %v1508_v41, %v1467_v36  ;;  %v1469_v51 = vpop.f32.mrf.mxu0  ;;  %2547 = vmatprep.subr.bf16.mxu1 %v2433_v23  ;;  %v2037_v36 = vld [vmem:[#allocation7 + $0xa88] sm:$0xff]  ;;  %v2036_v41 = vld [vmem:[#allocation7 + $0xa80] sm:$0xff] }
 0x2cb   :  { %v1510_v55 = vpop.f32.mrf.mxu1  ;;  %v2396_v46 = vunpack.c.h.s8.bf16 %v2036_v41  ;;  %v2385_v48 = vunpack.c.l.s8.bf16 %v2037_v36 }
 0x2cc   :  { %v1747_v56 = vmul.f32 %v1708_v38, %v1509_v40  ;;  %v1511_v7 = vadd.f32 %v1510_v55, %v1469_v51  ;;  %v1471_v58 = vpop.f32.mrf.mxu0  ;;  %v2397_v38 = vunpack.c.h.s8.bf16 %v2037_v36  ;;  %v2384_v40 = vunpack.c.l.s8.bf16 %v2036_v41  ;;  %v1906_v36 = vld [vmem:[#allocation7 + $0x670] sm:$0xff] }
 0x2cd   :  { %v1512_v60 = vpop.f32.mrf.mxu1  ;;  %2548 = vmatpush2.bf16.msra.mxu1 %v2432_v24  ;;  %v2171_v24 = vunpack.c.l.s8.bf16 %v4191_v16 }
 0x2ce   :  { %v1821_v47 = vadd.f32 %v1782_v49, %v1747_v56  ;;  %v1748_v62 = vmul.f32 %v1712_v53, %v1511_v7  ;;  %v1472_v63 = vpop.f32.mrf.mxu0  ;;  %2549 = vmatprep.subr.bf16.mxu1 %v2421_v27  ;;  %v4206_v49 = vld [vmem:[#allocation7 + $0xa38] sm:$0xff]  ;;  %v1918_v27 = vld [vmem:[#allocation7 + $0x6d0] sm:$0xff] }
 0x2cf   :  { %v1513_v30 = vpop.f32.mrf.mxu1  ;;  %v2375_v51 = vunpack.c.h.s8.bf16 %v4206_v49  ;;  %v4209_v53 = vld [vmem:[#allocation10 + $0x41] ss:$8 sm:$0xf]  ;;  %v2158_v29 = vunpack.c.h.s8.bf16 %v1918_v27 }
 0x2d0   :  { %3769 = vtanh.f32 %v1821_v47  ;;  %v1822_v0 = vadd.f32 %v1786_v57, %v1748_v62  ;;  %v1716_v55 = vrot.slane %v4209_v53, %v4055_v18  ;;  %v1790_v57 = vrot.slane %v4211_v42, %v4055_v18 }
 0x2d1   :  { %3771 = vrcp.f32 %v1842_v59  ;;  %2550 = vmatpush2.bf16.msra.mxu1 %v2420_v31  ;;  %v1720_v8 = vrot.slane %v4209_v53, %v4061_v21 }
 0x2d2   :  { %3773 = vtanh.f32 %v1822_v0  ;;  %2551 = vmatprep.subr.bf16.mxu1 %v2409_v32  ;;  %v1907_v32 = vld [vmem:[#allocation7 + $0x678] sm:$0xff] }
 0x2d3   :  { %v2135_v16 = vunpack.c.h.s8.bf16 %v1907_v32  ;;  %v2123_v41 = vunpack.c.l.s8.bf16 %v1907_v32 }
 0x2d5   :  { %2552 = vmatpush2.bf16.msra.mxu1 %v2408_v35  ;;  %v2146_v35 = vunpack.c.l.s8.bf16 %v1918_v27 }
 0x2d6   :  { %2553 = vmatprep.subr.bf16.mxu1 %v2397_v38  ;;  %v2134_v38 = vunpack.c.h.s8.bf16 %v1906_v36 }
 0x2d9   :  { %2554 = vmatpush2.bf16.msra.mxu1 %v2396_v46  ;;  %v1895_v46 = vld [vmem:[#allocation7 + $0x618] sm:$0xff] }
 0x2da   :  { %2555 = vmatprep.subr.bf16.mxu1 %v2385_v48 }
 0x2dd   :  { %v3770_v9 = vpop.eup %3769  ;;  %2556 = vmatpush2.bf16.msra.mxu1 %v2384_v40  ;;  %v1724_v40 = vrot.slane %v4209_v53, %v4057_v19 }
 0x2de   :  { %v3772_v12 = vpop.eup %3771  ;;  %v4202_v13 = vmul.f32 %v3770_v9, %v3768_v6  ;;  %2607 = vmatprep.subr.bf16.mxu1 %v2375_v51  ;;  %v2122_v51 = vunpack.c.l.s8.bf16 %v1906_v36  ;;  %v1943_v36 = vld [vmem:[#allocation7 + $0x798] sm:$0xff] }
 0x2df   :  { %v3774_v15 = vpop.eup %3773 }
 0x2e0   :  { %v4204_v17 = vmul.f32 %v3774_v15, %v3772_v12  ;;  %v2182_v15 = vunpack.c.h.s8.bf16 %v1930_v11 }
 0x308   :  { %v1549_v54 = vpop.f32.mrf.mxu0 }
 0x309   :  { %v1590_v56 = vpop.f32.mrf.mxu1 }
 0x30a   :  { %v1591_v7 = vadd.f32 %v1590_v56, %v1549_v54  ;;  %v1551_v58 = vpop.f32.mrf.mxu0  ;;  %v1894_v56 = vld [vmem:[#allocation7 + $0x610] sm:$0xff] }
 0x30b   :  { %v1592_v59 = vpop.f32.mrf.mxu1 }
 0x30c   :  { %v1749_v60 = vmul.f32 %v1716_v55, %v1591_v7  ;;  %v1593_v43 = vadd.f32 %v1592_v59, %v1551_v58  ;;  %v1553_v47 = vpop.f32.mrf.mxu0  ;;  %v2111_v55 = vunpack.c.h.s8.bf16 %v1895_v46 }
 0x30d   :  { %v1594_v62 = vpop.f32.mrf.mxu1 }
 0x30e   :  { %v1823_v63 = vadd.f32 %v1790_v57, %v1749_v60  ;;  %v1750_v20 = vmul.f32 %v1720_v8, %v1593_v43  ;;  %v1554_v30 = vpop.f32.mrf.mxu0  ;;  %v1798_v57 = vrot.slane %v4211_v42, %v4057_v19  ;;  %v1728_v8 = vrot.slane %v4209_v53, %v4063_v22 }
 0x30f   :  { %v1595_v0 = vpop.f32.mrf.mxu1  ;;  %v2110_v62 = vunpack.c.h.s8.bf16 %v1894_v56  ;;  %v2098_v53 = vunpack.c.l.s8.bf16 %v1894_v56 }
 0x310   :  { %v3571_v1 = vmul.f32 -1.442695, %v1823_v63  ;;  %v1824_v50 = vadd.f32 %v1794_v61, %v1750_v20  ;;  %v1802_v61 = vrot.slane %v4211_v42, %v4063_v22  ;;  %v2099_v20 = vunpack.c.l.s8.bf16 %v1895_v46  ;;  %v1942_v46 = vld [vmem:[#allocation7 + $0x790] sm:$0xff] }
 0x312   :  { %3775 = vpow2.f32 %v3571_v1  ;;  %v3572_v2 = vmul.f32 -1.442695, %v1824_v50  ;;  %v1979_v50 = vld [vmem:[#allocation7 + $0x8b8] sm:$0xff] }
 0x314   :  { %3777 = vpow2.f32 %v3572_v2 }
 0x315   :  { %3779 = vtanh.f32 %v4177_v28  ;;  %v1919_v28 = vld [vmem:[#allocation7 + $0x6d8] sm:$0xff] }
 0x316   :  { %v2159_v26 = vunpack.c.h.s8.bf16 %v1919_v28  ;;  %v2147_v31 = vunpack.c.l.s8.bf16 %v1919_v28 }
 0x31f   :  { %v3776_v25 = vpop.eup %3775 }
 0x320   :  { %v1867_v39 = vadd.f32 1.0, %v3776_v25 }
 0x321   :  { %v3778_v3 = vpop.eup %3777 }
 0x322   :  { %3781 = vrcp.f32 %v1867_v39  ;;  %v1868_v4 = vadd.f32 1.0, %v3778_v3  ;;  %v3780_v5 = vpop.eup %3779  ;;  %v2279_v3 = vunpack.c.h.s8.bf16 %v1979_v50 }
 0x323   :  { %3783 = vtanh.f32 %v4179_v34  ;;  %v2170_v34 = vunpack.c.l.s8.bf16 %v1930_v11  ;;  %v1966_v11 = vld [vmem:[#allocation7 + $0x850] sm:$0xff] }
 0x324   :  { %3785 = vrcp.f32 %v1868_v4  ;;  %v1978_v4 = vld [vmem:[#allocation7 + $0x8b0] sm:$0xff] }
 0x32f   :  { %v3782_v6 = vpop.eup %3781 }
 0x330   :  { %v3784_v33 = vpop.eup %3783  ;;  %v1887_v10 = vmul.f32 %v3782_v6, %v3780_v5  ;;  %v2278_v5 = vunpack.c.h.s8.bf16 %v1978_v4  ;;  %v2267_v6 = vunpack.c.l.s8.bf16 %v1979_v50 }
 0x331   :  { %v3786_v9 = vpop.eup %3785 }
 0x332   :  { %v1888_v12 = vmul.f32 %v3786_v9, %v3784_v33  ;;  %v4225_v23 = vpack.c.bf16 %v1887_v10, %v1887_v10  ;;  %v1967_v33 = vld [vmem:[#allocation7 + $0x858] sm:$0xff]  ;;  %v2266_v9 = vunpack.c.l.s8.bf16 %v1978_v4 }
 0x333   :  { %v2255_v10 = vunpack.c.h.s8.bf16 %v1967_v33 }
 0x334   :  { %v4223_v14 = vpack.c.bf16 %v1888_v12, %v1888_v12  ;;  %v2254_v12 = vunpack.c.h.s8.bf16 %v1966_v11 }
 0x336   :  { %2516 = vmatprep.mubr.bf16.mxu0 %v4223_v14 }
 0x337   :  { %2517 = vmatmul.mubr.bf16.vlgmr.msra.gmra.mxu0 %v4225_v23 }
 0x338   :  { %2567 = vmatpush1.bf16.msra.mxu0 %v2182_v15  ;;  %2598 = vmatprep.mubr.bf16.mxu0 %v4223_v14  ;;  %v2243_v15 = vunpack.c.l.s8.bf16 %v1967_v33 }
 0x339   :  { %2568 = vmatprep.subr.bf16.mxu0 %v2171_v24  ;;  %v1955_v24 = vld [vmem:[#allocation7 + $0x7f8] sm:$0xff] }
 0x33c   :  { %2569 = vmatpush1.bf16.msra.mxu0 %v2170_v34 }
 0x33d   :  { %2570 = vmatprep.subr.bf16.mxu0 %v2159_v26  ;;  %v2242_v26 = vunpack.c.l.s8.bf16 %v1966_v11  ;;  %v2002_v11 = vld [vmem:[#allocation7 + $0x970] sm:$0xff] }
 0x340   :  { %2571 = vmatpush1.bf16.msra.mxu0 %v2158_v29  ;;  %v2231_v29 = vunpack.c.h.s8.bf16 %v1955_v24 }
 0x341   :  { %2572 = vmatprep.subr.bf16.mxu0 %v2147_v31  ;;  %v1954_v31 = vld [vmem:[#allocation7 + $0x7f0] sm:$0xff] }
 0x344   :  { %2573 = vmatpush1.bf16.msra.mxu0 %v2146_v35  ;;  %v2230_v35 = vunpack.c.h.s8.bf16 %v1954_v31 }
 0x345   :  { %2574 = vmatprep.subr.bf16.mxu0 %v2135_v16  ;;  %v2219_v16 = vunpack.c.l.s8.bf16 %v1955_v24 }
 0x348   :  { %2575 = vmatpush1.bf16.msra.mxu0 %v2134_v38  ;;  %v1631_v48 = vpop.f32.mrf.mxu0  ;;  %v2218_v38 = vunpack.c.l.s8.bf16 %v1954_v31 }
 0x349   :  { %v1672_v54 = vpop.f32.mrf.mxu1  ;;  %2576 = vmatprep.subr.bf16.mxu0 %v2123_v41  ;;  %v2207_v41 = vunpack.c.h.s8.bf16 %v1943_v36 }
 0x34a   :  { %v1673_v7 = vadd.f32 %v1672_v54, %v1631_v48  ;;  %v1633_v58 = vpop.f32.mrf.mxu0  ;;  %v2195_v48 = vunpack.c.l.s8.bf16 %v1943_v36  ;;  %v1896_v36 = vld [vmem:[#allocation7 + $0x620] sm:$0xff] }
 0x34b   :  { %v1674_v59 = vpop.f32.mrf.mxu1 }
 0x34c   :  { %v1751_v60 = vmul.f32 %v1724_v40, %v1673_v7  ;;  %v1675_v43 = vadd.f32 %v1674_v59, %v1633_v58  ;;  %2577 = vmatpush1.bf16.msra.mxu0 %v2122_v51  ;;  %v1635_v47 = vpop.f32.mrf.mxu0  ;;  %v1933_v51 = vld [vmem:[#allocation7 + $0x748] sm:$0xff]  ;;  %v2026_v58 = vld [vmem:[#allocation7 + $0xa30] sm:$0xff] }
 0x34d   :  { %v1676_v63 = vpop.f32.mrf.mxu1  ;;  %2578 = vmatprep.subr.bf16.mxu0 %v2111_v55  ;;  %v2185_v7 = vunpack.c.h.s8.bf16 %v1933_v51 }
 0x34e   :  { %v1825_v30 = vadd.f32 %v1798_v57, %v1751_v60  ;;  %v1752_v0 = vmul.f32 %v1728_v8, %v1675_v43  ;;  %v1636_v1 = vpop.f32.mrf.mxu0  ;;  %v1932_v8 = vld [vmem:[#allocation7 + $0x740] sm:$0xff]  ;;  %v2374_v43 = vunpack.c.h.s8.bf16 %v2026_v58  ;;  %v2173_v63 = vunpack.c.l.s8.bf16 %v1933_v51 }
 0x34f   :  { %v1677_v2 = vpop.f32.mrf.mxu1  ;;  %v2172_v1 = vunpack.c.l.s8.bf16 %v1932_v8 }
 0x350   :  { %v3573_v25 = vmul.f32 -1.442695, %v1825_v30  ;;  %v1826_v39 = vadd.f32 %v1802_v61, %v1752_v0  ;;  %2579 = vmatpush1.bf16.msra.mxu0 %v2110_v62  ;;  %v2184_v61 = vunpack.c.h.s8.bf16 %v1932_v8  ;;  %v2363_v62 = vunpack.c.l.s8.bf16 %v4206_v49  ;;  %v1921_v30 = vld [vmem:[#allocation7 + $0x6e8] sm:$0xff] }
 0x351   :  { %2580 = vmatprep.subr.bf16.mxu0 %v2099_v20  ;;  %v2015_v20 = vld [vmem:[#allocation7 + $0x9d8] sm:$0xff]  ;;  %v2362_v0 = vunpack.c.l.s8.bf16 %v2026_v58  ;;  %v2161_v2 = vunpack.c.h.s8.bf16 %v1921_v30  ;;  %v2149_v4 = vunpack.c.l.s8.bf16 %v1921_v30 }
 0x352   :  { %3787 = vpow2.f32 %v3573_v25  ;;  %v3574_v42 = vmul.f32 -1.442695, %v1826_v39  ;;  %v2351_v50 = vunpack.c.h.s8.bf16 %v2015_v20  ;;  %v2014_v25 = vld [vmem:[#allocation7 + $0x9d0] sm:$0xff]  ;;  %v1920_v39 = vld [vmem:[#allocation7 + $0x6e0] sm:$0xff] }
 0x353   :  { %v2350_v49 = vunpack.c.h.s8.bf16 %v2014_v25  ;;  %v2148_v33 = vunpack.c.l.s8.bf16 %v1920_v39 }
 0x354   :  { %3789 = vpow2.f32 %v3574_v42  ;;  %2581 = vmatpush1.bf16.msra.mxu0 %v2098_v53  ;;  %v2160_v53 = vunpack.c.h.s8.bf16 %v1920_v39  ;;  %v2003_v42 = vld [vmem:[#allocation7 + $0x978] sm:$0xff] }
 0x355   :  { %2582 = vmatprep.subr.bf16.mxu0 %v2279_v3  ;;  %3791 = vtanh.f32 %v4202_v13  ;;  %v2206_v13 = vunpack.c.h.s8.bf16 %v1942_v46  ;;  %v2339_v3 = vunpack.c.l.s8.bf16 %v2015_v20 }
 0x358   :  { %2583 = vmatpush2.bf16.msra.mxu0 %v2278_v5  ;;  %v1909_v5 = vld [vmem:[#allocation7 + $0x688] sm:$0xff] }
 0x359   :  { %2584 = vmatprep.subr.bf16.mxu0 %v2267_v6  ;;  %v2338_v6 = vunpack.c.l.s8.bf16 %v2014_v25 }
 0x35c   :  { %2585 = vmatpush2.bf16.msra.mxu0 %v2266_v9  ;;  %v2327_v9 = vunpack.c.h.s8.bf16 %v2003_v42 }
 0x35d   :  { %2586 = vmatprep.subr.bf16.mxu0 %v2255_v10  ;;  %v2137_v10 = vunpack.c.h.s8.bf16 %v1909_v5 }
 0x35f   :  { %v3788_v28 = vpop.eup %3787 }
 0x360   :  { %v1869_v34 = vadd.f32 1.0, %v3788_v28  ;;  %2587 = vmatpush2.bf16.msra.mxu0 %v2254_v12  ;;  %v1908_v12 = vld [vmem:[#allocation7 + $0x680] sm:$0xff]  ;;  %v2315_v28 = vunpack.c.l.s8.bf16 %v2003_v42 }
 0x361   :  { %v3790_v27 = vpop.eup %3789  ;;  %2588 = vmatprep.subr.bf16.mxu0 %v2243_v15  ;;  %v2326_v15 = vunpack.c.h.s8.bf16 %v2002_v11  ;;  %v2136_v24 = vunpack.c.h.s8.bf16 %v1908_v12  ;;  %v2124_v31 = vunpack.c.l.s8.bf16 %v1908_v12 }
 0x362   :  { %3793 = vrcp.f32 %v1869_v34  ;;  %v1870_v32 = vadd.f32 1.0, %v3790_v27  ;;  %v3792_v40 = vpop.eup %3791  ;;  %v2125_v34 = vunpack.c.l.s8.bf16 %v1909_v5  ;;  %v1897_v27 = vld [vmem:[#allocation7 + $0x628] sm:$0xff] }
 0x363   :  { %3795 = vtanh.f32 %v4204_v17  ;;  %v2194_v17 = vunpack.c.l.s8.bf16 %v1942_v46 }
 0x364   :  { %3797 = vrcp.f32 %v1870_v32  ;;  %2589 = vmatpush2.bf16.msra.mxu0 %v2242_v26  ;;  %v1991_v26 = vld [vmem:[#allocation7 + $0x918] sm:$0xff] }
 0x365   :  { %2590 = vmatprep.subr.bf16.mxu0 %v2231_v29  ;;  %v2314_v29 = vunpack.c.l.s8.bf16 %v2002_v11  ;;  %v2303_v32 = vunpack.c.h.s8.bf16 %v1991_v26  ;;  %v2291_v46 = vunpack.c.l.s8.bf16 %v1991_v26 }
 0x368   :  { %2591 = vmatpush2.bf16.msra.mxu0 %v2230_v35  ;;  %v2113_v35 = vunpack.c.h.s8.bf16 %v1897_v27 }
 0x369   :  { %2592 = vmatprep.subr.bf16.mxu0 %v2219_v16  ;;  %v1990_v16 = vld [vmem:[#allocation7 + $0x910] sm:$0xff] }
 0x36a   :  { %v2290_v51 = vunpack.c.l.s8.bf16 %v1990_v16 }
 0x36c   :  { %2593 = vmatpush2.bf16.msra.mxu0 %v2218_v38  ;;  %v2302_v38 = vunpack.c.h.s8.bf16 %v1990_v16 }
 0x36d   :  { %2594 = vmatprep.subr.bf16.mxu0 %v2207_v41  ;;  %v2112_v41 = vunpack.c.h.s8.bf16 %v1896_v36 }
 0x36f   :  { %v3794_v54 = vpop.eup %3793 }
 0x370   :  { %v3796_v55 = vpop.eup %3795  ;;  %2595 = vmatpush2.bf16.msra.mxu0 %v2206_v13  ;;  %v1889_v57 = vmul.f32 %v3794_v54, %v3792_v40  ;;  %v2101_v13 = vunpack.c.l.s8.bf16 %v1897_v27  ;;  %v1981_v40 = vld [vmem:[#allocation7 + $0x8c8] sm:$0xff]  ;;  %v2100_v54 = vunpack.c.l.s8.bf16 %v1896_v36 }
 0x371   :  { %v3798_v56 = vpop.eup %3797  ;;  %2596 = vmatprep.subr.bf16.mxu0 %v2195_v48  ;;  %v2075_v48 = vld [vmem:[#allocation7 + $0xbb8] sm:$0xff] }
 0x372   :  { %v1890_v59 = vmul.f32 %v3798_v56, %v3796_v55  ;;  %v4243_v47 = vpack.c.bf16 %v1889_v57, %v1889_v57  ;;  %v2471_v55 = vunpack.c.h.s8.bf16 %v2075_v48  ;;  %v2074_v56 = vld [vmem:[#allocation7 + $0xbb0] sm:$0xff]  ;;  %v2459_v8 = vunpack.c.l.s8.bf16 %v2075_v48 }
 0x373   :  { %v2470_v57 = vunpack.c.h.s8.bf16 %v2074_v56 }
 0x374   :  { %2597 = vmatpush2.bf16.msra.mxu0 %v2194_v17  ;;  %v4241_v60 = vpack.c.bf16 %v1890_v59, %v1890_v59  ;;  %v2281_v17 = vunpack.c.h.s8.bf16 %v1981_v40  ;;  %v2269_v59 = vunpack.c.l.s8.bf16 %v1981_v40 }
 0x375   :  { %2648 = vmatprep.subr.bf16.mxu0 %v2185_v7  ;;  %v1980_v7 = vld [vmem:[#allocation7 + $0x8c0] sm:$0xff] }
 0x376   :  { %2557 = vmatprep.mubr.bf16.mxu1 %v4241_v60  ;;  %v2280_v58 = vunpack.c.h.s8.bf16 %v1980_v7 }
 0x377   :  { %2599 = vmatmul.mubr.bf16.vlgmr.msra.gmra.mxu0 %v4225_v23  ;;  %2558 = vmatmul.mubr.bf16.vlgmr.msra.gmra.mxu1 %v4243_v47 }
 0x378   :  { %2608 = vmatpush1.bf16.msra.mxu1 %v2374_v43  ;;  %2649 = vmatpush1.bf16.msra.mxu0 %v2184_v61  ;;  %v2063_v43 = vld [vmem:[#allocation7 + $0xb58] sm:$0xff]  ;;  %v1969_v61 = vld [vmem:[#allocation7 + $0x868] sm:$0xff] }
 0x379   :  { %2680 = vmatprep.mubr.bf16.mxu0 %v4223_v14  ;;  %2639 = vmatprep.mubr.bf16.mxu1 %v4241_v60  ;;  %v2447_v20 = vunpack.c.h.s8.bf16 %v2063_v43  ;;  %v2257_v30 = vunpack.c.h.s8.bf16 %v1969_v61  ;;  %v2435_v25 = vunpack.c.l.s8.bf16 %v2063_v43  ;;  %v2245_v39 = vunpack.c.l.s8.bf16 %v1969_v61  ;;  %v2016_v61 = vld [vmem:[#allocation7 + $0x9e0] sm:$0xff] }
 0x37a   :  { %2609 = vmatprep.subr.bf16.mxu1 %v2363_v62  ;;  %2650 = vmatprep.subr.bf16.mxu0 %v2173_v63  ;;  %v2458_v62 = vunpack.c.l.s8.bf16 %v2074_v56  ;;  %v2268_v63 = vunpack.c.l.s8.bf16 %v1980_v7 }
 0x37c   :  { %2610 = vmatpush1.bf16.msra.mxu1 %v2362_v0  ;;  %2651 = vmatpush1.bf16.msra.mxu0 %v2172_v1  ;;  %v2062_v0 = vld [vmem:[#allocation7 + $0xb50] sm:$0xff]  ;;  %v1968_v1 = vld [vmem:[#allocation7 + $0x860] sm:$0xff] }
 0x37d   :  { %2611 = vmatprep.subr.bf16.mxu1 %v2351_v50  ;;  %2652 = vmatprep.subr.bf16.mxu0 %v2161_v2  ;;  %v2446_v50 = vunpack.c.h.s8.bf16 %v2062_v0  ;;  %v2256_v2 = vunpack.c.h.s8.bf16 %v1968_v1 }
 0x380   :  { %2612 = vmatpush1.bf16.msra.mxu1 %v2350_v49  ;;  %2653 = vmatpush1.bf16.msra.mxu0 %v2160_v53  ;;  %v2051_v49 = vld [vmem:[#allocation7 + $0xaf8] sm:$0xff]  ;;  %v1957_v53 = vld [vmem:[#allocation7 + $0x808] sm:$0xff] }
 0x381   :  { %2613 = vmatprep.subr.bf16.mxu1 %v2339_v3  ;;  %2654 = vmatprep.subr.bf16.mxu0 %v2149_v4  ;;  %v2434_v3 = vunpack.c.l.s8.bf16 %v2062_v0  ;;  %v2244_v4 = vunpack.c.l.s8.bf16 %v1968_v1  ;;  %v2423_v42 = vunpack.c.h.s8.bf16 %v2051_v49  ;;  %v2233_v5 = vunpack.c.h.s8.bf16 %v1957_v53 }
 0x382   :  { %v2411_v11 = vunpack.c.l.s8.bf16 %v2051_v49  ;;  %v2221_v12 = vunpack.c.l.s8.bf16 %v1957_v53  ;;  %v2004_v53 = vld [vmem:[#allocation7 + $0x980] sm:$0xff] }
 0x384   :  { %2614 = vmatpush1.bf16.msra.mxu1 %v2338_v6  ;;  %2655 = vmatpush1.bf16.msra.mxu0 %v2148_v33  ;;  %v2050_v6 = vld [vmem:[#allocation7 + $0xaf0] sm:$0xff]  ;;  %v1956_v33 = vld [vmem:[#allocation7 + $0x800] sm:$0xff] }
 0x385   :  { %2615 = vmatprep.subr.bf16.mxu1 %v2327_v9  ;;  %2656 = vmatprep.subr.bf16.mxu0 %v2137_v10  ;;  %v2422_v9 = vunpack.c.h.s8.bf16 %v2050_v6  ;;  %v2232_v10 = vunpack.c.h.s8.bf16 %v1956_v33 }
 0x388   :  { %2616 = vmatpush1.bf16.msra.mxu1 %v2326_v15  ;;  %2657 = vmatpush1.bf16.msra.mxu0 %v2136_v24  ;;  %v2039_v15 = vld [vmem:[#allocation7 + $0xa98] sm:$0xff]  ;;  %v1945_v24 = vld [vmem:[#allocation7 + $0x7a8] sm:$0xff] }
 0x389   :  { %2617 = vmatprep.subr.bf16.mxu1 %v2315_v28  ;;  %2658 = vmatprep.subr.bf16.mxu0 %v2125_v34  ;;  %v2410_v28 = vunpack.c.l.s8.bf16 %v2050_v6  ;;  %v2220_v34 = vunpack.c.l.s8.bf16 %v1956_v33  ;;  %v2399_v26 = vunpack.c.h.s8.bf16 %v2039_v15  ;;  %v2209_v27 = vunpack.c.h.s8.bf16 %v1945_v24 }
 0x38a   :  { %v2387_v16 = vunpack.c.l.s8.bf16 %v2039_v15  ;;  %v2197_v36 = vunpack.c.l.s8.bf16 %v1945_v24  ;;  %v1992_v24 = vld [vmem:[#allocation7 + $0x920] sm:$0xff] }
 0x38c   :  { %2618 = vmatpush1.bf16.msra.mxu1 %v2314_v29  ;;  %2659 = vmatpush1.bf16.msra.mxu0 %v2124_v31  ;;  %v2038_v29 = vld [vmem:[#allocation7 + $0xa90] sm:$0xff]  ;;  %v1944_v31 = vld [vmem:[#allocation7 + $0x7a0] sm:$0xff] }
 0x38d   :  { %2619 = vmatprep.subr.bf16.mxu1 %v2303_v32  ;;  %2660 = vmatprep.subr.bf16.mxu0 %v2113_v35  ;;  %v2398_v32 = vunpack.c.h.s8.bf16 %v2038_v29  ;;  %v2208_v35 = vunpack.c.h.s8.bf16 %v1944_v31 }
 0x390   :  { %2620 = vmatpush1.bf16.msra.mxu1 %v2302_v38  ;;  %2661 = vmatpush1.bf16.msra.mxu0 %v2112_v41  ;;  %v2029_v38 = vld [vmem:[#allocation7 + $0xa48] sm:$0xff]  ;;  %v1935_v41 = vld [vmem:[#allocation7 + $0x758] sm:$0xff] }
 0x391   :  { %2621 = vmatprep.subr.bf16.mxu1 %v2291_v46  ;;  %2662 = vmatprep.subr.bf16.mxu0 %v2101_v13  ;;  %v2386_v46 = vunpack.c.l.s8.bf16 %v2038_v29  ;;  %v2196_v13 = vunpack.c.l.s8.bf16 %v1944_v31  ;;  %v2377_v48 = vunpack.c.h.s8.bf16 %v2029_v38  ;;  %v2187_v40 = vunpack.c.h.s8.bf16 %v1935_v41 }
 0x392   :  { %v2365_v56 = vunpack.c.l.s8.bf16 %v2029_v38  ;;  %v2175_v7 = vunpack.c.l.s8.bf16 %v1935_v41  ;;  %v2076_v41 = vld [vmem:[#allocation7 + $0xbc0] sm:$0xff] }
 0x394   :  { %2622 = vmatpush1.bf16.msra.mxu1 %v2290_v51  ;;  %2663 = vmatpush1.bf16.msra.mxu0 %v2100_v54  ;;  %v2028_v51 = vld [vmem:[#allocation7 + $0xa40] sm:$0xff]  ;;  %v1934_v54 = vld [vmem:[#allocation7 + $0x750] sm:$0xff] }
 0x395   :  { %2623 = vmatprep.subr.bf16.mxu1 %v2471_v55  ;;  %2664 = vmatprep.subr.bf16.mxu0 %v2281_v17  ;;  %v2376_v55 = vunpack.c.h.s8.bf16 %v2028_v51  ;;  %v2186_v17 = vunpack.c.h.s8.bf16 %v1934_v54 }
 0x398   :  { %2624 = vmatpush2.bf16.msra.mxu1 %v2470_v57  ;;  %2665 = vmatpush2.bf16.msra.mxu0 %v2280_v58  ;;  %v2017_v57 = vld [vmem:[#allocation7 + $0x9e8] sm:$0xff]  ;;  %v1923_v58 = vld [vmem:[#allocation7 + $0x6f8] sm:$0xff] }
 0x399   :  { %2625 = vmatprep.subr.bf16.mxu1 %v2459_v8  ;;  %2666 = vmatprep.subr.bf16.mxu0 %v2269_v59  ;;  %v2364_v8 = vunpack.c.l.s8.bf16 %v2028_v51  ;;  %v2174_v59 = vunpack.c.l.s8.bf16 %v1934_v54  ;;  %v2353_v43 = vunpack.c.h.s8.bf16 %v2017_v57  ;;  %v2341_v0 = vunpack.c.l.s8.bf16 %v2017_v57 }
 0x39a   :  { %v2151_v1 = vunpack.c.l.s8.bf16 %v1923_v58 }
 0x39c   :  { %2626 = vmatpush2.bf16.msra.mxu1 %v2458_v62  ;;  %2667 = vmatpush2.bf16.msra.mxu0 %v2268_v63  ;;  %v2163_v62 = vunpack.c.h.s8.bf16 %v1923_v58  ;;  %v1922_v63 = vld [vmem:[#allocation7 + $0x6f0] sm:$0xff]  ;;  %v2064_v58 = vld [vmem:[#allocation7 + $0xb60] sm:$0xff] }
 0x39d   :  { %2627 = vmatprep.subr.bf16.mxu1 %v2447_v20  ;;  %2668 = vmatprep.subr.bf16.mxu0 %v2257_v30  ;;  %v2352_v20 = vunpack.c.h.s8.bf16 %v2016_v61  ;;  %v2162_v30 = vunpack.c.h.s8.bf16 %v1922_v63 }
 0x3a0   :  { %2628 = vmatpush2.bf16.msra.mxu1 %v2446_v50  ;;  %2669 = vmatpush2.bf16.msra.mxu0 %v2256_v2  ;;  %v2005_v50 = vld [vmem:[#allocation7 + $0x988] sm:$0xff]  ;;  %v1911_v2 = vld [vmem:[#allocation7 + $0x698] sm:$0xff] }
 0x3a1   :  { %2629 = vmatprep.subr.bf16.mxu1 %v2435_v25  ;;  %2670 = vmatprep.subr.bf16.mxu0 %v2245_v39  ;;  %v2340_v25 = vunpack.c.l.s8.bf16 %v2016_v61  ;;  %v2150_v39 = vunpack.c.l.s8.bf16 %v1922_v63  ;;  %v2329_v49 = vunpack.c.h.s8.bf16 %v2005_v50  ;;  %v2317_v6 = vunpack.c.l.s8.bf16 %v2005_v50 }
 0x3a2   :  { %v2127_v33 = vunpack.c.l.s8.bf16 %v1911_v2 }
 0x3a4   :  { %2630 = vmatpush2.bf16.msra.mxu1 %v2434_v3  ;;  %2671 = vmatpush2.bf16.msra.mxu0 %v2244_v4  ;;  %v2139_v3 = vunpack.c.h.s8.bf16 %v1911_v2  ;;  %v1910_v4 = vld [vmem:[#allocation7 + $0x690] sm:$0xff]  ;;  %v2052_v2 = vld [vmem:[#allocation7 + $0xb00] sm:$0xff] }
 0x3a5   :  { %2631 = vmatprep.subr.bf16.mxu1 %v2423_v42  ;;  %2672 = vmatprep.subr.bf16.mxu0 %v2233_v5  ;;  %v2328_v42 = vunpack.c.h.s8.bf16 %v2004_v53  ;;  %v2138_v5 = vunpack.c.h.s8.bf16 %v1910_v4 }
 0x3a8   :  { %2632 = vmatpush2.bf16.msra.mxu1 %v2422_v9  ;;  %2673 = vmatpush2.bf16.msra.mxu0 %v2232_v10  ;;  %v1993_v9 = vld [vmem:[#allocation7 + $0x928] sm:$0xff]  ;;  %v1899_v10 = vld [vmem:[#allocation7 + $0x638] sm:$0xff] }
 0x3a9   :  { %2633 = vmatprep.subr.bf16.mxu1 %v2411_v11  ;;  %2674 = vmatprep.subr.bf16.mxu0 %v2221_v12  ;;  %v2316_v11 = vunpack.c.l.s8.bf16 %v2004_v53  ;;  %v2126_v12 = vunpack.c.l.s8.bf16 %v1910_v4  ;;  %v2305_v15 = vunpack.c.h.s8.bf16 %v1993_v9  ;;  %v2293_v29 = vunpack.c.l.s8.bf16 %v1993_v9 }
 0x3aa   :  { %v2103_v31 = vunpack.c.l.s8.bf16 %v1899_v10 }
 0x3ac   :  { %2634 = vmatpush2.bf16.msra.mxu1 %v2410_v28  ;;  %2675 = vmatpush2.bf16.msra.mxu0 %v2220_v34  ;;  %v2115_v28 = vunpack.c.h.s8.bf16 %v1899_v10  ;;  %v1898_v34 = vld [vmem:[#allocation7 + $0x630] sm:$0xff]  ;;  %v2040_v10 = vld [vmem:[#allocation7 + $0xaa0] sm:$0xff] }
 0x3ad   :  { %2635 = vmatprep.subr.bf16.mxu1 %v2399_v26  ;;  %2676 = vmatprep.subr.bf16.mxu0 %v2209_v27  ;;  %v2304_v26 = vunpack.c.h.s8.bf16 %v1992_v24  ;;  %v2114_v27 = vunpack.c.h.s8.bf16 %v1898_v34 }
 0x3b0   :  { %2636 = vmatpush2.bf16.msra.mxu1 %v2398_v32  ;;  %2677 = vmatpush2.bf16.msra.mxu0 %v2208_v35  ;;  %v2077_v32 = vld [vmem:[#allocation7 + $0xbc8] sm:$0xff]  ;;  %v1983_v35 = vld [vmem:[#allocation7 + $0x8d8] sm:$0xff] }
 0x3b1   :  { %2637 = vmatprep.subr.bf16.mxu1 %v2387_v16  ;;  %2678 = vmatprep.subr.bf16.mxu0 %v2197_v36  ;;  %v2292_v16 = vunpack.c.l.s8.bf16 %v1992_v24  ;;  %v2102_v36 = vunpack.c.l.s8.bf16 %v1898_v34  ;;  %v2473_v38 = vunpack.c.h.s8.bf16 %v2077_v32  ;;  %v2461_v51 = vunpack.c.l.s8.bf16 %v2077_v32 }
 0x3b2   :  { %v2271_v54 = vunpack.c.l.s8.bf16 %v1983_v35 }
 0x3b4   :  { %2638 = vmatpush2.bf16.msra.mxu1 %v2386_v46  ;;  %2679 = vmatpush2.bf16.msra.mxu0 %v2196_v13  ;;  %v2283_v46 = vunpack.c.h.s8.bf16 %v1983_v35  ;;  %v1982_v13 = vld [vmem:[#allocation7 + $0x8d0] sm:$0xff] }
 0x3b5   :  { %2689 = vmatprep.subr.bf16.mxu1 %v2377_v48  ;;  %2730 = vmatprep.subr.bf16.mxu0 %v2187_v40  ;;  %v2472_v48 = vunpack.c.h.s8.bf16 %v2076_v41  ;;  %v2282_v40 = vunpack.c.h.s8.bf16 %v1982_v13  ;;  %v2030_v35 = vld [vmem:[#allocation7 + $0xa50] sm:$0xff] }
 0x3b7   :  { %2640 = vmatmul.mubr.bf16.vlgmr.msra.gmra.mxu1 %v4243_v47  ;;  %2681 = vmatmul.mubr.bf16.vlgmr.msra.gmra.mxu0 %v4225_v23 }
 0x3b8   :  { %2690 = vmatpush1.bf16.msra.mxu1 %v2376_v55  ;;  %2721 = vmatprep.mubr.bf16.mxu1 %v4241_v60  ;;  %v2065_v55 = vld [vmem:[#allocation7 + $0xb68] sm:$0xff] }
 0x3b9   :  { %2731 = vmatpush1.bf16.msra.mxu0 %v2186_v17  ;;  %2762 = vmatprep.mubr.bf16.mxu0 %v4223_v14  ;;  %v1971_v17 = vld [vmem:[#allocation7 + $0x878] sm:$0xff]  ;;  %v2449_v57 = vunpack.c.h.s8.bf16 %v2065_v55 }
 0x3ba   :  { %2691 = vmatprep.subr.bf16.mxu1 %v2365_v56  ;;  %2732 = vmatprep.subr.bf16.mxu0 %v2175_v7  ;;  %v2460_v56 = vunpack.c.l.s8.bf16 %v2076_v41  ;;  %v2270_v7 = vunpack.c.l.s8.bf16 %v1982_v13  ;;  %v2247_v63 = vunpack.c.l.s8.bf16 %v1971_v17  ;;  %v2019_v13 = vld [vmem:[#allocation7 + $0x9f8] sm:$0xff] }
 0x3bc   :  { %2692 = vmatpush1.bf16.msra.mxu1 %v2364_v8  ;;  %v2259_v8 = vunpack.c.h.s8.bf16 %v1971_v17 }
 0x3bd   :  { %2733 = vmatpush1.bf16.msra.mxu0 %v2174_v59  ;;  %2693 = vmatprep.subr.bf16.mxu1 %v2353_v43  ;;  %v1970_v59 = vld [vmem:[#allocation7 + $0x870] sm:$0xff]  ;;  %v2448_v43 = vunpack.c.h.s8.bf16 %v2064_v58 }
 0x3be   :  { %2734 = vmatprep.subr.bf16.mxu0 %v2163_v62  ;;  %v2258_v61 = vunpack.c.h.s8.bf16 %v1970_v59  ;;  %v2437_v62 = vunpack.c.l.s8.bf16 %v2065_v55 }
 0x3c0   :  { %2694 = vmatpush1.bf16.msra.mxu1 %v2352_v20  ;;  %v2053_v20 = vld [vmem:[#allocation7 + $0xb08] sm:$0xff] }
 0x3c1   :  { %2735 = vmatpush1.bf16.msra.mxu0 %v2162_v30  ;;  %2695 = vmatprep.subr.bf16.mxu1 %v2341_v0  ;;  %v1959_v30 = vld [vmem:[#allocation7 + $0x818] sm:$0xff]  ;;  %v2436_v0 = vunpack.c.l.s8.bf16 %v2064_v58  ;;  %v2425_v50 = vunpack.c.h.s8.bf16 %v2053_v20  ;;  %v1924_v58 = vld [vmem:[#allocation7 + $0x700] sm:$0xff] }
 0x3c2   :  { %2736 = vmatprep.subr.bf16.mxu0 %v2151_v1  ;;  %v2246_v1 = vunpack.c.l.s8.bf16 %v1970_v59  ;;  %v2223_v4 = vunpack.c.l.s8.bf16 %v1959_v30 }
 0x3c4   :  { %2696 = vmatpush1.bf16.msra.mxu1 %v2340_v25  ;;  %v2235_v25 = vunpack.c.h.s8.bf16 %v1959_v30  ;;  %v1913_v30 = vld [vmem:[#allocation7 + $0x6a8] sm:$0xff] }
 0x3c5   :  { %2737 = vmatpush1.bf16.msra.mxu0 %v2150_v39  ;;  %2697 = vmatprep.subr.bf16.mxu1 %v2329_v49  ;;  %v1958_v39 = vld [vmem:[#allocation7 + $0x810] sm:$0xff]  ;;  %v2424_v49 = vunpack.c.h.s8.bf16 %v2052_v2 }
 0x3c6   :  { %2738 = vmatprep.subr.bf16.mxu0 %v2139_v3  ;;  %v2234_v53 = vunpack.c.h.s8.bf16 %v1958_v39  ;;  %v2413_v3 = vunpack.c.l.s8.bf16 %v2053_v20  ;;  %v2007_v20 = vld [vmem:[#allocation7 + $0x998] sm:$0xff] }
 0x3c8   :  { %2698 = vmatpush1.bf16.msra.mxu1 %v2328_v42  ;;  %v2041_v42 = vld [vmem:[#allocation7 + $0xaa8] sm:$0xff] }
 0x3c9   :  { %2739 = vmatpush1.bf16.msra.mxu0 %v2138_v5  ;;  %2699 = vmatprep.subr.bf16.mxu1 %v2317_v6  ;;  %v1947_v5 = vld [vmem:[#allocation7 + $0x7b8] sm:$0xff]  ;;  %v2412_v6 = vunpack.c.l.s8.bf16 %v2052_v2  ;;  %v2401_v9 = vunpack.c.h.s8.bf16 %v2041_v42  ;;  %v2006_v2 = vld [vmem:[#allocation7 + $0x990] sm:$0xff] }
 0x3ca   :  { %2740 = vmatprep.subr.bf16.mxu0 %v2127_v33  ;;  %v2222_v33 = vunpack.c.l.s8.bf16 %v1958_v39  ;;  %v2199_v34 = vunpack.c.l.s8.bf16 %v1947_v5  ;;  %v1912_v39 = vld [vmem:[#allocation7 + $0x6a0] sm:$0xff] }
 0x3cc   :  { %2700 = vmatpush1.bf16.msra.mxu1 %v2316_v11  ;;  %v2211_v11 = vunpack.c.h.s8.bf16 %v1947_v5  ;;  %v1901_v5 = vld [vmem:[#allocation7 + $0x648] sm:$0xff] }
 0x3cd   :  { %2741 = vmatpush1.bf16.msra.mxu0 %v2126_v12  ;;  %2701 = vmatprep.subr.bf16.mxu1 %v2305_v15  ;;  %v1946_v12 = vld [vmem:[#allocation7 + $0x7b0] sm:$0xff]  ;;  %v2400_v15 = vunpack.c.h.s8.bf16 %v2040_v10 }
 0x3ce   :  { %2742 = vmatprep.subr.bf16.mxu0 %v2115_v28  ;;  %v2210_v24 = vunpack.c.h.s8.bf16 %v1946_v12  ;;  %v2389_v28 = vunpack.c.l.s8.bf16 %v2041_v42  ;;  %v1995_v42 = vld [vmem:[#allocation7 + $0x938] sm:$0xff] }
 0x3d0   :  { %2702 = vmatpush1.bf16.msra.mxu1 %v2304_v26  ;;  %v2031_v26 = vld [vmem:[#allocation7 + $0xa58] sm:$0xff] }
 0x3d1   :  { %2743 = vmatpush1.bf16.msra.mxu0 %v2114_v27  ;;  %2703 = vmatprep.subr.bf16.mxu1 %v2293_v29  ;;  %v1937_v27 = vld [vmem:[#allocation7 + $0x768] sm:$0xff]  ;;  %v2388_v29 = vunpack.c.l.s8.bf16 %v2040_v10  ;;  %v2379_v32 = vunpack.c.h.s8.bf16 %v2031_v26  ;;  %v1994_v10 = vld [vmem:[#allocation7 + $0x930] sm:$0xff] }
 0x3d2   :  { %2744 = vmatprep.subr.bf16.mxu0 %v2103_v31  ;;  %v2198_v31 = vunpack.c.l.s8.bf16 %v1946_v12  ;;  %v1900_v12 = vld [vmem:[#allocation7 + $0x640] sm:$0xff] }
 0x3d4   :  { %2704 = vmatpush1.bf16.msra.mxu1 %v2292_v16  ;;  %v2189_v16 = vunpack.c.h.s8.bf16 %v1937_v27 }
 0x3d5   :  { %2745 = vmatpush1.bf16.msra.mxu0 %v2102_v36  ;;  %2705 = vmatprep.subr.bf16.mxu1 %v2473_v38  ;;  %v1936_v36 = vld [vmem:[#allocation7 + $0x760] sm:$0xff]  ;;  %v2378_v38 = vunpack.c.h.s8.bf16 %v2030_v35 }
 0x3d6   :  { %2746 = vmatprep.subr.bf16.mxu0 %v2283_v46  ;;  %v2188_v41 = vunpack.c.h.s8.bf16 %v1936_v36  ;;  %v2367_v46 = vunpack.c.l.s8.bf16 %v2031_v26  ;;  %v2176_v17 = vunpack.c.l.s8.bf16 %v1936_v36  ;;  %v2079_v26 = vld [vmem:[#allocation7 + $0xbd8] sm:$0xff]  ;;  %v1984_v36 = vld [vmem:[#allocation7 + $0x8e0] sm:$0xff] }
 0x3d8   :  { %2706 = vmatpush2.bf16.msra.mxu1 %v2472_v48 }
 0x3d9   :  { %2747 = vmatpush2.bf16.msra.mxu0 %v2282_v40  ;;  %2707 = vmatprep.subr.bf16.mxu1 %v2461_v51  ;;  %v2177_v40 = vunpack.c.l.s8.bf16 %v1937_v27  ;;  %v1925_v51 = vld [vmem:[#allocation7 + $0x708] sm:$0xff] }
 0x3da   :  { %2748 = vmatprep.subr.bf16.mxu0 %v2271_v54  ;;  %v2366_v54 = vunpack.c.l.s8.bf16 %v2030_v35  ;;  %v1985_v27 = vld [vmem:[#allocation7 + $0x8e8] sm:$0xff]  ;;  %v2078_v35 = vld [vmem:[#allocation7 + $0xbd0] sm:$0xff] }
 0x3dc   :  { %2708 = vmatpush2.bf16.msra.mxu1 %v2460_v56  ;;  %v2355_v56 = vunpack.c.h.s8.bf16 %v2019_v13 }
 0x3dd   :  { %2749 = vmatpush2.bf16.msra.mxu0 %v2270_v7  ;;  %2709 = vmatprep.subr.bf16.mxu1 %v2449_v57  ;;  %v2018_v7 = vld [vmem:[#allocation7 + $0x9f0] sm:$0xff]  ;;  %v2165_v57 = vunpack.c.h.s8.bf16 %v1925_v51 }
 0x3de   :  { %2750 = vmatprep.subr.bf16.mxu0 %v2259_v8  ;;  %v2354_v59 = vunpack.c.h.s8.bf16 %v2018_v7 }
 0x3e0   :  { %2710 = vmatpush2.bf16.msra.mxu1 %v2448_v43 }
 0x3e1   :  { %2751 = vmatpush2.bf16.msra.mxu0 %v2258_v61  ;;  %2711 = vmatprep.subr.bf16.mxu1 %v2437_v62  ;;  %v2164_v61 = vunpack.c.h.s8.bf16 %v1924_v58  ;;  %v2343_v62 = vunpack.c.l.s8.bf16 %v2019_v13  ;;  %v2273_v13 = vunpack.c.l.s8.bf16 %v1985_v27 }
 0x3e2   :  { %2752 = vmatprep.subr.bf16.mxu0 %v2247_v63  ;;  %v2153_v63 = vunpack.c.l.s8.bf16 %v1925_v51  ;;  %v1973_v51 = vld [vmem:[#allocation7 + $0x888] sm:$0xff] }
 0x3e4   :  { %2712 = vmatpush2.bf16.msra.mxu1 %v2436_v0  ;;  %v2342_v0 = vunpack.c.l.s8.bf16 %v2018_v7  ;;  %v2066_v7 = vld [vmem:[#allocation7 + $0xb70] sm:$0xff] }
 0x3e5   :  { %2753 = vmatpush2.bf16.msra.mxu0 %v2246_v1  ;;  %2713 = vmatprep.subr.bf16.mxu1 %v2425_v50  ;;  %v2152_v1 = vunpack.c.l.s8.bf16 %v1924_v58  ;;  %v2331_v50 = vunpack.c.h.s8.bf16 %v2007_v20  ;;  %v1972_v58 = vld [vmem:[#allocation7 + $0x880] sm:$0xff] }
 0x3e6   :  { %2754 = vmatprep.subr.bf16.mxu0 %v2235_v25  ;;  %v2141_v25 = vunpack.c.h.s8.bf16 %v1913_v30 }
 0x3e8   :  { %2714 = vmatpush2.bf16.msra.mxu1 %v2424_v49  ;;  %v2330_v49 = vunpack.c.h.s8.bf16 %v2006_v2 }
 0x3e9   :  { %2755 = vmatpush2.bf16.msra.mxu0 %v2234_v53  ;;  %2715 = vmatprep.subr.bf16.mxu1 %v2413_v3  ;;  %v2140_v53 = vunpack.c.h.s8.bf16 %v1912_v39  ;;  %v2319_v3 = vunpack.c.l.s8.bf16 %v2007_v20  ;;  %v2438_v20 = vunpack.c.l.s8.bf16 %v2066_v7 }
 0x3ea   :  { %2756 = vmatprep.subr.bf16.mxu0 %v2223_v4  ;;  %v2129_v4 = vunpack.c.l.s8.bf16 %v1913_v30  ;;  %v2248_v30 = vunpack.c.l.s8.bf16 %v1972_v58 }
 0x3ec   :  { %2716 = vmatpush2.bf16.msra.mxu1 %v2412_v6  ;;  %v2318_v6 = vunpack.c.l.s8.bf16 %v2006_v2  ;;  %v1960_v2 = vld [vmem:[#allocation7 + $0x820] sm:$0xff] }
 0x3ed   :  { %2757 = vmatpush2.bf16.msra.mxu0 %v2222_v33  ;;  %2717 = vmatprep.subr.bf16.mxu1 %v2401_v9  ;;  %v2128_v33 = vunpack.c.l.s8.bf16 %v1912_v39  ;;  %v2307_v9 = vunpack.c.h.s8.bf16 %v1995_v42  ;;  %v2236_v39 = vunpack.c.h.s8.bf16 %v1960_v2 }
 0x3ee   :  { %2758 = vmatprep.subr.bf16.mxu0 %v2211_v11  ;;  %v2117_v11 = vunpack.c.h.s8.bf16 %v1901_v5 }
 0x3f0   :  { %2718 = vmatpush2.bf16.msra.mxu1 %v2400_v15  ;;  %v2306_v15 = vunpack.c.h.s8.bf16 %v1994_v10 }
 0x3f1   :  { %2759 = vmatpush2.bf16.msra.mxu0 %v2210_v24  ;;  %2719 = vmatprep.subr.bf16.mxu1 %v2389_v28  ;;  %v2116_v24 = vunpack.c.h.s8.bf16 %v1900_v12  ;;  %v2295_v28 = vunpack.c.l.s8.bf16 %v1995_v42 }
 0x3f2   :  { %2760 = vmatprep.subr.bf16.mxu0 %v2199_v34  ;;  %v2105_v34 = vunpack.c.l.s8.bf16 %v1901_v5  ;;  %v2224_v5 = vunpack.c.l.s8.bf16 %v1960_v2  ;;  %v1915_v2 = vld [vmem:[#allocation7 + $0x6b8] sm:$0xff] }
 0x3f4   :  { %2720 = vmatpush2.bf16.msra.mxu1 %v2388_v29  ;;  %v2294_v29 = vunpack.c.l.s8.bf16 %v1994_v10  ;;  %v1948_v10 = vld [vmem:[#allocation7 + $0x7c0] sm:$0xff] }
 0x3f5   :  { %2761 = vmatpush2.bf16.msra.mxu0 %v2198_v31  ;;  %2771 = vmatprep.subr.bf16.mxu1 %v2379_v32  ;;  %v2104_v31 = vunpack.c.l.s8.bf16 %v1900_v12  ;;  %v2475_v32 = vunpack.c.h.s8.bf16 %v2079_v26  ;;  %v2212_v12 = vunpack.c.h.s8.bf16 %v1948_v10 }
 0x3f6   :  { %2812 = vmatprep.subr.bf16.mxu0 %v2189_v16  ;;  %v2285_v16 = vunpack.c.h.s8.bf16 %v1985_v27  ;;  %v2200_v27 = vunpack.c.l.s8.bf16 %v1948_v10 }
 0x3f7   :  { %2722 = vmatmul.mubr.bf16.vlgmr.msra.gmra.mxu1 %v4243_v47  ;;  %v4256_v48 = vpop.f32.mrf.mxu0 }
 0x3f8   :  { %2763 = vmatmul.mubr.bf16.vlgmr.msra.gmra.mxu0 %v4225_v23  ;;  %2772 = vmatpush1.bf16.msra.mxu1 %v2378_v38  ;;  %v2474_v38 = vunpack.c.h.s8.bf16 %v2078_v35 }
 0x3f9   :  { %2803 = vmatprep.mubr.bf16.mxu1 %v4241_v60  ;;  %2813 = vmatpush1.bf16.msra.mxu0 %v2188_v41  ;;  %v4260_v55 = vpop.f32.mrf.mxu0  ;;  %v2284_v41 = vunpack.c.h.s8.bf16 %v1984_v36 }
 0x3fa   :  { %2844 = vmatprep.mubr.bf16.mxu0 %v4223_v14  ;;  %2773 = vmatprep.subr.bf16.mxu1 %v2367_v46  ;;  %v2463_v46 = vunpack.c.l.s8.bf16 %v2079_v26 }
 0x3fb   :  { %2814 = vmatprep.subr.bf16.mxu0 %v2177_v40  ;;  %v2522_v8 = vpop.f32.mrf.mxu0  ;;  %v2067_v40 = vld [vmem:[#allocation7 + $0xb78] sm:$0xff] }
 0x3fc   :  { %2774 = vmatpush1.bf16.msra.mxu1 %v2366_v54  ;;  %v2462_v54 = vunpack.c.l.s8.bf16 %v2078_v35  ;;  %v2450_v8 = vunpack.c.h.s8.bf16 %v2066_v7  ;;  %v1938_v35 = vld [vmem:[#allocation7 + $0x770] sm:$0xff] }
 0x3fd   :  { %2815 = vmatpush1.bf16.msra.mxu0 %v2176_v17  ;;  %v2523_v43 = vpop.f32.mrf.mxu0  ;;  %2775 = vmatprep.subr.bf16.mxu1 %v2355_v56  ;;  %v2272_v17 = vunpack.c.l.s8.bf16 %v1984_v36  ;;  %v2451_v56 = vunpack.c.h.s8.bf16 %v2067_v40  ;;  %v2190_v36 = vunpack.c.h.s8.bf16 %v1938_v35 }
 0x3fe   :  { %2816 = vmatprep.subr.bf16.mxu0 %v2165_v57  ;;  %v2261_v57 = vunpack.c.h.s8.bf16 %v1973_v51  ;;  %v2439_v43 = vunpack.c.l.s8.bf16 %v2067_v40 }
 0x400   :  { %2776 = vmatpush1.bf16.msra.mxu1 %v2354_v59  ;;  %v2260_v59 = vunpack.c.h.s8.bf16 %v1972_v58 }
 0x401   :  { %2817 = vmatpush1.bf16.msra.mxu0 %v2164_v61  ;;  %2777 = vmatprep.subr.bf16.mxu1 %v2343_v62  ;;  %v2249_v61 = vunpack.c.l.s8.bf16 %v1973_v51  ;;  %v2055_v62 = vld [vmem:[#allocation7 + $0xb18] sm:$0xff] }
 0x402   :  { %2818 = vmatprep.subr.bf16.mxu0 %v2153_v63  ;;  %v1961_v63 = vld [vmem:[#allocation7 + $0x828] sm:$0xff]  ;;  %v1927_v51 = vld [vmem:[#allocation7 + $0x718] sm:$0xff] }
 0x404   :  { %2778 = vmatpush1.bf16.msra.mxu1 %v2342_v0  ;;  %v2427_v0 = vunpack.c.h.s8.bf16 %v2055_v62 }
 0x405   :  { %2819 = vmatpush1.bf16.msra.mxu0 %v2152_v1  ;;  %2779 = vmatprep.subr.bf16.mxu1 %v2331_v50  ;;  %v2054_v1 = vld [vmem:[#allocation7 + $0xb10] sm:$0xff]  ;;  %v2237_v50 = vunpack.c.h.s8.bf16 %v1961_v63 }
 0x406   :  { %2820 = vmatprep.subr.bf16.mxu0 %v2141_v25  ;;  %v2426_v25 = vunpack.c.h.s8.bf16 %v2054_v1  ;;  %v2414_v42 = vunpack.c.l.s8.bf16 %v2054_v1 }
 0x408   :  { %2780 = vmatpush1.bf16.msra.mxu1 %v2330_v49  ;;  %v2415_v49 = vunpack.c.l.s8.bf16 %v2055_v62 }
 0x409   :  { %2821 = vmatpush1.bf16.msra.mxu0 %v2140_v53  ;;  %2781 = vmatprep.subr.bf16.mxu1 %v2319_v3  ;;  %v2225_v53 = vunpack.c.l.s8.bf16 %v1961_v63  ;;  %v2043_v3 = vld [vmem:[#allocation7 + $0xab8] sm:$0xff] }
 0x40a   :  { %2822 = vmatprep.subr.bf16.mxu0 %v2129_v4  ;;  %v1949_v4 = vld [vmem:[#allocation7 + $0x7c8] sm:$0xff] }
 0x40c   :  { %2782 = vmatpush1.bf16.msra.mxu1 %v2318_v6  ;;  %v2403_v6 = vunpack.c.h.s8.bf16 %v2043_v3 }
 0x40d   :  { %2823 = vmatpush1.bf16.msra.mxu0 %v2128_v33  ;;  %2783 = vmatprep.subr.bf16.mxu1 %v2307_v9  ;;  %v2042_v33 = vld [vmem:[#allocation7 + $0xab0] sm:$0xff]  ;;  %v2213_v9 = vunpack.c.h.s8.bf16 %v1949_v4 }
 0x40e   :  { %2824 = vmatprep.subr.bf16.mxu0 %v2117_v11  ;;  %v2402_v11 = vunpack.c.h.s8.bf16 %v2042_v33  ;;  %v2390_v26 = vunpack.c.l.s8.bf16 %v2042_v33  ;;  %v1997_v33 = vld [vmem:[#allocation7 + $0x948] sm:$0xff] }
 0x410   :  { %2784 = vmatpush1.bf16.msra.mxu1 %v2306_v15  ;;  %v2391_v15 = vunpack.c.l.s8.bf16 %v2043_v3  ;;  %v1914_v3 = vld [vmem:[#allocation7 + $0x6b0] sm:$0xff] }
 0x411   :  { %2825 = vmatpush1.bf16.msra.mxu0 %v2116_v24  ;;  %2785 = vmatprep.subr.bf16.mxu1 %v2295_v28  ;;  %v2201_v24 = vunpack.c.l.s8.bf16 %v1949_v4  ;;  %v2033_v28 = vld [vmem:[#allocation7 + $0xa68] sm:$0xff] }
 0x412   :  { %2826 = vmatprep.subr.bf16.mxu0 %v2105_v34  ;;  %v1939_v34 = vld [vmem:[#allocation7 + $0x778] sm:$0xff] }
 0x413   :  { %v2179_v40 = vunpack.c.l.s8.bf16 %v1939_v34 }
 0x414   :  { %2786 = vmatpush1.bf16.msra.mxu1 %v2294_v29  ;;  %v2381_v29 = vunpack.c.h.s8.bf16 %v2033_v28 }
 0x415   :  { %2827 = vmatpush1.bf16.msra.mxu0 %v2104_v31  ;;  %2787 = vmatprep.subr.bf16.mxu1 %v2475_v32  ;;  %v2032_v31 = vld [vmem:[#allocation7 + $0xa60] sm:$0xff]  ;;  %v2191_v32 = vunpack.c.h.s8.bf16 %v1939_v34 }
 0x416   :  { %2828 = vmatprep.subr.bf16.mxu0 %v2285_v16  ;;  %v2380_v16 = vunpack.c.h.s8.bf16 %v2032_v31 }
 0x418   :  { %2788 = vmatpush2.bf16.msra.mxu1 %v2474_v38  ;;  %v2369_v38 = vunpack.c.l.s8.bf16 %v2033_v28  ;;  %v1902_v28 = vld [vmem:[#allocation7 + $0x650] sm:$0xff] }
 0x419   :  { %2829 = vmatpush2.bf16.msra.mxu0 %v2284_v41  ;;  %2789 = vmatprep.subr.bf16.mxu1 %v2463_v46  ;;  %v2021_v41 = vld [vmem:[#allocation7 + $0xa08] sm:$0xff] }
 0x41a   :  { %2830 = vmatprep.subr.bf16.mxu0 %v2273_v13  ;;  %v2357_v58 = vunpack.c.h.s8.bf16 %v2021_v41  ;;  %v2345_v1 = vunpack.c.l.s8.bf16 %v2021_v41 }
 0x41c   :  { %2790 = vmatpush2.bf16.msra.mxu1 %v2462_v54 }
 0x41d   :  { %2831 = vmatpush2.bf16.msra.mxu0 %v2272_v17  ;;  %2791 = vmatprep.subr.bf16.mxu1 %v2451_v56  ;;  %v2368_v17 = vunpack.c.l.s8.bf16 %v2032_v31  ;;  %v2081_v31 = vld [vmem:[#allocation7 + $0xbe8] sm:$0xff] }
 0x41e   :  { %2832 = vmatprep.subr.bf16.mxu0 %v2261_v57  ;;  %v2178_v57 = vunpack.c.l.s8.bf16 %v1938_v35 }
 0x420   :  { %2792 = vmatpush2.bf16.msra.mxu1 %v2450_v8  ;;  %v2020_v8 = vld [vmem:[#allocation7 + $0xa00] sm:$0xff] }
 0x421   :  { %2833 = vmatpush2.bf16.msra.mxu0 %v2260_v59  ;;  %2793 = vmatprep.subr.bf16.mxu1 %v2439_v43  ;;  %v2167_v43 = vunpack.c.h.s8.bf16 %v1927_v51  ;;  %v2356_v63 = vunpack.c.h.s8.bf16 %v2020_v8 }
 0x422   :  { %2834 = vmatprep.subr.bf16.mxu0 %v2249_v61 }
 0x424   :  { %2794 = vmatpush2.bf16.msra.mxu1 %v2438_v20 }
 0x425   :  { %2835 = vmatpush2.bf16.msra.mxu0 %v2248_v30  ;;  %2795 = vmatprep.subr.bf16.mxu1 %v2427_v0 }
 0x426   :  { %2836 = vmatprep.subr.bf16.mxu0 %v2237_v50  ;;  %v2155_v50 = vunpack.c.l.s8.bf16 %v1927_v51 }
 0x428   :  { %2796 = vmatpush2.bf16.msra.mxu1 %v2426_v25 }
 0x429   :  { %2837 = vmatpush2.bf16.msra.mxu0 %v2236_v39  ;;  %2797 = vmatprep.subr.bf16.mxu1 %v2415_v49  ;;  %v2008_v49 = vld [vmem:[#allocation7 + $0x9a0] sm:$0xff] }
 0x42a   :  { %2838 = vmatprep.subr.bf16.mxu0 %v2225_v53  ;;  %v2143_v53 = vunpack.c.h.s8.bf16 %v1915_v2  ;;  %v2332_v4 = vunpack.c.h.s8.bf16 %v2008_v49  ;;  %v2320_v10 = vunpack.c.l.s8.bf16 %v2008_v49 }
 0x42c   :  { %2798 = vmatpush2.bf16.msra.mxu1 %v2414_v42  ;;  %v2142_v42 = vunpack.c.h.s8.bf16 %v1914_v3 }
 0x42d   :  { %2839 = vmatpush2.bf16.msra.mxu0 %v2224_v5  ;;  %2799 = vmatprep.subr.bf16.mxu1 %v2403_v6  ;;  %v2131_v6 = vunpack.c.l.s8.bf16 %v1915_v2 }
 0x42e   :  { %2840 = vmatprep.subr.bf16.mxu0 %v2213_v9  ;;  %v1903_v9 = vld [vmem:[#allocation7 + $0x658] sm:$0xff] }
 0x430   :  { %2800 = vmatpush2.bf16.msra.mxu1 %v2402_v11  ;;  %v2130_v11 = vunpack.c.l.s8.bf16 %v1914_v3 }
 0x431   :  { %2841 = vmatpush2.bf16.msra.mxu0 %v2212_v12  ;;  %2801 = vmatprep.subr.bf16.mxu1 %v2391_v15  ;;  %v2309_v12 = vunpack.c.h.s8.bf16 %v1997_v33  ;;  %v1996_v15 = vld [vmem:[#allocation7 + $0x940] sm:$0xff] }
 0x432   :  { %2842 = vmatprep.subr.bf16.mxu0 %v2201_v24  ;;  %v2119_v24 = vunpack.c.h.s8.bf16 %v1903_v9  ;;  %v2308_v34 = vunpack.c.h.s8.bf16 %v1996_v15  ;;  %v2296_v35 = vunpack.c.l.s8.bf16 %v1996_v15 }
 0x434   :  { %2802 = vmatpush2.bf16.msra.mxu1 %v2390_v26  ;;  %v2118_v26 = vunpack.c.h.s8.bf16 %v1902_v28 }
 0x435   :  { %2843 = vmatpush2.bf16.msra.mxu0 %v2200_v27  ;;  %2853 = vmatprep.subr.bf16.mxu1 %v2381_v29  ;;  %v2297_v27 = vunpack.c.l.s8.bf16 %v1997_v33  ;;  %v2107_v29 = vunpack.c.l.s8.bf16 %v1903_v9  ;;  %v1951_v33 = vld [vmem:[#allocation7 + $0x7d8] sm:$0xff] }
 0x436   :  { %2894 = vmatprep.subr.bf16.mxu0 %v2191_v32  ;;  %v1987_v32 = vld [vmem:[#allocation7 + $0x8f8] sm:$0xff]  ;;  %v2215_v15 = vunpack.c.h.s8.bf16 %v1951_v33 }
 0x437   :  { %v4263_v46 = vpop.f32.mrf.mxu0  ;;  %2804 = vmatmul.mubr.bf16.vlgmr.msra.gmra.mxu1 %v4243_v47  ;;  %v2559_v13 = vpop.f32.mrf.mxu1  ;;  %v2287_v41 = vunpack.c.h.s8.bf16 %v1987_v32 }
 0x438   :  { %2845 = vmatmul.mubr.bf16.vlgmr.msra.gmra.mxu0 %v4225_v23  ;;  %v4268_v54 = vadd.f32 %v2559_v13, %v4256_v48  ;;  %2854 = vmatpush1.bf16.msra.mxu1 %v2380_v16  ;;  %v1926_v48 = vld [vmem:[#allocation7 + $0x710] sm:$0xff]  ;;  %v2106_v16 = vunpack.c.l.s8.bf16 %v1902_v28 }
 0x439   :  { %2885 = vmatprep.mubr.bf16.mxu1 %v4241_v60  ;;  %2895 = vmatpush1.bf16.msra.mxu0 %v2190_v36  ;;  %v4271_v56 = vpop.f32.mrf.mxu0  ;;  %v2561_v7 = vpop.f32.mrf.mxu1  ;;  %v2166_v0 = vunpack.c.h.s8.bf16 %v1926_v48  ;;  %v2154_v25 = vunpack.c.l.s8.bf16 %v1926_v48  ;;  %v2477_v36 = vunpack.c.h.s8.bf16 %v2081_v31  ;;  %v1986_v13 = vld [vmem:[#allocation7 + $0x8f0] sm:$0xff] }
 0x43a   :  { %2926 = vmatprep.mubr.bf16.mxu0 %v4223_v14  ;;  %v4275_v59 = vadd.f32 %v2561_v7, %v4260_v55  ;;  %2855 = vmatprep.subr.bf16.mxu1 %v2369_v38  ;;  %v2009_v14 = vld [vmem:[#allocation7 + $0x9a8] sm:$0xff]  ;;  %v2344_v55 = vunpack.c.l.s8.bf16 %v2020_v8  ;;  %v2080_v38 = vld [vmem:[#allocation7 + $0xbe0] sm:$0xff]  ;;  %v2286_v51 = vunpack.c.h.s8.bf16 %v1986_v13  ;;  %v2275_v7 = vunpack.c.l.s8.bf16 %v1987_v32 }
 0x43b   :  { %v2604_v61 = vpop.f32.mrf.mxu0  ;;  %2896 = vmatprep.subr.bf16.mxu0 %v2179_v40  ;;  %v2563_v62 = vpop.f32.mrf.mxu1  ;;  %v2333_v39 = vunpack.c.h.s8.bf16 %v2009_v14  ;;  %v2321_v5 = vunpack.c.l.s8.bf16 %v2009_v14  ;;  %v2476_v40 = vunpack.c.h.s8.bf16 %v2080_v38  ;;  %v2464_v8 = vunpack.c.l.s8.bf16 %v2080_v38  ;;  %v1963_v14 = vld [vmem:[#allocation7 + $0x838] sm:$0xff] }
 0x43c   :  { %2856 = vmatpush1.bf16.msra.mxu1 %v2368_v17  ;;  %v2465_v17 = vunpack.c.l.s8.bf16 %v2081_v31  ;;  %v2068_v61 = vld [vmem:[#allocation7 + $0xb80] sm:$0xff]  ;;  %v2239_v49 = vunpack.c.h.s8.bf16 %v1963_v14 }
 0x43d   :  { %2897 = vmatpush1.bf16.msra.mxu0 %v2178_v57  ;;  %v2605_v20 = vpop.f32.mrf.mxu0  ;;  %v2564_v30 = vpop.f32.mrf.mxu1  ;;  %2857 = vmatprep.subr.bf16.mxu1 %v2357_v58  ;;  %v2069_v57 = vld [vmem:[#allocation7 + $0xb88] sm:$0xff]  ;;  %v1975_v58 = vld [vmem:[#allocation7 + $0x898] sm:$0xff]  ;;  %v2440_v2 = vunpack.c.l.s8.bf16 %v2068_v61 }
 0x43e   :  { %2898 = vmatprep.subr.bf16.mxu0 %v2167_v43  ;;  %v2274_v43 = vunpack.c.l.s8.bf16 %v1986_v13  ;;  %v2453_v48 = vunpack.c.h.s8.bf16 %v2069_v57  ;;  %v2263_v62 = vunpack.c.h.s8.bf16 %v1975_v58  ;;  %v2452_v20 = vunpack.c.h.s8.bf16 %v2068_v61 }
 0x440   :  { %2858 = vmatpush1.bf16.msra.mxu1 %v2356_v63  ;;  %v1974_v63 = vld [vmem:[#allocation7 + $0x890] sm:$0xff] }
 0x441   :  { %2899 = vmatpush1.bf16.msra.mxu0 %v2166_v0  ;;  %2859 = vmatprep.subr.bf16.mxu1 %v2345_v1  ;;  %v2262_v30 = vunpack.c.h.s8.bf16 %v1974_v63  ;;  %v2441_v0 = vunpack.c.l.s8.bf16 %v2069_v57  ;;  %v2251_v1 = vunpack.c.l.s8.bf16 %v1975_v58 }
 0x442   :  { %2900 = vmatprep.subr.bf16.mxu0 %v2155_v50  ;;  %v2057_v50 = vld [vmem:[#allocation7 + $0xb28] sm:$0xff] }
 0x444   :  { %2860 = vmatpush1.bf16.msra.mxu1 %v2344_v55  ;;  %v2250_v55 = vunpack.c.l.s8.bf16 %v1974_v63 }
 0x445   :  { %2901 = vmatpush1.bf16.msra.mxu0 %v2154_v25  ;;  %2861 = vmatprep.subr.bf16.mxu1 %v2333_v39  ;;  %v2429_v25 = vunpack.c.h.s8.bf16 %v2057_v50  ;;  %v2056_v39 = vld [vmem:[#allocation7 + $0xb20] sm:$0xff] }
 0x446   :  { %2902 = vmatprep.subr.bf16.mxu0 %v2143_v53  ;;  %v1962_v53 = vld [vmem:[#allocation7 + $0x830] sm:$0xff]  ;;  %v2428_v3 = vunpack.c.h.s8.bf16 %v2056_v39  ;;  %v2416_v9 = vunpack.c.l.s8.bf16 %v2056_v39 }
 0x448   :  { %2862 = vmatpush1.bf16.msra.mxu1 %v2332_v4  ;;  %v2238_v4 = vunpack.c.h.s8.bf16 %v1962_v53 }
 0x449   :  { %2903 = vmatpush1.bf16.msra.mxu0 %v2142_v42  ;;  %2863 = vmatprep.subr.bf16.mxu1 %v2321_v5  ;;  %v2417_v42 = vunpack.c.l.s8.bf16 %v2057_v50  ;;  %v2227_v5 = vunpack.c.l.s8.bf16 %v1963_v14 }
 0x44a   :  { %2904 = vmatprep.subr.bf16.mxu0 %v2131_v6  ;;  %v2045_v6 = vld [vmem:[#allocation7 + $0xac8] sm:$0xff] }
 0x44c   :  { %2864 = vmatpush1.bf16.msra.mxu1 %v2320_v10  ;;  %v2226_v10 = vunpack.c.l.s8.bf16 %v1962_v53 }
 0x44d   :  { %2905 = vmatpush1.bf16.msra.mxu0 %v2130_v11  ;;  %2865 = vmatprep.subr.bf16.mxu1 %v2309_v12  ;;  %v2405_v11 = vunpack.c.h.s8.bf16 %v2045_v6  ;;  %v2044_v12 = vld [vmem:[#allocation7 + $0xac0] sm:$0xff] }
 0x44e   :  { %2906 = vmatprep.subr.bf16.mxu0 %v2119_v24  ;;  %v1950_v24 = vld [vmem:[#allocation7 + $0x7d0] sm:$0xff]  ;;  %v2404_v28 = vunpack.c.h.s8.bf16 %v2044_v12  ;;  %v2392_v31 = vunpack.c.l.s8.bf16 %v2044_v12  ;;  %v2071_v12 = vld [vmem:[#allocation7 + $0xb98] sm:$0xff] }
 0x44f   :  { %v2202_v32 = vunpack.c.l.s8.bf16 %v1950_v24 }
 0x450   :  { %2866 = vmatpush1.bf16.msra.mxu1 %v2308_v34  ;;  %v2214_v34 = vunpack.c.h.s8.bf16 %v1950_v24 }
 0x451   :  { %2907 = vmatpush1.bf16.msra.mxu0 %v2118_v26  ;;  %2867 = vmatprep.subr.bf16.mxu1 %v2297_v27  ;;  %v2393_v26 = vunpack.c.l.s8.bf16 %v2045_v6  ;;  %v2203_v27 = vunpack.c.l.s8.bf16 %v1951_v33 }
 0x452   :  { %2908 = vmatprep.subr.bf16.mxu0 %v2107_v29  ;;  %v2035_v29 = vld [vmem:[#allocation7 + $0xa78] sm:$0xff] }
 0x453   :  { %v2371_v38 = vunpack.c.l.s8.bf16 %v2035_v29 }
 0x454   :  { %2868 = vmatpush1.bf16.msra.mxu1 %v2296_v35  ;;  %v2383_v35 = vunpack.c.h.s8.bf16 %v2035_v29 }
 0x455   :  { %2909 = vmatpush1.bf16.msra.mxu0 %v2106_v16  ;;  %2869 = vmatprep.subr.bf16.mxu1 %v2477_v36  ;;  %v2034_v16 = vld [vmem:[#allocation7 + $0xa70] sm:$0xff] }
 0x456   :  { %2910 = vmatprep.subr.bf16.mxu0 %v2287_v41  ;;  %v2382_v36 = vunpack.c.h.s8.bf16 %v2034_v16  ;;  %v2023_v41 = vld [vmem:[#allocation7 + $0xa18] sm:$0xff] }
 0x457   :  { %v2359_v58 = vunpack.c.h.s8.bf16 %v2023_v41 }
 0x458   :  { %2870 = vmatpush2.bf16.msra.mxu1 %v2476_v40 }
 0x459   :  { %2911 = vmatpush2.bf16.msra.mxu0 %v2286_v51  ;;  %2871 = vmatprep.subr.bf16.mxu1 %v2465_v17  ;;  %v2370_v17 = vunpack.c.l.s8.bf16 %v2034_v16  ;;  %v2059_v16 = vld [vmem:[#allocation7 + $0xb38] sm:$0xff] }
 0x45a   :  { %2912 = vmatprep.subr.bf16.mxu0 %v2275_v7 }
 0x45c   :  { %2872 = vmatpush2.bf16.msra.mxu1 %v2464_v8  ;;  %v2022_v8 = vld [vmem:[#allocation7 + $0xa10] sm:$0xff] }
 0x45d   :  { %2913 = vmatpush2.bf16.msra.mxu0 %v2274_v43  ;;  %2873 = vmatprep.subr.bf16.mxu1 %v2453_v48 }
 0x45e   :  { %2914 = vmatprep.subr.bf16.mxu0 %v2263_v62 }
 0x460   :  { %2874 = vmatpush2.bf16.msra.mxu1 %v2452_v20  ;;  %v2011_v20 = vld [vmem:[#allocation7 + $0x9b8] sm:$0xff] }
 0x461   :  { %2915 = vmatpush2.bf16.msra.mxu0 %v2262_v30  ;;  %2875 = vmatprep.subr.bf16.mxu1 %v2441_v0  ;;  %v2335_v30 = vunpack.c.h.s8.bf16 %v2011_v20  ;;  %v2010_v0 = vld [vmem:[#allocation7 + $0x9b0] sm:$0xff]  ;;  %v2323_v50 = vunpack.c.l.s8.bf16 %v2011_v20 }
 0x462   :  { %2916 = vmatprep.subr.bf16.mxu0 %v2251_v1  ;;  %v2334_v1 = vunpack.c.h.s8.bf16 %v2010_v0  ;;  %v2322_v14 = vunpack.c.l.s8.bf16 %v2010_v0 }
 0x464   :  { %2876 = vmatpush2.bf16.msra.mxu1 %v2440_v2 }
 0x465   :  { %2917 = vmatpush2.bf16.msra.mxu0 %v2250_v55  ;;  %2877 = vmatprep.subr.bf16.mxu1 %v2429_v25  ;;  %v1998_v55 = vld [vmem:[#allocation7 + $0x950] sm:$0xff] }
 0x466   :  { %2918 = vmatprep.subr.bf16.mxu0 %v2239_v49  ;;  %v2310_v25 = vunpack.c.h.s8.bf16 %v1998_v55  ;;  %v2083_v49 = vld [vmem:[#allocation7 + $0xbf8] sm:$0xff]  ;;  %v2298_v53 = vunpack.c.l.s8.bf16 %v1998_v55 }
 0x468   :  { %2878 = vmatpush2.bf16.msra.mxu1 %v2428_v3  ;;  %v2479_v3 = vunpack.c.h.s8.bf16 %v2083_v49 }
 0x469   :  { %2919 = vmatpush2.bf16.msra.mxu0 %v2238_v4  ;;  %2879 = vmatprep.subr.bf16.mxu1 %v2417_v42  ;;  %v2082_v4 = vld [vmem:[#allocation7 + $0xbf0] sm:$0xff] }
 0x46a   :  { %2920 = vmatprep.subr.bf16.mxu0 %v2227_v5  ;;  %v2085_v42 = vld [vmem:[#allocation10 + $0x2] ss:$8 sm:$0xf]  ;;  %v2478_v6 = vunpack.c.h.s8.bf16 %v2082_v4 }
 0x46b   :  { %v2086_v5 = vld [vmem:[#allocation10 + $0x2] ss:$8 sm:$0xf0] }
 0x46c   :  { %2880 = vmatpush2.bf16.msra.mxu1 %v2416_v9  ;;  %v4290_v33 = vor.u32 %v2086_v5, %v2085_v42  ;;  %v2091_v9 = vld [vmem:[#allocation10 + $0x5] ss:$8 sm:$0xf] }
 0x46d   :  { %2921 = vmatpush2.bf16.msra.mxu0 %v2226_v10  ;;  %2881 = vmatprep.subr.bf16.mxu1 %v2405_v11  ;;  %v2467_v10 = vunpack.c.l.s8.bf16 %v2083_v49  ;;  %v2092_v11 = vld [vmem:[#allocation10 + $0x5] ss:$8 sm:$0xf0] }
 0x46e   :  { %2922 = vmatprep.subr.bf16.mxu0 %v2215_v15  ;;  %v2466_v15 = vunpack.c.l.s8.bf16 %v2082_v4  ;;  %v4292_v24 = vor.u32 %v2092_v11, %v2091_v9  ;;  %v2997_v0 = vrot.slane %v4290_v33, %v4081_v37  ;;  %v3001_v55 = vrot.slane %v4290_v33, %v4085_v45  ;;  %v3671_v11 = vld [vmem:[#allocation8 + $0x78] sm:$0xff]  }
 0x470   :  { %2882 = vmatpush2.bf16.msra.mxu1 %v2404_v28  ;;  %v2981_v28 = vrot.slane %v4290_v33, %v4055_v18 }
 0x471   :  { %2923 = vmatpush2.bf16.msra.mxu0 %v2214_v34  ;;  %2883 = vmatprep.subr.bf16.mxu1 %v2393_v26  ;;  %v2455_v34 = vunpack.c.h.s8.bf16 %v2071_v12  ;;  %v2070_v26 = vld [vmem:[#allocation7 + $0xb90] sm:$0xff] }
 0x472   :  { %2924 = vmatprep.subr.bf16.mxu0 %v2203_v27  ;;  %v2985_v27 = vrot.slane %v4290_v33, %v4061_v21  ;;  %v2454_v29 = vunpack.c.h.s8.bf16 %v2070_v26 }
 0x474   :  { %2884 = vmatpush2.bf16.msra.mxu1 %v2392_v31  ;;  %v3038_v31 = vmul.f32 %v2981_v28, %v4268_v54 }
 0x475   :  { %2925 = vmatpush2.bf16.msra.mxu0 %v2202_v32  ;;  %2935 = vmatprep.subr.bf16.mxu1 %v2383_v35  ;;  %v3055_v32 = vrot.slane %v4292_v24, %v4055_v18  ;;  %v2443_v35 = vunpack.c.l.s8.bf16 %v2071_v12  ;;  %v3672_v12 = vld [vmem:[#allocation8 + $0x38] sm:$0xff]  }
 0x476   :  { %3616 = vmatprep.subr.bf16.mxu0 %v3671_v11 }
 0x477   :  { %v2641_v13 = vpop.f32.mrf.mxu1  ;;  %v4277_v40 = vpop.f32.mrf.mxu0  ;;  %2886 = vmatmul.mubr.bf16.vlgmr.msra.gmra.mxu1 %v4243_v47 }
 0x478   :  { %v4281_v51 = vadd.f32 %v2641_v13, %v4263_v46  ;;  %2927 = vmatmul.mubr.bf16.vlgmr.msra.gmra.mxu0 %v4225_v23  ;;  %2936 = vmatpush1.bf16.msra.mxu1 %v2382_v36  ;;  %v2358_v46 = vunpack.c.h.s8.bf16 %v2022_v8  ;;  %v2347_v23 = vunpack.c.l.s8.bf16 %v2023_v41  ;;  %v3039_v36 = vmul.f32 %v2985_v27, %v4275_v59 }
 0x479   :  { %2967 = vmatprep.mubr.bf16.mxu1 %v4241_v60  ;;  %v2643_v7 = vpop.f32.mrf.mxu1  ;;  %v4285_v57 = vpop.f32.mrf.mxu0  ;;  %2937 = vmatprep.subr.bf16.mxu1 %v2371_v38  ;;  %v2346_v60 = vunpack.c.l.s8.bf16 %v2022_v8  ;;  %v3059_v38 = vrot.slane %v4292_v24, %v4061_v21  ;;  %v2442_v41 = vunpack.c.l.s8.bf16 %v2070_v26  ;;  %v3112_v13 = vadd.f32 %v3055_v32, %v3038_v31  ;;  %v3676_v31 = vld [vmem:[#allocation8 + $0x28] sm:$0xff]  }
 0x47a   :  { %v4288_v43 = vadd.f32 %v2643_v7, %v4271_v56  ;;  %v1999_v56 = vld [vmem:[#allocation7 + $0x958] sm:$0xff]  ;;  %v2058_v7 = vld [vmem:[#allocation7 + $0xb30] sm:$0xff]  ;;  %3617 = vmatpush3.bf16.msra.mxu0 %v3672_v12 }
 0x47b   :  { %v2645_v48 = vpop.f32.mrf.mxu1  ;;  %v2686_v61 = vpop.f32.mrf.mxu0  ;;  %v2311_v2 = vunpack.c.h.s8.bf16 %v1999_v56  ;;  %v2299_v39 = vunpack.c.l.s8.bf16 %v1999_v56  ;;  %v2430_v54 = vunpack.c.h.s8.bf16 %v2058_v7  ;;  %v3575_v8 = vmul.f32 -1.442695, %v3112_v13  ;;  %v3682_v13 = vld [vmem:[#allocation8 + $0x10] sm:$0xff]  }
 0x47c   :  { %2938 = vmatpush1.bf16.msra.mxu1 %v2370_v17  ;;  %v2431_v17 = vunpack.c.h.s8.bf16 %v2059_v16  ;;  %v2419_v48 = vunpack.c.l.s8.bf16 %v2059_v16  ;;  %v2047_v61 = vld [vmem:[#allocation7 + $0xad8] sm:$0xff]  ;;  %v3678_v16 = vld [vmem:[#allocation8 + $0x20] sm:$0xff]  }
 0x47d   :  { %v2646_v62 = vpop.f32.mrf.mxu1  ;;  %v2687_v63 = vpop.f32.mrf.mxu0  ;;  %2939 = vmatprep.subr.bf16.mxu1 %v2359_v58  ;;  %v3113_v58 = vadd.f32 %v3059_v38, %v3039_v36  ;;  %3799 = vpow2.f32 %v3575_v8  ;;  %v2407_v59 = vunpack.c.h.s8.bf16 %v2047_v61  ;;  %v2395_v20 = vunpack.c.l.s8.bf16 %v2047_v61  ;;  %v3679_v36 = vld [vmem:[#allocation8 + $0x58] sm:$0xff]   ;;  %v3685_v61 = vld [vmem:[#allocation8 + $0x40] sm:$0xff]  }
 0x47e   :  { %v2418_v62 = vunpack.c.l.s8.bf16 %v2058_v7  ;;  %v2046_v63 = vld [vmem:[#allocation7 + $0xad0] sm:$0xff]  ;;  %v3680_v38 = vld [vmem:[#allocation8 + $0x18] sm:$0xff]   ;;  %v3683_v7 = vld [vmem:[#allocation8 + $0x48] sm:$0xff]  }
 0x480   :  { %2940 = vmatpush1.bf16.msra.mxu1 %v2358_v46  ;;  %v3576_v46 = vmul.f32 -1.442695, %v3113_v58  ;;  %v2993_v58 = vrot.slane %v4290_v33, %v4063_v22 }
 0x481   :  { %2941 = vmatprep.subr.bf16.mxu1 %v2347_v23  ;;  %v2406_v23 = vunpack.c.h.s8.bf16 %v2046_v63 }
 0x482   :  { %3801 = vpow2.f32 %v3576_v46  ;;  %v3041_v46 = vmul.f32 %v2993_v58, %v4288_v43 }
 0x484   :  { %2942 = vmatpush1.bf16.msra.mxu1 %v2346_v60  ;;  %v2394_v60 = vunpack.c.l.s8.bf16 %v2046_v63 }
 0x485   :  { %2943 = vmatprep.subr.bf16.mxu1 %v2335_v30 }
 0x488   :  { %2944 = vmatpush1.bf16.msra.mxu1 %v2334_v1 }
 0x489   :  { %2945 = vmatprep.subr.bf16.mxu1 %v2323_v50 }
 0x48a   :  { %v3800_v30 = vpop.eup %3799 }
 0x48c   :  { %2946 = vmatpush1.bf16.msra.mxu1 %v2322_v14  ;;  %v3071_v14 = vrot.slane %v4292_v24, %v4081_v37 }
 0x48d   :  { %2947 = vmatprep.subr.bf16.mxu1 %v2311_v2 }
 0x48f   :  { %v3802_v50 = vpop.eup %3801 }
 0x490   :  { %2948 = vmatpush1.bf16.msra.mxu1 %v2310_v25  ;;  %v3136_v25 = vadd.f32 1.0, %v3800_v30  ;;  %v3137_v4 = vadd.f32 1.0, %v3802_v50  ;;  %v3005_v30 = vrot.slane %v4290_v33, %v4083_v44  ;;  %v3079_v50 = vrot.slane %v4292_v24, %v4083_v44 }
 0x491   :  { %2949 = vmatprep.subr.bf16.mxu1 %v2299_v39 }
 0x492   :  { %3803 = vrcp.f32 %v3136_v25 }
 0x494   :  { %2950 = vmatpush1.bf16.msra.mxu1 %v2298_v53 }
 0x495   :  { %2951 = vmatprep.subr.bf16.mxu1 %v2479_v3  ;;  %v3075_v3 = vrot.slane %v4292_v24, %v4085_v45 }
 0x498   :  { %2952 = vmatpush2.bf16.msra.mxu1 %v2478_v6 }
 0x499   :  { %2953 = vmatprep.subr.bf16.mxu1 %v2467_v10 }
 0x49c   :  { %2954 = vmatpush2.bf16.msra.mxu1 %v2466_v15  ;;  %v3674_v15 = vld [vmem:[#allocation8 + $0x30] sm:$0xff]  }
 0x49d   :  { %2955 = vmatprep.subr.bf16.mxu1 %v2455_v34 }
 0x49f   :  { %v3804_v45 = vpop.eup %3803 }
 0x4a0   :  { %2956 = vmatpush2.bf16.msra.mxu1 %v2454_v29  ;;  %v3675_v29 = vld [vmem:[#allocation8 + $0x68] sm:$0xff]  }
 0x4a1   :  { %2957 = vmatprep.subr.bf16.mxu1 %v2443_v35  ;;  %v3677_v35 = vld [vmem:[#allocation8 + $0x60] sm:$0xff]  }
 0x4a4   :  { %2958 = vmatpush2.bf16.msra.mxu1 %v2442_v41  ;;  %v3681_v41 = vld [vmem:[#allocation8 + $0x50] sm:$0xff]  }
 0x4a5   :  { %2959 = vmatprep.subr.bf16.mxu1 %v2431_v17  ;;  %v2989_v17 = vrot.slane %v4290_v33, %v4057_v19 }
 0x4a7   :  { %v3040_v8 = vmul.f32 %v2989_v17, %v4281_v51  ;;  %v2089_v17 = vld [vmem:[#allocation10 + $0x42] ss:$8 sm:$0xf] }
 0x4a8   :  { %2960 = vmatpush2.bf16.msra.mxu1 %v2430_v54  ;;  %v3684_v54 = vld [vmem:[#allocation8 + $0x8] sm:$0xff]   ;;  %v3013_v58 = vrot.slane %v2089_v17, %v4055_v18 }
 0x4a9   :  { %2961 = vmatprep.subr.bf16.mxu1 %v2419_v48  ;;  %v3063_v48 = vrot.slane %v4292_v24, %v4057_v19 }
 0x4ab   :  { %v3114_v63 = vadd.f32 %v3063_v48, %v3040_v8 }
 0x4ac   :  { %2962 = vmatpush2.bf16.msra.mxu1 %v2418_v62  ;;  %v3067_v62 = vrot.slane %v4292_v24, %v4063_v22 }
 0x4ad   :  { %2963 = vmatprep.subr.bf16.mxu1 %v2407_v59  ;;  %v3686_v59 = vld [vmem:[#allocation8] sm:$0xff]  }
 0x4b0   :  { %2964 = vmatpush2.bf16.msra.mxu1 %v2406_v23  ;;  %v3115_v23 = vadd.f32 %v3067_v62, %v3041_v46  ;;  %v3017_v46 = vrot.slane %v2089_v17, %v4061_v21 }
 0x4b1   :  { %2965 = vmatprep.subr.bf16.mxu1 %v2395_v20  ;;  %v3577_v20 = vmul.f32 -1.442695, %v3114_v63 }
 0x4b4   :  { %2966 = vmatpush2.bf16.msra.mxu1 %v2394_v60  ;;  %v3578_v60 = vmul.f32 -1.442695, %v3115_v23 }
 0x4b7   :  { %v2723_v1 = vpop.f32.mrf.mxu1  ;;  %2968 = vmatmul.mubr.bf16.vlgmr.msra.gmra.mxu1 %v4243_v47 }
 0x4b8   :  { %v2724_v56 = vadd.f32 %v2723_v1, %v4277_v40  ;;  %v4310_v2 = vpop.f32.mrf.mxu0 }
 0x4b9   :  { %v2725_v39 = vpop.f32.mrf.mxu1 }
 0x4ba   :  { %v3042_v49 = vmul.f32 %v2997_v0, %v2724_v56  ;;  %v2726_v53 = vadd.f32 %v2725_v39, %v4285_v57  ;;  %v4317_v47 = vpop.f32.mrf.mxu0  ;;  %v3673_v57 = vld [vmem:[#allocation8 + $0x70] sm:$0xff]  }
 0x4bb   :  { %v2727_v40 = vpop.f32.mrf.mxu1  ;;  %3618 = vmatprep.subr.bf16.mxu0 %v3673_v57 }
 0x4bc   :  { %v3116_v42 = vadd.f32 %v3071_v14, %v3042_v49  ;;  %v3043_v5 = vmul.f32 %v3001_v55, %v2726_v53  ;;  %v2768_v37 = vpop.f32.mrf.mxu0  ;;  %3619 = vmatpush3.bf16.msra.mxu0 %v3674_v15  ;;  %v3009_v14 = vrot.slane %v4290_v33, %v4087_v52  ;;  %v3083_v53 = vrot.slane %v4292_v24, %v4087_v52  ;;  %v3687_v33 = vld [vmem:[#allocation8 + $0xf8] sm:$0xff]   ;;  %v3690_v52 = vld [vmem:[#allocation8 + $0xb0] sm:$0xff]   ;;  %v3692_v15 = vld [vmem:[#allocation8 + $0xa8] sm:$0xff]  }
 0x4bd   :  { %v2728_v6 = vpop.f32.mrf.mxu1  ;;  %3620 = vmatprep.subr.bf16.mxu0 %v3675_v29  ;;  %3638 = vmatprep.subr.bf16.mxu1 %v3687_v33  ;;  %v3695_v29 = vld [vmem:[#allocation8 + $0xd8] sm:$0xff]  }
 0x4be   :  { %3805 = vtanh.f32 %v3116_v42  ;;  %v3117_v9 = vadd.f32 %v3075_v3, %v3043_v5  ;;  %v2769_v10 = vpop.f32.mrf.mxu0 }
 0x4bf   :  { %3807 = vrcp.f32 %v3137_v4 }
 0x4c0   :  { %3809 = vtanh.f32 %v3117_v9  ;;  %3621 = vmatpush3.bf16.msra.mxu0 %v3676_v31  ;;  %v3688_v9 = vld [vmem:[#allocation8 + $0xb8] sm:$0xff]  }
 0x4c1   :  { %3622 = vmatprep.subr.bf16.mxu0 %v3677_v35  ;;  %3811 = vpow2.f32 %v3577_v20  ;;  %3639 = vmatpush3.bf16.msra.mxu1 %v3688_v9  ;;  %v3696_v31 = vld [vmem:[#allocation8 + $0x98] sm:$0xff]   ;;  %v3697_v35 = vld [vmem:[#allocation8 + $0xd0] sm:$0xff]  }
 0x4c2   :  { %3813 = vpow2.f32 %v3578_v60 }
 0x4c4   :  { %3623 = vmatpush3.bf16.msra.mxu0 %v3678_v16  ;;  %v3698_v16 = vld [vmem:[#allocation8 + $0x90] sm:$0xff]  }
 0x4c5   :  { %3624 = vmatprep.subr.bf16.mxu0 %v3679_v36  ;;  %v3699_v36 = vld [vmem:[#allocation8 + $0xc8] sm:$0xff]  }
 0x4c8   :  { %3625 = vmatpush3.bf16.msra.mxu0 %v3680_v38  ;;  %v3700_v38 = vld [vmem:[#allocation8 + $0x88] sm:$0xff]  }
 0x4c9   :  { %3626 = vmatprep.subr.bf16.mxu0 %v3681_v41  ;;  %v3701_v41 = vld [vmem:[#allocation8 + $0xc0] sm:$0xff]  }
 0x4cb   :  { %v3806_v28 = vpop.eup %3805 }
 0x4cc   :  { %v3808_v34 = vpop.eup %3807  ;;  %v4319_v26 = vmul.f32 %v3806_v28, %v3804_v45  ;;  %3627 = vmatpush3.bf16.msra.mxu0 %v3682_v13  ;;  %v3691_v45 = vld [vmem:[#allocation8 + $0xe8] sm:$0xff]   ;;  %v3702_v13 = vld [vmem:[#allocation8 + $0x80] sm:$0xff]  }
 0x4cd   :  { %v3810_v27 = vpop.eup %3809  ;;  %3628 = vmatprep.subr.bf16.mxu0 %v3683_v7  ;;  %v2095_v7 = vld [vmem:[#allocation10 + $0x45] ss:$8 sm:$0xf] }
 0x4ce   :  { %v4321_v32 = vmul.f32 %v3810_v27, %v3808_v34  ;;  %v3812_v51 = vpop.eup %3811  ;;  %v3693_v34 = vld [vmem:[#allocation8 + $0xe0] sm:$0xff]   ;;  %v3087_v48 = vrot.slane %v2095_v7, %v4055_v18  ;;  %v3091_v23 = vrot.slane %v2095_v7, %v4061_v21 }
 0x4cf   :  { %v3814_v1 = vpop.eup %3813  ;;  %v3138_v55 = vadd.f32 1.0, %v3812_v51  ;;  %v3694_v27 = vld [vmem:[#allocation8 + $0xa0] sm:$0xff]  }
 0x4d0   :  { %3629 = vmatpush3.bf16.msra.mxu0 %v3684_v54  ;;  %v3139_v4 = vadd.f32 1.0, %v3814_v1 }
 0x4d1   :  { %3630 = vmatprep.subr.bf16.mxu0 %v3685_v61  ;;  %3815 = vrcp.f32 %v3138_v55 }
 0x4d4   :  { %3631 = vmatpush3.bf16.msra.mxu0 %v3686_v59 }
 0x4de   :  { %v3816_v10 = vpop.eup %3815 }
 0x4f7   :  { %v2805_v0 = vpop.f32.mrf.mxu1 }
 0x4f8   :  { %v2806_v43 = vadd.f32 %v2805_v0, %v4310_v2  ;;  %v2846_v56 = vpop.f32.mrf.mxu0 }
 0x4f9   :  { %v2807_v25 = vpop.f32.mrf.mxu1 }
 0x4fa   :  { %v3044_v39 = vmul.f32 %v3005_v30, %v2806_v43  ;;  %v2808_v49 = vadd.f32 %v2807_v25, %v4317_v47  ;;  %v2848_v3 = vpop.f32.mrf.mxu0  ;;  %v3689_v47 = vld [vmem:[#allocation8 + $0xf0] sm:$0xff]  }
 0x4fb   :  { %v2809_v40 = vpop.f32.mrf.mxu1  ;;  %3640 = vmatprep.subr.bf16.mxu1 %v3689_v47  ;;  %v3099_v47 = vrot.slane %v2095_v7, %v4063_v22 }
 0x4fc   :  { %v3118_v42 = vadd.f32 %v3079_v50, %v3044_v39  ;;  %v3045_v2 = vmul.f32 %v3009_v14, %v2808_v49  ;;  %v2850_v5 = vpop.f32.mrf.mxu0  ;;  %3641 = vmatpush3.bf16.msra.mxu1 %v3690_v52 }
 0x4fd   :  { %v2810_v44 = vpop.f32.mrf.mxu1  ;;  %3642 = vmatprep.subr.bf16.mxu1 %v3691_v45  ;;  %v3021_v5 = vrot.slane %v2089_v17, %v4057_v19 }
 0x4fe   :  { %3817 = vtanh.f32 %v3118_v42  ;;  %v3119_v37 = vadd.f32 %v3083_v53, %v3045_v2  ;;  %v2851_v6 = vpop.f32.mrf.mxu0 }
 0x4ff   :  { %3819 = vrcp.f32 %v3139_v4  ;;  %v3025_v6 = vrot.slane %v2089_v17, %v4063_v22 }
 0x500   :  { %3821 = vtanh.f32 %v3119_v37  ;;  %3643 = vmatpush3.bf16.msra.mxu1 %v3692_v15 }
 0x501   :  { %3644 = vmatprep.subr.bf16.mxu1 %v3693_v34 }
 0x504   :  { %3645 = vmatpush3.bf16.msra.mxu1 %v3694_v27 }
 0x505   :  { %3646 = vmatprep.subr.bf16.mxu1 %v3695_v29 }
 0x508   :  { %3647 = vmatpush3.bf16.msra.mxu1 %v3696_v31 }
 0x509   :  { %3648 = vmatprep.subr.bf16.mxu1 %v3697_v35 }
 0x50b   :  { %v3818_v24 = vpop.eup %3817 }
 0x50c   :  { %v3820_v11 = vpop.eup %3819  ;;  %v4343_v12 = vmul.f32 %v3818_v24, %v3816_v10  ;;  %3649 = vmatpush3.bf16.msra.mxu1 %v3698_v16 }
 0x50d   :  { %v3822_v57 = vpop.eup %3821  ;;  %3650 = vmatprep.subr.bf16.mxu1 %v3699_v36 }
 0x50e   :  { %v4345_v28 = vmul.f32 %v3822_v57, %v3820_v11 }
 0x510   :  { %3651 = vmatpush3.bf16.msra.mxu1 %v3700_v38 }
 0x511   :  { %3652 = vmatprep.subr.bf16.mxu1 %v3701_v41 }
 0x514   :  { %3653 = vmatpush3.bf16.msra.mxu1 %v3702_v13 }
 0x537   :  { %v2887_v54 = vpop.f32.mrf.mxu1 }
 0x538   :  { %v2888_v8 = vadd.f32 %v2887_v54, %v2846_v56  ;;  %v2928_v61 = vpop.f32.mrf.mxu0 }
 0x539   :  { %v2889_v62 = vpop.f32.mrf.mxu1 }
 0x53a   :  { %v3046_v59 = vmul.f32 %v3013_v58, %v2888_v8  ;;  %v2890_v63 = vadd.f32 %v2889_v62, %v2848_v3  ;;  %v2930_v20 = vpop.f32.mrf.mxu0  ;;  %v3256_v8 = vld [vmem:[#allocation10 + $0x6] ss:$0 sm:$0xff] }
 0x53b   :  { %v2891_v60 = vpop.f32.mrf.mxu1 }
 0x53c   :  { %v3120_v51 = vadd.f32 %v3087_v48, %v3046_v59  ;;  %v3047_v30 = vmul.f32 %v3017_v46, %v2890_v63  ;;  %v2932_v0 = vpop.f32.mrf.mxu0 }
 0x53d   :  { %v2892_v1 = vpop.f32.mrf.mxu1 }
 0x53e   :  { %v3579_v43 = vmul.f32 -1.442695, %v3120_v51  ;;  %v3121_v50 = vadd.f32 %v3091_v23, %v3047_v30  ;;  %v2933_v14 = vpop.f32.mrf.mxu0 }
 0x540   :  { %3823 = vpow2.f32 %v3579_v43  ;;  %v3580_v56 = vmul.f32 -1.442695, %v3121_v50 }
 0x542   :  { %3825 = vpow2.f32 %v3580_v56 }
 0x543   :  { %3827 = vtanh.f32 %v4319_v26  ;;  %v3095_v26 = vrot.slane %v2095_v7, %v4057_v19 }
 0x54d   :  { %v3824_v18 = vpop.eup %3823 }
 0x54e   :  { %v3164_v55 = vadd.f32 1.0, %v3824_v18 }
 0x54f   :  { %v3826_v25 = vpop.eup %3825 }
 0x550   :  { %3829 = vrcp.f32 %v3164_v55  ;;  %v3165_v39 = vadd.f32 1.0, %v3826_v25  ;;  %v3828_v21 = vpop.eup %3827 }
 0x551   :  { %3831 = vtanh.f32 %v4321_v32 }
 0x552   :  { %3833 = vrcp.f32 %v3165_v39 }
 0x55d   :  { %v3830_v49 = vpop.eup %3829 }
 0x55e   :  { %v3832_v53 = vpop.eup %3831  ;;  %v3184_v3 = vmul.f32 %v3830_v49, %v3828_v21 }
 0x55f   :  { %v3834_v4 = vpop.eup %3833 }
 0x560   :  { %v3185_v40 = vmul.f32 %v3834_v4, %v3832_v53  ;;  %v3188_v2 = vpack.c.bf16 %v3184_v3, %v3184_v3 }
 0x562   :  { %v3189_v42 = vpack.c.bf16 %v3185_v40, %v3185_v40 }
 0x564   :  { %3481 = vmatprep.mubr.bf16.mxu0 %v3189_v42 }
 0x565   :  { %3482 = vmatmul.mubr.bf16.vlgmr.msra.gmra.mxu0 %v3188_v2 }
 0x577   :  { %v2969_v44 = vpop.f32.mrf.mxu1 }
 0x578   :  { %v2970_v37 = vadd.f32 %v2969_v44, %v2928_v61 }
 0x579   :  { %v2971_v32 = vpop.f32.mrf.mxu1 }
 0x57a   :  { %v3048_v33 = vmul.f32 %v3021_v5, %v2970_v37  ;;  %v2972_v9 = vadd.f32 %v2971_v32, %v2930_v20 }
 0x57b   :  { %v2973_v10 = vpop.f32.mrf.mxu1 }
 0x57c   :  { %v3122_v52 = vadd.f32 %v3095_v26, %v3048_v33  ;;  %v3049_v24 = vmul.f32 %v3025_v6, %v2972_v9 }
 0x57d   :  { %v2974_v11 = vpop.f32.mrf.mxu1 }
 0x57e   :  { %v3581_v57 = vmul.f32 -1.442695, %v3122_v52  ;;  %v3123_v45 = vadd.f32 %v3099_v47, %v3049_v24 }
 0x580   :  { %3835 = vpow2.f32 %v3581_v57  ;;  %v3582_v15 = vmul.f32 -1.442695, %v3123_v45 }
 0x582   :  { %3837 = vpow2.f32 %v3582_v15 }
 0x583   :  { %3839 = vtanh.f32 %v4343_v12 }
 0x58d   :  { %v3836_v34 = vpop.eup %3835 }
 0x58e   :  { %v3166_v27 = vadd.f32 1.0, %v3836_v34 }
 0x58f   :  { %v3838_v29 = vpop.eup %3837 }
 0x590   :  { %3841 = vrcp.f32 %v3166_v27  ;;  %v3167_v19 = vadd.f32 1.0, %v3838_v29  ;;  %v3840_v22 = vpop.eup %3839 }
 0x591   :  { %3843 = vtanh.f32 %v4345_v28 }
 0x592   :  { %3845 = vrcp.f32 %v3167_v19 }
 0x59d   :  { %v3842_v31 = vpop.eup %3841 }
 0x59e   :  { %v3844_v35 = vpop.eup %3843  ;;  %v3186_v16 = vmul.f32 %v3842_v31, %v3840_v22 }
 0x59f   :  { %v3846_v36 = vpop.eup %3845 }
 0x5a0   :  { %v3187_v38 = vmul.f32 %v3846_v36, %v3844_v35  ;;  %v3190_v13 = vpack.c.bf16 %v3186_v16, %v3186_v16 }
 0x5a2   :  { %v3191_v41 = vpack.c.bf16 %v3187_v38, %v3187_v38 }
 0x5a4   :  { %3521 = vmatprep.mubr.bf16.mxu1 %v3191_v41 }
 0x5a5   :  { %3522 = vmatmul.mubr.bf16.vlgmr.msra.gmra.mxu1 %v3190_v13 }
 0x625   :  { %v3632_v17 = vpop.f32.mrf.mxu0 }
 0x627   :  { %v3633_v7 = vpop.f32.mrf.mxu0 }
 0x628   :  { %v3634_v12 = vadd.f32 %v3633_v7, %v3632_v17 }
 0x629   :  { %v3635_v58 = vpop.f32.mrf.mxu0 }
 0x62a   :  { %v3484_v28 = vadd.f32 %v3634_v12, %v3256_v8 }
 0x62b   :  { %v3636_v54 = vpop.f32.mrf.mxu0 }
 0x665   :  { %v3654_v48 = vpop.f32.mrf.mxu1 }
 0x667   :  { %v3655_v61 = vpop.f32.mrf.mxu1 }
 0x668   :  { %v3656_v46 = vadd.f32 %v3655_v61, %v3654_v48 }
 0x669   :  { %v3657_v62 = vpop.f32.mrf.mxu1 }
 0x66a   :  { %v3524_v59 = vadd.f32 %v3656_v46, %v3484_v28 }
 0x66b   :  { %v3658_v63 = vpop.f32.mrf.mxu1 }
 0x66c   :  { %v3615_v23 = vmul.f32 -1.442695, %v3524_v59 }
 0x66e   :  { %3847 = vpow2.f32 %v3615_v23 }
 0x67b   :  { %v3848_v20 = vpop.eup %3847 }
 0x67c   :  { %v3532_v60 = vadd.f32 1.0, %v3848_v20 }
 0x67e   :  { %3849 = vrcp.f32 %v3532_v60 }
 0x68b   :  { %v3850_v51 = vpop.eup %3849 }
 0x68c   :  { %3535 = vst [vmem:[#allocation11] sm:$0xff] %v3850_v51 }
 0x68d   :  { %3962 = shalt.err (!%p3959_p1)
}
 0x68e   :  { %3545 = dma.vmem_to_hbm [thread:$0]  %s3543_s4, 128, %s4367_s5, [#allocation4]  }
 0x68f   :  { %3977 = dma.done.wait [#allocation4], 128  }
 0x690   :  { %3978 = vsyncadd [#allocation4], 4294967168 }
 0x691   :  { %3549 = vsyncpa [#allocation3], 1 }
 0x692   :  { %3550 = vsyncpa [#allocation6], 1 }
 0x693   :  { %3551 = vsyncpa [#allocation9], 1 }
 0x694   :  { %3552 = vsyncpa [#allocation4], 1 }

</bundles_post_ra>
